<compile_context>
chip_gen: v5e
topology: v5e:2x2
jax: 0.10.0
libtpu: 0.0.40
codegen_flags: <defaults>
</compile_context>

<pallas_src>
import numpy as np
import jax
import jax.numpy as jnp
from jax.experimental import pallas as pl
from jax.experimental.pallas import tpu as pltpu


def _round_up(x, m):
    return (x + m - 1) // m * m


def _vmem_limit():
    # Per-generation VMEM budget (v7x has only 64 MiB physical).
    try:
        cap = pltpu.get_tpu_info().vmem_capacity_bytes
        return int(min(cap * 3 // 4, 96 * 1024 * 1024))
    except Exception:
        return 32 * 1024 * 1024


# --------------------------------- kernel ----------------------------------

def _net_kernel(x0_ref, x1_ref, x2_ref, x3_ref,
                w1_ref, b1_ref, w2_ref, b2_ref,
                wf1_ref, bf1_ref, wf2_ref, bf2_ref, wf3_ref, bf3_ref,
                o_ref, h1e_ref, h1o_ref, h2_ref):
    """Whole Net forward for one batch tile; everything stays in VMEM."""
    tb = o_ref.shape[0]
    xph = (x0_ref, x1_ref, x2_ref, x3_ref)      # input rows split by (row mod 4)

    def bmm(lhs, w2d):
        # (tb, m, k) bf16 @ (k, n) bf16 -> (tb, m, n) f32 (batched MXU matmul).
        rhs = jnp.broadcast_to(w2d, (tb,) + w2d.shape)
        return jnp.einsum("bmk,bkn->bmn", lhs, rhs,
                          preferred_element_type=jnp.float32)

    # ---- conv1 + bias + ReLU + 2x2 maxpool (pool folded via 4-corner max) ----
    h1_out = (h1e_ref, h1o_ref)                 # pooled rows split by parity
    for parity in (0, 1):                       # parity of pooled output row
        best = None
        for di in (0, 1):                       # pooling-corner row offset
            wins = []
            for p in range(5):                  # conv kernel row
                r0 = 2 * parity + di + p        # raw image row offset (0..7)
                wins.append(xph[r0 % 4][:, r0 // 4:r0 // 4 + 7, :])   # (tb,7,96)
            for dj in (0, 1):                   # pooling-corner col offset (in w1)
                acc = bmm(wins[0], w1_ref[dj * 5])
                for p in range(1, 5):
                    acc += bmm(wins[p], w1_ref[dj * 5 + p])           # (tb,7,84)
                best = acc if best is None else jnp.maximum(best, acc)
        h1_out[parity][...] = jnp.maximum(best + b1_ref[...],
                                          0.0).astype(h1e_ref.dtype)

    # ---- conv2 + bias + ReLU + 2x2 maxpool (reads h1 from VMEM scratch) ----
    best = None
    for di in (0, 1):
        wins = []
        for p in range(5):
            r1 = di + p                          # h1 row offset (0..5)
            wins.append(h1_out[r1 % 2][:, r1 // 2:r1 // 2 + 5, :])    # (tb,5,84)
        for dj in (0, 1):
            acc = bmm(wins[0], w2_ref[dj * 5])
            for p in range(1, 5):
                acc += bmm(wins[p], w2_ref[dj * 5 + p])               # (tb,5,80)
            best = acc if best is None else jnp.maximum(best, acc)
    h2_ref[...] = jnp.maximum(best + b2_ref[...], 0.0).astype(h2_ref.dtype)

    # ---- fc1 + ReLU (NCHW flatten permutation folded into wf1 rows) ----
    a = bmm(h2_ref[:, 0:1, :], wf1_ref[0])
    for r in range(1, 5):
        a += bmm(h2_ref[:, r:r + 1, :], wf1_ref[r])                   # (tb,1,128)
    a = jnp.maximum(a + bf1_ref[...], 0.0).astype(jnp.bfloat16)
    # ---- fc2 + ReLU ----
    a = jnp.maximum(bmm(a, wf2_ref[...]) + bf2_ref[...], 0.0).astype(jnp.bfloat16)
    # ---- fc3 ----
    o_ref[...] = (bmm(a, wf3_ref[...]) + bf3_ref[...]).astype(o_ref.dtype)


# ------------------------- one-time weight re-layout -------------------------

def prepare_params(params):
    """Fold patch-gather / pooling-column-offset / flatten-permutation into the
    weights (done once, offline).  All MXU weights bf16, biases f32."""
    f32 = np.float32
    w1 = np.asarray(params["conv1_w"], f32)      # (co=6, ci=3, p, q)
    b1 = np.asarray(params["conv1_b"], f32)
    w2 = np.asarray(params["conv2_w"], f32)      # (co=16, ci=6, p, q)
    b2 = np.asarray(params["conv2_b"], f32)
    f1w = np.asarray(params["fc1_w"], f32)       # (120, 400) torch (out, in)
    f1b = np.asarray(params["fc1_b"], f32)
    f2w = np.asarray(params["fc2_w"], f32)       # (84, 120)
    f2b = np.asarray(params["fc2_b"], f32)
    f3w = np.asarray(params["fc3_w"], f32)       # (10, 84)
    f3b = np.asarray(params["fc3_b"], f32)

    # conv1: per (pool col offset dj, kernel row p), map a 96-lane image row
    # (lane = w*3 + ci) to the 84-lane pooled-row output (lane = ow2*6 + co).
    w1_big = np.zeros((2, 5, 96, 84), f32)
    for dj in range(2):
        for p in range(5):
            for ow in range(14):
                for q in range(5):
                    wi = 2 * ow + dj + q
                    w1_big[dj, p, wi * 3:wi * 3 + 3,
                           ow * 6:ow * 6 + 6] = w1[:, :, p, q].T
    # conv2: 84-lane h1 row (lane = ow2*6 + ci) -> 80-lane output (ow*16 + co).
    w2_big = np.zeros((2, 5, 84, 80), f32)
    for dj in range(2):
        for p in range(5):
            for ow in range(5):
                for q in range(5):
                    wi = 2 * ow + dj + q
                    w2_big[dj, p, wi * 6:wi * 6 + 6,
                           ow * 16:ow * 16 + 16] = w2[:, :, p, q].T
    # fc1 with the torch NCHW flatten order (c*25 + oh*5 + ow) folded into our
    # (oh row, ow*16 + c lane) conv2 output layout.
    wf1 = np.zeros((5, 80, 128), f32)
    for oh in range(5):
        for ow in range(5):
            for c in range(16):
                wf1[oh, ow * 16 + c, :120] = f1w[:, c * 25 + oh * 5 + ow]
    wf2 = np.zeros((128, 128), f32)
    wf2[:120, :84] = f2w.T
    wf3 = np.zeros((128, 128), f32)
    wf3[:84, :10] = f3w.T

    def pad_bias(b, n):
        out = np.zeros((1, n), f32)
        out[0, :b.shape[0]] = b
        return out

    return {
        "w1": jnp.asarray(w1_big.reshape(10, 96, 84), jnp.bfloat16),
        "b1": jnp.asarray(np.tile(b1, 14).reshape(1, 84), jnp.float32),
        "w2": jnp.asarray(w2_big.reshape(10, 84, 80), jnp.bfloat16),
        "b2": jnp.asarray(np.tile(b2, 5).reshape(1, 80), jnp.float32),
        "wf1": jnp.asarray(wf1, jnp.bfloat16),
        "bf1": jnp.asarray(pad_bias(f1b, 128), jnp.float32),
        "wf2": jnp.asarray(wf2, jnp.bfloat16),
        "bf2": jnp.asarray(pad_bias(f2b, 128), jnp.float32),
        "wf3": jnp.asarray(wf3, jnp.bfloat16),
        "bf3": jnp.asarray(pad_bias(f3b, 128), jnp.float32),
    }


# ------------------------------ Net forward ---------------------------------

def net_forward(prep, x_nchw):
    B = x_nchw.shape[0]
    # Cast to bf16 BEFORE the relayout (halves the bytes the transpose moves).
    xr = jnp.transpose(x_nchw.astype(jnp.bfloat16), (0, 2, 3, 1))  # (B,32,32,3)
    xr = xr.reshape(B, 32, 96)                     # image rows; lane = w*3 + c
    phases = tuple(xr[:, j::4, :] for j in range(4))               # 4 x (B,8,96)

    # >=2 grid steps whenever B>=2 so v7x's dual TensorCores both get work.
    tile_b = max(1, min(8, (B + 1) // 2))
    Bp = _round_up(B, tile_b)
    if Bp != B:
        phases = tuple(jnp.pad(p, ((0, Bp - B), (0, 0), (0, 0))) for p in phases)
    grid = (Bp // tile_b,)

    weight_bytes = sum(int(np.prod(prep[k].shape)) * prep[k].dtype.itemsize
                       for k in prep)
    cost = pl.CostEstimate(
        flops=int(B * 1_303_440),                  # conv1+conv2+fc MACs*2
        transcendentals=0,
        bytes_accessed=int(B * (32 * 96 * 2 + 128 * 4) + weight_bytes))

    out = pl.pallas_call(
        _net_kernel,
        out_shape=jax.ShapeDtypeStruct((Bp, 1, 128), jnp.float32),
        grid=grid,
        in_specs=[pl.BlockSpec((tile_b, 8, 96), lambda i: (i, 0, 0))] * 4 + [
            pl.BlockSpec((10, 96, 84), lambda i: (0, 0, 0)),   # conv1 weights
            pl.BlockSpec((1, 84), lambda i: (0, 0)),           # conv1 bias
            pl.BlockSpec((10, 84, 80), lambda i: (0, 0, 0)),   # conv2 weights
            pl.BlockSpec((1, 80), lambda i: (0, 0)),           # conv2 bias
            pl.BlockSpec((5, 80, 128), lambda i: (0, 0, 0)),   # fc1 weights
            pl.BlockSpec((1, 128), lambda i: (0, 0)),          # fc1 bias
            pl.BlockSpec((128, 128), lambda i: (0, 0)),        # fc2 weights
            pl.BlockSpec((1, 128), lambda i: (0, 0)),          # fc2 bias
            pl.BlockSpec((128, 128), lambda i: (0, 0)),        # fc3 weights
            pl.BlockSpec((1, 128), lambda i: (0, 0)),          # fc3 bias
        ],
        out_specs=pl.BlockSpec((tile_b, 1, 128), lambda i: (i, 0, 0)),
        scratch_shapes=[
            pltpu.VMEM((tile_b, 7, 84), jnp.bfloat16),   # h1 (even pooled rows)
            pltpu.VMEM((tile_b, 7, 84), jnp.bfloat16),   # h1 (odd pooled rows)
            pltpu.VMEM((tile_b, 5, 80), jnp.bfloat16),   # h2 (pooled conv2 out)
        ],
        compiler_params=pltpu.CompilerParams(
            dimension_semantics=("parallel",),
            vmem_limit_bytes=_vmem_limit()),
        cost_estimate=cost,
    )(*phases, prep["w1"], prep["b1"], prep["w2"], prep["b2"],
      prep["wf1"], prep["bf1"], prep["wf2"], prep["bf2"],
      prep["wf3"], prep["bf3"])
    return out[:B, 0, :10]


# ------------------------- pure-JAX reference check -------------------------

def net_forward_ref(params, x_nchw):
    x = jnp.transpose(x_nchw, (0, 2, 3, 1))

    def conv(x, w, b):
        w_hwio = jnp.transpose(w, (2, 3, 1, 0))
        y = jax.lax.conv_general_dilated(
            x, w_hwio, (1, 1), "VALID",
            dimension_numbers=("NHWC", "HWIO", "NHWC"))
        return jax.nn.relu(y + b)

    def pool(x):
        return jax.lax.reduce_window(x, -jnp.inf, jax.lax.max,
                                     (1, 2, 2, 1), (1, 2, 2, 1), "VALID")

    x = pool(conv(x, params["conv1_w"], params["conv1_b"]))
    x = pool(conv(x, params["conv2_w"], params["conv2_b"]))
    B = x.shape[0]
    x = jnp.transpose(x, (0, 3, 1, 2)).reshape(B, 16 * 5 * 5)
    x = jax.nn.relu(x @ params["fc1_w"].T + params["fc1_b"])
    x = jax.nn.relu(x @ params["fc2_w"].T + params["fc2_b"])
    return x @ params["fc3_w"].T + params["fc3_b"]


# ------------------------------- params init --------------------------------

def init_params(key):
    def u(k, shape, fan_in):
        bound = 1.0 / np.sqrt(fan_in)
        return jax.random.uniform(k, shape, jnp.float32, -bound, bound)

    ks = jax.random.split(key, 10)
    return {
        "conv1_w": u(ks[0], (6, 3, 5, 5), 3 * 5 * 5),
        "conv1_b": u(ks[1], (6,), 3 * 5 * 5),
        "conv2_w": u(ks[2], (16, 6, 5, 5), 6 * 5 * 5),
        "conv2_b": u(ks[3], (16,), 6 * 5 * 5),
        "fc1_w": u(ks[4], (120, 400), 400),
        "fc1_b": u(ks[5], (120,), 400),
        "fc2_w": u(ks[6], (84, 120), 120),
        "fc2_b": u(ks[7], (84,), 120),
        "fc3_w": u(ks[8], (10, 84), 84),
        "fc3_b": u(ks[9], (10,), 84),
    }


if __name__ == "__main__":
    key = jax.random.PRNGKey(0)
    pkey, xkey = jax.random.split(key)
    params = init_params(pkey)
    x = jax.random.normal(xkey, (2, 3, 32, 32), jnp.float32)   # NCHW, like torch

    prep = prepare_params(params)                              # one-time re-layout
    fwd = jax.jit(net_forward)
    out = jax.block_until_ready(fwd(prep, x))
    assert out.shape == (2, 10)

    ref = net_forward_ref(params, x)
    np.testing.assert_allclose(np.asarray(out), np.asarray(ref),
                               rtol=5e-2, atol=5e-2)
    print("KERNEL_OK")
</pallas_src>

<mosaic_0001>
module attributes {stable_mosaic.version = 11 : i64} {
  func.func @_net_kernel(%arg0: i32, %arg1: memref<1x8x96xbf16, #tpu.memory_space<vmem>>, %arg2: memref<1x8x96xbf16, #tpu.memory_space<vmem>>, %arg3: memref<1x8x96xbf16, #tpu.memory_space<vmem>>, %arg4: memref<1x8x96xbf16, #tpu.memory_space<vmem>>, %arg5: memref<10x96x84xbf16, #tpu.memory_space<vmem>>, %arg6: memref<1x84xf32, #tpu.memory_space<vmem>>, %arg7: memref<10x84x80xbf16, #tpu.memory_space<vmem>>, %arg8: memref<1x80xf32, #tpu.memory_space<vmem>>, %arg9: memref<5x80x128xbf16, #tpu.memory_space<vmem>>, %arg10: memref<1x128xf32, #tpu.memory_space<vmem>>, %arg11: memref<128x128xbf16, #tpu.memory_space<vmem>>, %arg12: memref<1x128xf32, #tpu.memory_space<vmem>>, %arg13: memref<128x128xbf16, #tpu.memory_space<vmem>>, %arg14: memref<1x128xf32, #tpu.memory_space<vmem>>, %arg15: memref<1x1x128xf32, #tpu.memory_space<vmem>>, %arg16: memref<1x7x84xbf16, #tpu.memory_space<vmem>>, %arg17: memref<1x7x84xbf16, #tpu.memory_space<vmem>>, %arg18: memref<1x5x80xbf16, #tpu.memory_space<vmem>>) attributes {dimension_semantics = [#tpu.dimension_semantics<parallel>], iteration_bounds = array<i64: 2>, scalar_prefetch = 0 : i64, scratch_operands = 3 : i64, tpu.core_type = #tpu.core_type<tc>, window_params = [{transform_indices = @transform_0, window_bounds = array<i64: 1, 8, 96>}, {transform_indices = @transform_1, window_bounds = array<i64: 1, 8, 96>}, {transform_indices = @transform_2, window_bounds = array<i64: 1, 8, 96>}, {transform_indices = @transform_3, window_bounds = array<i64: 1, 8, 96>}, {pipeline_mode = #tpu.pipeline_mode<synchronous>, transform_indices = @transform_4, window_bounds = array<i64: 10, 96, 84>}, {pipeline_mode = #tpu.pipeline_mode<synchronous>, transform_indices = @transform_5, window_bounds = array<i64: 1, 84>}, {pipeline_mode = #tpu.pipeline_mode<synchronous>, transform_indices = @transform_6, window_bounds = array<i64: 10, 84, 80>}, {pipeline_mode = #tpu.pipeline_mode<synchronous>, transform_indices = @transform_7, window_bounds = array<i64: 1, 80>}, {pipeline_mode = #tpu.pipeline_mode<synchronous>, transform_indices = @transform_8, window_bounds = array<i64: 5, 80, 128>}, {pipeline_mode = #tpu.pipeline_mode<synchronous>, transform_indices = @transform_9, window_bounds = array<i64: 1, 128>}, {pipeline_mode = #tpu.pipeline_mode<synchronous>, transform_indices = @transform_10, window_bounds = array<i64: 128, 128>}, {pipeline_mode = #tpu.pipeline_mode<synchronous>, transform_indices = @transform_11, window_bounds = array<i64: 1, 128>}, {pipeline_mode = #tpu.pipeline_mode<synchronous>, transform_indices = @transform_12, window_bounds = array<i64: 128, 128>}, {pipeline_mode = #tpu.pipeline_mode<synchronous>, transform_indices = @transform_13, window_bounds = array<i64: 1, 128>}, {transform_indices = @transform_14, window_bounds = array<i64: 1, 1, 128>}]} {
    %c0 = arith.constant 0 : index
    %c0_0 = arith.constant 0 : index
    %c0_1 = arith.constant 0 : index
    %0 = vector.load %arg1[%c0, %c0_0, %c0_1] : memref<1x8x96xbf16, #tpu.memory_space<vmem>>, vector<1x7x96xbf16>
    %c0_2 = arith.constant 0 : index
    %c0_3 = arith.constant 0 : index
    %c0_4 = arith.constant 0 : index
    %1 = vector.load %arg2[%c0_2, %c0_3, %c0_4] : memref<1x8x96xbf16, #tpu.memory_space<vmem>>, vector<1x7x96xbf16>
    %c0_5 = arith.constant 0 : index
    %c0_6 = arith.constant 0 : index
    %c0_7 = arith.constant 0 : index
    %2 = vector.load %arg3[%c0_5, %c0_6, %c0_7] : memref<1x8x96xbf16, #tpu.memory_space<vmem>>, vector<1x7x96xbf16>
    %c0_8 = arith.constant 0 : index
    %c0_9 = arith.constant 0 : index
    %c0_10 = arith.constant 0 : index
    %3 = vector.load %arg4[%c0_8, %c0_9, %c0_10] : memref<1x8x96xbf16, #tpu.memory_space<vmem>>, vector<1x7x96xbf16>
    %c0_11 = arith.constant 0 : index
    %c1 = arith.constant 1 : index
    %c0_12 = arith.constant 0 : index
    %4 = vector.load %arg1[%c0_11, %c1, %c0_12] : memref<1x8x96xbf16, #tpu.memory_space<vmem>>, vector<1x7x96xbf16>
    %c0_13 = arith.constant 0 : index
    %c0_14 = arith.constant 0 : index
    %c0_15 = arith.constant 0 : index
    %5 = vector.load %arg5[%c0_13, %c0_14, %c0_15] : memref<10x96x84xbf16, #tpu.memory_space<vmem>>, vector<1x96x84xbf16>
    %6 = vector.shape_cast %5 : vector<1x96x84xbf16> to vector<96x84xbf16>
    %7 = vector.shape_cast %6 : vector<96x84xbf16> to vector<1x96x84xbf16>
    "tpu.trace_start"() <{level = 10 : i32, message = "bmk,bkn->bmn"}> : () -> ()
    %cst = arith.constant dense<0.000000e+00> : vector<1x7x84xf32>
    %8 = tpu.matmul %0, %7, %cst {dimension_numbers = #tpu.dot_dimension_numbers<[2], [1], [1], [2], [0, 0, 0, 1, 1, 2], [0], [0]>} : vector<1x7x96xbf16>, vector<1x96x84xbf16>, vector<1x7x84xf32> -> vector<1x7x84xf32>
    "tpu.trace_stop"() : () -> ()
    %c1_16 = arith.constant 1 : index
    %c0_17 = arith.constant 0 : index
    %c0_18 = arith.constant 0 : index
    %9 = vector.load %arg5[%c1_16, %c0_17, %c0_18] : memref<10x96x84xbf16, #tpu.memory_space<vmem>>, vector<1x96x84xbf16>
    %10 = vector.shape_cast %9 : vector<1x96x84xbf16> to vector<96x84xbf16>
    %11 = vector.shape_cast %10 : vector<96x84xbf16> to vector<1x96x84xbf16>
    "tpu.trace_start"() <{level = 10 : i32, message = "bmk,bkn->bmn"}> : () -> ()
    %cst_19 = arith.constant dense<0.000000e+00> : vector<1x7x84xf32>
    %12 = tpu.matmul %1, %11, %cst_19 {dimension_numbers = #tpu.dot_dimension_numbers<[2], [1], [1], [2], [0, 0, 0, 1, 1, 2], [0], [0]>} : vector<1x7x96xbf16>, vector<1x96x84xbf16>, vector<1x7x84xf32> -> vector<1x7x84xf32>
    "tpu.trace_stop"() : () -> ()
    %13 = arith.addf %8, %12 : vector<1x7x84xf32>
    %c2 = arith.constant 2 : index
    %c0_20 = arith.constant 0 : index
    %c0_21 = arith.constant 0 : index
    %14 = vector.load %arg5[%c2, %c0_20, %c0_21] : memref<10x96x84xbf16, #tpu.memory_space<vmem>>, vector<1x96x84xbf16>
    %15 = vector.shape_cast %14 : vector<1x96x84xbf16> to vector<96x84xbf16>
    %16 = vector.shape_cast %15 : vector<96x84xbf16> to vector<1x96x84xbf16>
    "tpu.trace_start"() <{level = 10 : i32, message = "bmk,bkn->bmn"}> : () -> ()
    %cst_22 = arith.constant dense<0.000000e+00> : vector<1x7x84xf32>
    %17 = tpu.matmul %2, %16, %cst_22 {dimension_numbers = #tpu.dot_dimension_numbers<[2], [1], [1], [2], [0, 0, 0, 1, 1, 2], [0], [0]>} : vector<1x7x96xbf16>, vector<1x96x84xbf16>, vector<1x7x84xf32> -> vector<1x7x84xf32>
    "tpu.trace_stop"() : () -> ()
    %18 = arith.addf %13, %17 : vector<1x7x84xf32>
    %c3 = arith.constant 3 : index
    %c0_23 = arith.constant 0 : index
    %c0_24 = arith.constant 0 : index
    %19 = vector.load %arg5[%c3, %c0_23, %c0_24] : memref<10x96x84xbf16, #tpu.memory_space<vmem>>, vector<1x96x84xbf16>
    %20 = vector.shape_cast %19 : vector<1x96x84xbf16> to vector<96x84xbf16>
    %21 = vector.shape_cast %20 : vector<96x84xbf16> to vector<1x96x84xbf16>
    "tpu.trace_start"() <{level = 10 : i32, message = "bmk,bkn->bmn"}> : () -> ()
    %cst_25 = arith.constant dense<0.000000e+00> : vector<1x7x84xf32>
    %22 = tpu.matmul %3, %21, %cst_25 {dimension_numbers = #tpu.dot_dimension_numbers<[2], [1], [1], [2], [0, 0, 0, 1, 1, 2], [0], [0]>} : vector<1x7x96xbf16>, vector<1x96x84xbf16>, vector<1x7x84xf32> -> vector<1x7x84xf32>
    "tpu.trace_stop"() : () -> ()
    %23 = arith.addf %18, %22 : vector<1x7x84xf32>
    %c4 = arith.constant 4 : index
    %c0_26 = arith.constant 0 : index
    %c0_27 = arith.constant 0 : index
    %24 = vector.load %arg5[%c4, %c0_26, %c0_27] : memref<10x96x84xbf16, #tpu.memory_space<vmem>>, vector<1x96x84xbf16>
    %25 = vector.shape_cast %24 : vector<1x96x84xbf16> to vector<96x84xbf16>
    %26 = vector.shape_cast %25 : vector<96x84xbf16> to vector<1x96x84xbf16>
    "tpu.trace_start"() <{level = 10 : i32, message = "bmk,bkn->bmn"}> : () -> ()
    %cst_28 = arith.constant dense<0.000000e+00> : vector<1x7x84xf32>
    %27 = tpu.matmul %4, %26, %cst_28 {dimension_numbers = #tpu.dot_dimension_numbers<[2], [1], [1], [2], [0, 0, 0, 1, 1, 2], [0], [0]>} : vector<1x7x96xbf16>, vector<1x96x84xbf16>, vector<1x7x84xf32> -> vector<1x7x84xf32>
    "tpu.trace_stop"() : () -> ()
    %28 = arith.addf %23, %27 : vector<1x7x84xf32>
    %c5 = arith.constant 5 : index
    %c0_29 = arith.constant 0 : index
    %c0_30 = arith.constant 0 : index
    %29 = vector.load %arg5[%c5, %c0_29, %c0_30] : memref<10x96x84xbf16, #tpu.memory_space<vmem>>, vector<1x96x84xbf16>
    %30 = vector.shape_cast %29 : vector<1x96x84xbf16> to vector<96x84xbf16>
    %31 = vector.shape_cast %30 : vector<96x84xbf16> to vector<1x96x84xbf16>
    "tpu.trace_start"() <{level = 10 : i32, message = "bmk,bkn->bmn"}> : () -> ()
    %cst_31 = arith.constant dense<0.000000e+00> : vector<1x7x84xf32>
    %32 = tpu.matmul %0, %31, %cst_31 {dimension_numbers = #tpu.dot_dimension_numbers<[2], [1], [1], [2], [0, 0, 0, 1, 1, 2], [0], [0]>} : vector<1x7x96xbf16>, vector<1x96x84xbf16>, vector<1x7x84xf32> -> vector<1x7x84xf32>
    "tpu.trace_stop"() : () -> ()
    %c6 = arith.constant 6 : index
    %c0_32 = arith.constant 0 : index
    %c0_33 = arith.constant 0 : index
    %33 = vector.load %arg5[%c6, %c0_32, %c0_33] : memref<10x96x84xbf16, #tpu.memory_space<vmem>>, vector<1x96x84xbf16>
    %34 = vector.shape_cast %33 : vector<1x96x84xbf16> to vector<96x84xbf16>
    %35 = vector.shape_cast %34 : vector<96x84xbf16> to vector<1x96x84xbf16>
    "tpu.trace_start"() <{level = 10 : i32, message = "bmk,bkn->bmn"}> : () -> ()
    %cst_34 = arith.constant dense<0.000000e+00> : vector<1x7x84xf32>
    %36 = tpu.matmul %1, %35, %cst_34 {dimension_numbers = #tpu.dot_dimension_numbers<[2], [1], [1], [2], [0, 0, 0, 1, 1, 2], [0], [0]>} : vector<1x7x96xbf16>, vector<1x96x84xbf16>, vector<1x7x84xf32> -> vector<1x7x84xf32>
    "tpu.trace_stop"() : () -> ()
    %37 = arith.addf %32, %36 : vector<1x7x84xf32>
    %c7 = arith.constant 7 : index
    %c0_35 = arith.constant 0 : index
    %c0_36 = arith.constant 0 : index
    %38 = vector.load %arg5[%c7, %c0_35, %c0_36] : memref<10x96x84xbf16, #tpu.memory_space<vmem>>, vector<1x96x84xbf16>
    %39 = vector.shape_cast %38 : vector<1x96x84xbf16> to vector<96x84xbf16>
    %40 = vector.shape_cast %39 : vector<96x84xbf16> to vector<1x96x84xbf16>
    "tpu.trace_start"() <{level = 10 : i32, message = "bmk,bkn->bmn"}> : () -> ()
    %cst_37 = arith.constant dense<0.000000e+00> : vector<1x7x84xf32>
    %41 = tpu.matmul %2, %40, %cst_37 {dimension_numbers = #tpu.dot_dimension_numbers<[2], [1], [1], [2], [0, 0, 0, 1, 1, 2], [0], [0]>} : vector<1x7x96xbf16>, vector<1x96x84xbf16>, vector<1x7x84xf32> -> vector<1x7x84xf32>
    "tpu.trace_stop"() : () -> ()
    %42 = arith.addf %37, %41 : vector<1x7x84xf32>
    %c8 = arith.constant 8 : index
    %c0_38 = arith.constant 0 : index
    %c0_39 = arith.constant 0 : index
    %43 = vector.load %arg5[%c8, %c0_38, %c0_39] : memref<10x96x84xbf16, #tpu.memory_space<vmem>>, vector<1x96x84xbf16>
    %44 = vector.shape_cast %43 : vector<1x96x84xbf16> to vector<96x84xbf16>
    %45 = vector.shape_cast %44 : vector<96x84xbf16> to vector<1x96x84xbf16>
    "tpu.trace_start"() <{level = 10 : i32, message = "bmk,bkn->bmn"}> : () -> ()
    %cst_40 = arith.constant dense<0.000000e+00> : vector<1x7x84xf32>
    %46 = tpu.matmul %3, %45, %cst_40 {dimension_numbers = #tpu.dot_dimension_numbers<[2], [1], [1], [2], [0, 0, 0, 1, 1, 2], [0], [0]>} : vector<1x7x96xbf16>, vector<1x96x84xbf16>, vector<1x7x84xf32> -> vector<1x7x84xf32>
    "tpu.trace_stop"() : () -> ()
    %47 = arith.addf %42, %46 : vector<1x7x84xf32>
    %c9 = arith.constant 9 : index
    %c0_41 = arith.constant 0 : index
    %c0_42 = arith.constant 0 : index
    %48 = vector.load %arg5[%c9, %c0_41, %c0_42] : memref<10x96x84xbf16, #tpu.memory_space<vmem>>, vector<1x96x84xbf16>
    %49 = vector.shape_cast %48 : vector<1x96x84xbf16> to vector<96x84xbf16>
    %50 = vector.shape_cast %49 : vector<96x84xbf16> to vector<1x96x84xbf16>
    "tpu.trace_start"() <{level = 10 : i32, message = "bmk,bkn->bmn"}> : () -> ()
    %cst_43 = arith.constant dense<0.000000e+00> : vector<1x7x84xf32>
    %51 = tpu.matmul %4, %50, %cst_43 {dimension_numbers = #tpu.dot_dimension_numbers<[2], [1], [1], [2], [0, 0, 0, 1, 1, 2], [0], [0]>} : vector<1x7x96xbf16>, vector<1x96x84xbf16>, vector<1x7x84xf32> -> vector<1x7x84xf32>
    "tpu.trace_stop"() : () -> ()
    %52 = arith.addf %47, %51 : vector<1x7x84xf32>
    %53 = arith.maximumf %28, %52 : vector<1x7x84xf32>
    %c0_44 = arith.constant 0 : index
    %c0_45 = arith.constant 0 : index
    %c0_46 = arith.constant 0 : index
    %54 = vector.load %arg2[%c0_44, %c0_45, %c0_46] : memref<1x8x96xbf16, #tpu.memory_space<vmem>>, vector<1x7x96xbf16>
    %c0_47 = arith.constant 0 : index
    %c0_48 = arith.constant 0 : index
    %c0_49 = arith.constant 0 : index
    %55 = vector.load %arg3[%c0_47, %c0_48, %c0_49] : memref<1x8x96xbf16, #tpu.memory_space<vmem>>, vector<1x7x96xbf16>
    %c0_50 = arith.constant 0 : index
    %c0_51 = arith.constant 0 : index
    %c0_52 = arith.constant 0 : index
    %56 = vector.load %arg4[%c0_50, %c0_51, %c0_52] : memref<1x8x96xbf16, #tpu.memory_space<vmem>>, vector<1x7x96xbf16>
    %c0_53 = arith.constant 0 : index
    %c1_54 = arith.constant 1 : index
    %c0_55 = arith.constant 0 : index
    %57 = vector.load %arg1[%c0_53, %c1_54, %c0_55] : memref<1x8x96xbf16, #tpu.memory_space<vmem>>, vector<1x7x96xbf16>
    %c0_56 = arith.constant 0 : index
    %c1_57 = arith.constant 1 : index
    %c0_58 = arith.constant 0 : index
    %58 = vector.load %arg2[%c0_56, %c1_57, %c0_58] : memref<1x8x96xbf16, #tpu.memory_space<vmem>>, vector<1x7x96xbf16>
    %c0_59 = arith.constant 0 : index
    %c0_60 = arith.constant 0 : index
    %c0_61 = arith.constant 0 : index
    %59 = vector.load %arg5[%c0_59, %c0_60, %c0_61] : memref<10x96x84xbf16, #tpu.memory_space<vmem>>, vector<1x96x84xbf16>
    %60 = vector.shape_cast %59 : vector<1x96x84xbf16> to vector<96x84xbf16>
    %61 = vector.shape_cast %60 : vector<96x84xbf16> to vector<1x96x84xbf16>
    "tpu.trace_start"() <{level = 10 : i32, message = "bmk,bkn->bmn"}> : () -> ()
    %cst_62 = arith.constant dense<0.000000e+00> : vector<1x7x84xf32>
    %62 = tpu.matmul %54, %61, %cst_62 {dimension_numbers = #tpu.dot_dimension_numbers<[2], [1], [1], [2], [0, 0, 0, 1, 1, 2], [0], [0]>} : vector<1x7x96xbf16>, vector<1x96x84xbf16>, vector<1x7x84xf32> -> vector<1x7x84xf32>
    "tpu.trace_stop"() : () -> ()
    %c1_63 = arith.constant 1 : index
    %c0_64 = arith.constant 0 : index
    %c0_65 = arith.constant 0 : index
    %63 = vector.load %arg5[%c1_63, %c0_64, %c0_65] : memref<10x96x84xbf16, #tpu.memory_space<vmem>>, vector<1x96x84xbf16>
    %64 = vector.shape_cast %63 : vector<1x96x84xbf16> to vector<96x84xbf16>
    %65 = vector.shape_cast %64 : vector<96x84xbf16> to vector<1x96x84xbf16>
    "tpu.trace_start"() <{level = 10 : i32, message = "bmk,bkn->bmn"}> : () -> ()
    %cst_66 = arith.constant dense<0.000000e+00> : vector<1x7x84xf32>
    %66 = tpu.matmul %55, %65, %cst_66 {dimension_numbers = #tpu.dot_dimension_numbers<[2], [1], [1], [2], [0, 0, 0, 1, 1, 2], [0], [0]>} : vector<1x7x96xbf16>, vector<1x96x84xbf16>, vector<1x7x84xf32> -> vector<1x7x84xf32>
    "tpu.trace_stop"() : () -> ()
    %67 = arith.addf %62, %66 : vector<1x7x84xf32>
    %c2_67 = arith.constant 2 : index
    %c0_68 = arith.constant 0 : index
    %c0_69 = arith.constant 0 : index
    %68 = vector.load %arg5[%c2_67, %c0_68, %c0_69] : memref<10x96x84xbf16, #tpu.memory_space<vmem>>, vector<1x96x84xbf16>
    %69 = vector.shape_cast %68 : vector<1x96x84xbf16> to vector<96x84xbf16>
    %70 = vector.shape_cast %69 : vector<96x84xbf16> to vector<1x96x84xbf16>
    "tpu.trace_start"() <{level = 10 : i32, message = "bmk,bkn->bmn"}> : () -> ()
    %cst_70 = arith.constant dense<0.000000e+00> : vector<1x7x84xf32>
    %71 = tpu.matmul %56, %70, %cst_70 {dimension_numbers = #tpu.dot_dimension_numbers<[2], [1], [1], [2], [0, 0, 0, 1, 1, 2], [0], [0]>} : vector<1x7x96xbf16>, vector<1x96x84xbf16>, vector<1x7x84xf32> -> vector<1x7x84xf32>
    "tpu.trace_stop"() : () -> ()
    %72 = arith.addf %67, %71 : vector<1x7x84xf32>
    %c3_71 = arith.constant 3 : index
    %c0_72 = arith.constant 0 : index
    %c0_73 = arith.constant 0 : index
    %73 = vector.load %arg5[%c3_71, %c0_72, %c0_73] : memref<10x96x84xbf16, #tpu.memory_space<vmem>>, vector<1x96x84xbf16>
    %74 = vector.shape_cast %73 : vector<1x96x84xbf16> to vector<96x84xbf16>
    %75 = vector.shape_cast %74 : vector<96x84xbf16> to vector<1x96x84xbf16>
    "tpu.trace_start"() <{level = 10 : i32, message = "bmk,bkn->bmn"}> : () -> ()
    %cst_74 = arith.constant dense<0.000000e+00> : vector<1x7x84xf32>
    %76 = tpu.matmul %57, %75, %cst_74 {dimension_numbers = #tpu.dot_dimension_numbers<[2], [1], [1], [2], [0, 0, 0, 1, 1, 2], [0], [0]>} : vector<1x7x96xbf16>, vector<1x96x84xbf16>, vector<1x7x84xf32> -> vector<1x7x84xf32>
    "tpu.trace_stop"() : () -> ()
    %77 = arith.addf %72, %76 : vector<1x7x84xf32>
    %c4_75 = arith.constant 4 : index
    %c0_76 = arith.constant 0 : index
    %c0_77 = arith.constant 0 : index
    %78 = vector.load %arg5[%c4_75, %c0_76, %c0_77] : memref<10x96x84xbf16, #tpu.memory_space<vmem>>, vector<1x96x84xbf16>
    %79 = vector.shape_cast %78 : vector<1x96x84xbf16> to vector<96x84xbf16>
    %80 = vector.shape_cast %79 : vector<96x84xbf16> to vector<1x96x84xbf16>
    "tpu.trace_start"() <{level = 10 : i32, message = "bmk,bkn->bmn"}> : () -> ()
    %cst_78 = arith.constant dense<0.000000e+00> : vector<1x7x84xf32>
    %81 = tpu.matmul %58, %80, %cst_78 {dimension_numbers = #tpu.dot_dimension_numbers<[2], [1], [1], [2], [0, 0, 0, 1, 1, 2], [0], [0]>} : vector<1x7x96xbf16>, vector<1x96x84xbf16>, vector<1x7x84xf32> -> vector<1x7x84xf32>
    "tpu.trace_stop"() : () -> ()
    %82 = arith.addf %77, %81 : vector<1x7x84xf32>
    %83 = arith.maximumf %53, %82 : vector<1x7x84xf32>
    %c5_79 = arith.constant 5 : index
    %c0_80 = arith.constant 0 : index
    %c0_81 = arith.constant 0 : index
    %84 = vector.load %arg5[%c5_79, %c0_80, %c0_81] : memref<10x96x84xbf16, #tpu.memory_space<vmem>>, vector<1x96x84xbf16>
    %85 = vector.shape_cast %84 : vector<1x96x84xbf16> to vector<96x84xbf16>
    %86 = vector.shape_cast %85 : vector<96x84xbf16> to vector<1x96x84xbf16>
    "tpu.trace_start"() <{level = 10 : i32, message = "bmk,bkn->bmn"}> : () -> ()
    %cst_82 = arith.constant dense<0.000000e+00> : vector<1x7x84xf32>
    %87 = tpu.matmul %54, %86, %cst_82 {dimension_numbers = #tpu.dot_dimension_numbers<[2], [1], [1], [2], [0, 0, 0, 1, 1, 2], [0], [0]>} : vector<1x7x96xbf16>, vector<1x96x84xbf16>, vector<1x7x84xf32> -> vector<1x7x84xf32>
    "tpu.trace_stop"() : () -> ()
    %c6_83 = arith.constant 6 : index
    %c0_84 = arith.constant 0 : index
    %c0_85 = arith.constant 0 : index
    %88 = vector.load %arg5[%c6_83, %c0_84, %c0_85] : memref<10x96x84xbf16, #tpu.memory_space<vmem>>, vector<1x96x84xbf16>
    %89 = vector.shape_cast %88 : vector<1x96x84xbf16> to vector<96x84xbf16>
    %90 = vector.shape_cast %89 : vector<96x84xbf16> to vector<1x96x84xbf16>
    "tpu.trace_start"() <{level = 10 : i32, message = "bmk,bkn->bmn"}> : () -> ()
    %cst_86 = arith.constant dense<0.000000e+00> : vector<1x7x84xf32>
    %91 = tpu.matmul %55, %90, %cst_86 {dimension_numbers = #tpu.dot_dimension_numbers<[2], [1], [1], [2], [0, 0, 0, 1, 1, 2], [0], [0]>} : vector<1x7x96xbf16>, vector<1x96x84xbf16>, vector<1x7x84xf32> -> vector<1x7x84xf32>
    "tpu.trace_stop"() : () -> ()
    %92 = arith.addf %87, %91 : vector<1x7x84xf32>
    %c7_87 = arith.constant 7 : index
    %c0_88 = arith.constant 0 : index
    %c0_89 = arith.constant 0 : index
    %93 = vector.load %arg5[%c7_87, %c0_88, %c0_89] : memref<10x96x84xbf16, #tpu.memory_space<vmem>>, vector<1x96x84xbf16>
    %94 = vector.shape_cast %93 : vector<1x96x84xbf16> to vector<96x84xbf16>
    %95 = vector.shape_cast %94 : vector<96x84xbf16> to vector<1x96x84xbf16>
    "tpu.trace_start"() <{level = 10 : i32, message = "bmk,bkn->bmn"}> : () -> ()
    %cst_90 = arith.constant dense<0.000000e+00> : vector<1x7x84xf32>
    %96 = tpu.matmul %56, %95, %cst_90 {dimension_numbers = #tpu.dot_dimension_numbers<[2], [1], [1], [2], [0, 0, 0, 1, 1, 2], [0], [0]>} : vector<1x7x96xbf16>, vector<1x96x84xbf16>, vector<1x7x84xf32> -> vector<1x7x84xf32>
    "tpu.trace_stop"() : () -> ()
    %97 = arith.addf %92, %96 : vector<1x7x84xf32>
    %c8_91 = arith.constant 8 : index
    %c0_92 = arith.constant 0 : index
    %c0_93 = arith.constant 0 : index
    %98 = vector.load %arg5[%c8_91, %c0_92, %c0_93] : memref<10x96x84xbf16, #tpu.memory_space<vmem>>, vector<1x96x84xbf16>
    %99 = vector.shape_cast %98 : vector<1x96x84xbf16> to vector<96x84xbf16>
    %100 = vector.shape_cast %99 : vector<96x84xbf16> to vector<1x96x84xbf16>
    "tpu.trace_start"() <{level = 10 : i32, message = "bmk,bkn->bmn"}> : () -> ()
    %cst_94 = arith.constant dense<0.000000e+00> : vector<1x7x84xf32>
    %101 = tpu.matmul %57, %100, %cst_94 {dimension_numbers = #tpu.dot_dimension_numbers<[2], [1], [1], [2], [0, 0, 0, 1, 1, 2], [0], [0]>} : vector<1x7x96xbf16>, vector<1x96x84xbf16>, vector<1x7x84xf32> -> vector<1x7x84xf32>
    "tpu.trace_stop"() : () -> ()
    %102 = arith.addf %97, %101 : vector<1x7x84xf32>
    %c9_95 = arith.constant 9 : index
    %c0_96 = arith.constant 0 : index
    %c0_97 = arith.constant 0 : index
    %103 = vector.load %arg5[%c9_95, %c0_96, %c0_97] : memref<10x96x84xbf16, #tpu.memory_space<vmem>>, vector<1x96x84xbf16>
    %104 = vector.shape_cast %103 : vector<1x96x84xbf16> to vector<96x84xbf16>
    %105 = vector.shape_cast %104 : vector<96x84xbf16> to vector<1x96x84xbf16>
    "tpu.trace_start"() <{level = 10 : i32, message = "bmk,bkn->bmn"}> : () -> ()
    %cst_98 = arith.constant dense<0.000000e+00> : vector<1x7x84xf32>
    %106 = tpu.matmul %58, %105, %cst_98 {dimension_numbers = #tpu.dot_dimension_numbers<[2], [1], [1], [2], [0, 0, 0, 1, 1, 2], [0], [0]>} : vector<1x7x96xbf16>, vector<1x96x84xbf16>, vector<1x7x84xf32> -> vector<1x7x84xf32>
    "tpu.trace_stop"() : () -> ()
    %107 = arith.addf %102, %106 : vector<1x7x84xf32>
    %108 = arith.maximumf %83, %107 : vector<1x7x84xf32>
    %c0_99 = arith.constant 0 : index
    %c0_100 = arith.constant 0 : index
    %109 = vector.load %arg6[%c0_99, %c0_100] : memref<1x84xf32, #tpu.memory_space<vmem>>, vector<1x84xf32>
    %110 = vector.shape_cast %109 : vector<1x84xf32> to vector<1x1x84xf32>
    %111 = vector.broadcast %110 : vector<1x1x84xf32> to vector<1x7x84xf32>
    %112 = arith.addf %108, %111 : vector<1x7x84xf32>
    %cst_101 = arith.constant 0.000000e+00 : f32
    %113 = vector.broadcast %cst_101 : f32 to vector<1x7x84xf32>
    %114 = arith.maximumf %112, %113 : vector<1x7x84xf32>
    %115 = arith.truncf %114 : vector<1x7x84xf32> to vector<1x7x84xbf16>
    %c0_102 = arith.constant 0 : index
    %c0_103 = arith.constant 0 : index
    %c0_104 = arith.constant 0 : index
    %116 = vector.load %arg16[%c0_102, %c0_103, %c0_104] : memref<1x7x84xbf16, #tpu.memory_space<vmem>>, vector<1x7x84xbf16>
    tpu.vector_store %arg16[%c0_102, %c0_103, %c0_104], %115 {strides = array<i32>} : memref<1x7x84xbf16, #tpu.memory_space<vmem>>, vector<1x7x84xbf16>,
    %c0_105 = arith.constant 0 : index
    %c0_106 = arith.constant 0 : index
    %c0_107 = arith.constant 0 : index
    %117 = vector.load %arg3[%c0_105, %c0_106, %c0_107] : memref<1x8x96xbf16, #tpu.memory_space<vmem>>, vector<1x7x96xbf16>
    %c0_108 = arith.constant 0 : index
    %c0_109 = arith.constant 0 : index
    %c0_110 = arith.constant 0 : index
    %118 = vector.load %arg4[%c0_108, %c0_109, %c0_110] : memref<1x8x96xbf16, #tpu.memory_space<vmem>>, vector<1x7x96xbf16>
    %c0_111 = arith.constant 0 : index
    %c1_112 = arith.constant 1 : index
    %c0_113 = arith.constant 0 : index
    %119 = vector.load %arg1[%c0_111, %c1_112, %c0_113] : memref<1x8x96xbf16, #tpu.memory_space<vmem>>, vector<1x7x96xbf16>
    %c0_114 = arith.constant 0 : index
    %c1_115 = arith.constant 1 : index
    %c0_116 = arith.constant 0 : index
    %120 = vector.load %arg2[%c0_114, %c1_115, %c0_116] : memref<1x8x96xbf16, #tpu.memory_space<vmem>>, vector<1x7x96xbf16>
    %c0_117 = arith.constant 0 : index
    %c1_118 = arith.constant 1 : index
    %c0_119 = arith.constant 0 : index
    %121 = vector.load %arg3[%c0_117, %c1_118, %c0_119] : memref<1x8x96xbf16, #tpu.memory_space<vmem>>, vector<1x7x96xbf16>
    %c0_120 = arith.constant 0 : index
    %c0_121 = arith.constant 0 : index
    %c0_122 = arith.constant 0 : index
    %122 = vector.load %arg5[%c0_120, %c0_121, %c0_122] : memref<10x96x84xbf16, #tpu.memory_space<vmem>>, vector<1x96x84xbf16>
    %123 = vector.shape_cast %122 : vector<1x96x84xbf16> to vector<96x84xbf16>
    %124 = vector.shape_cast %123 : vector<96x84xbf16> to vector<1x96x84xbf16>
    "tpu.trace_start"() <{level = 10 : i32, message = "bmk,bkn->bmn"}> : () -> ()
    %cst_123 = arith.constant dense<0.000000e+00> : vector<1x7x84xf32>
    %125 = tpu.matmul %117, %124, %cst_123 {dimension_numbers = #tpu.dot_dimension_numbers<[2], [1], [1], [2], [0, 0, 0, 1, 1, 2], [0], [0]>} : vector<1x7x96xbf16>, vector<1x96x84xbf16>, vector<1x7x84xf32> -> vector<1x7x84xf32>
    "tpu.trace_stop"() : () -> ()
    %c1_124 = arith.constant 1 : index
    %c0_125 = arith.constant 0 : index
    %c0_126 = arith.constant 0 : index
    %126 = vector.load %arg5[%c1_124, %c0_125, %c0_126] : memref<10x96x84xbf16, #tpu.memory_space<vmem>>, vector<1x96x84xbf16>
    %127 = vector.shape_cast %126 : vector<1x96x84xbf16> to vector<96x84xbf16>
    %128 = vector.shape_cast %127 : vector<96x84xbf16> to vector<1x96x84xbf16>
    "tpu.trace_start"() <{level = 10 : i32, message = "bmk,bkn->bmn"}> : () -> ()
    %cst_127 = arith.constant dense<0.000000e+00> : vector<1x7x84xf32>
    %129 = tpu.matmul %118, %128, %cst_127 {dimension_numbers = #tpu.dot_dimension_numbers<[2], [1], [1], [2], [0, 0, 0, 1, 1, 2], [0], [0]>} : vector<1x7x96xbf16>, vector<1x96x84xbf16>, vector<1x7x84xf32> -> vector<1x7x84xf32>
    "tpu.trace_stop"() : () -> ()
    %130 = arith.addf %125, %129 : vector<1x7x84xf32>
    %c2_128 = arith.constant 2 : index
    %c0_129 = arith.constant 0 : index
    %c0_130 = arith.constant 0 : index
    %131 = vector.load %arg5[%c2_128, %c0_129, %c0_130] : memref<10x96x84xbf16, #tpu.memory_space<vmem>>, vector<1x96x84xbf16>
    %132 = vector.shape_cast %131 : vector<1x96x84xbf16> to vector<96x84xbf16>
    %133 = vector.shape_cast %132 : vector<96x84xbf16> to vector<1x96x84xbf16>
    "tpu.trace_start"() <{level = 10 : i32, message = "bmk,bkn->bmn"}> : () -> ()
    %cst_131 = arith.constant dense<0.000000e+00> : vector<1x7x84xf32>
    %134 = tpu.matmul %119, %133, %cst_131 {dimension_numbers = #tpu.dot_dimension_numbers<[2], [1], [1], [2], [0, 0, 0, 1, 1, 2], [0], [0]>} : vector<1x7x96xbf16>, vector<1x96x84xbf16>, vector<1x7x84xf32> -> vector<1x7x84xf32>
    "tpu.trace_stop"() : () -> ()
    %135 = arith.addf %130, %134 : vector<1x7x84xf32>
    %c3_132 = arith.constant 3 : index
    %c0_133 = arith.constant 0 : index
    %c0_134 = arith.constant 0 : index
    %136 = vector.load %arg5[%c3_132, %c0_133, %c0_134] : memref<10x96x84xbf16, #tpu.memory_space<vmem>>, vector<1x96x84xbf16>
    %137 = vector.shape_cast %136 : vector<1x96x84xbf16> to vector<96x84xbf16>
    %138 = vector.shape_cast %137 : vector<96x84xbf16> to vector<1x96x84xbf16>
    "tpu.trace_start"() <{level = 10 : i32, message = "bmk,bkn->bmn"}> : () -> ()
    %cst_135 = arith.constant dense<0.000000e+00> : vector<1x7x84xf32>
    %139 = tpu.matmul %120, %138, %cst_135 {dimension_numbers = #tpu.dot_dimension_numbers<[2], [1], [1], [2], [0, 0, 0, 1, 1, 2], [0], [0]>} : vector<1x7x96xbf16>, vector<1x96x84xbf16>, vector<1x7x84xf32> -> vector<1x7x84xf32>
    "tpu.trace_stop"() : () -> ()
    %140 = arith.addf %135, %139 : vector<1x7x84xf32>
    %c4_136 = arith.constant 4 : index
    %c0_137 = arith.constant 0 : index
    %c0_138 = arith.constant 0 : index
    %141 = vector.load %arg5[%c4_136, %c0_137, %c0_138] : memref<10x96x84xbf16, #tpu.memory_space<vmem>>, vector<1x96x84xbf16>
    %142 = vector.shape_cast %141 : vector<1x96x84xbf16> to vector<96x84xbf16>
    %143 = vector.shape_cast %142 : vector<96x84xbf16> to vector<1x96x84xbf16>
    "tpu.trace_start"() <{level = 10 : i32, message = "bmk,bkn->bmn"}> : () -> ()
    %cst_139 = arith.constant dense<0.000000e+00> : vector<1x7x84xf32>
    %144 = tpu.matmul %121, %143, %cst_139 {dimension_numbers = #tpu.dot_dimension_numbers<[2], [1], [1], [2], [0, 0, 0, 1, 1, 2], [0], [0]>} : vector<1x7x96xbf16>, vector<1x96x84xbf16>, vector<1x7x84xf32> -> vector<1x7x84xf32>
    "tpu.trace_stop"() : () -> ()
    %145 = arith.addf %140, %144 : vector<1x7x84xf32>
    %c5_140 = arith.constant 5 : index
    %c0_141 = arith.constant 0 : index
    %c0_142 = arith.constant 0 : index
    %146 = vector.load %arg5[%c5_140, %c0_141, %c0_142] : memref<10x96x84xbf16, #tpu.memory_space<vmem>>, vector<1x96x84xbf16>
    %147 = vector.shape_cast %146 : vector<1x96x84xbf16> to vector<96x84xbf16>
    %148 = vector.shape_cast %147 : vector<96x84xbf16> to vector<1x96x84xbf16>
    "tpu.trace_start"() <{level = 10 : i32, message = "bmk,bkn->bmn"}> : () -> ()
    %cst_143 = arith.constant dense<0.000000e+00> : vector<1x7x84xf32>
    %149 = tpu.matmul %117, %148, %cst_143 {dimension_numbers = #tpu.dot_dimension_numbers<[2], [1], [1], [2], [0, 0, 0, 1, 1, 2], [0], [0]>} : vector<1x7x96xbf16>, vector<1x96x84xbf16>, vector<1x7x84xf32> -> vector<1x7x84xf32>
    "tpu.trace_stop"() : () -> ()
    %c6_144 = arith.constant 6 : index
    %c0_145 = arith.constant 0 : index
    %c0_146 = arith.constant 0 : index
    %150 = vector.load %arg5[%c6_144, %c0_145, %c0_146] : memref<10x96x84xbf16, #tpu.memory_space<vmem>>, vector<1x96x84xbf16>
    %151 = vector.shape_cast %150 : vector<1x96x84xbf16> to vector<96x84xbf16>
    %152 = vector.shape_cast %151 : vector<96x84xbf16> to vector<1x96x84xbf16>
    "tpu.trace_start"() <{level = 10 : i32, message = "bmk,bkn->bmn"}> : () -> ()
    %cst_147 = arith.constant dense<0.000000e+00> : vector<1x7x84xf32>
    %153 = tpu.matmul %118, %152, %cst_147 {dimension_numbers = #tpu.dot_dimension_numbers<[2], [1], [1], [2], [0, 0, 0, 1, 1, 2], [0], [0]>} : vector<1x7x96xbf16>, vector<1x96x84xbf16>, vector<1x7x84xf32> -> vector<1x7x84xf32>
    "tpu.trace_stop"() : () -> ()
    %154 = arith.addf %149, %153 : vector<1x7x84xf32>
    %c7_148 = arith.constant 7 : index
    %c0_149 = arith.constant 0 : index
    %c0_150 = arith.constant 0 : index
    %155 = vector.load %arg5[%c7_148, %c0_149, %c0_150] : memref<10x96x84xbf16, #tpu.memory_space<vmem>>, vector<1x96x84xbf16>
    %156 = vector.shape_cast %155 : vector<1x96x84xbf16> to vector<96x84xbf16>
    %157 = vector.shape_cast %156 : vector<96x84xbf16> to vector<1x96x84xbf16>
    "tpu.trace_start"() <{level = 10 : i32, message = "bmk,bkn->bmn"}> : () -> ()
    %cst_151 = arith.constant dense<0.000000e+00> : vector<1x7x84xf32>
    %158 = tpu.matmul %119, %157, %cst_151 {dimension_numbers = #tpu.dot_dimension_numbers<[2], [1], [1], [2], [0, 0, 0, 1, 1, 2], [0], [0]>} : vector<1x7x96xbf16>, vector<1x96x84xbf16>, vector<1x7x84xf32> -> vector<1x7x84xf32>
    "tpu.trace_stop"() : () -> ()
    %159 = arith.addf %154, %158 : vector<1x7x84xf32>
    %c8_152 = arith.constant 8 : index
    %c0_153 = arith.constant 0 : index
    %c0_154 = arith.constant 0 : index
    %160 = vector.load %arg5[%c8_152, %c0_153, %c0_154] : memref<10x96x84xbf16, #tpu.memory_space<vmem>>, vector<1x96x84xbf16>
    %161 = vector.shape_cast %160 : vector<1x96x84xbf16> to vector<96x84xbf16>
    %162 = vector.shape_cast %161 : vector<96x84xbf16> to vector<1x96x84xbf16>
    "tpu.trace_start"() <{level = 10 : i32, message = "bmk,bkn->bmn"}> : () -> ()
    %cst_155 = arith.constant dense<0.000000e+00> : vector<1x7x84xf32>
    %163 = tpu.matmul %120, %162, %cst_155 {dimension_numbers = #tpu.dot_dimension_numbers<[2], [1], [1], [2], [0, 0, 0, 1, 1, 2], [0], [0]>} : vector<1x7x96xbf16>, vector<1x96x84xbf16>, vector<1x7x84xf32> -> vector<1x7x84xf32>
    "tpu.trace_stop"() : () -> ()
    %164 = arith.addf %159, %163 : vector<1x7x84xf32>
    %c9_156 = arith.constant 9 : index
    %c0_157 = arith.constant 0 : index
    %c0_158 = arith.constant 0 : index
    %165 = vector.load %arg5[%c9_156, %c0_157, %c0_158] : memref<10x96x84xbf16, #tpu.memory_space<vmem>>, vector<1x96x84xbf16>
    %166 = vector.shape_cast %165 : vector<1x96x84xbf16> to vector<96x84xbf16>
    %167 = vector.shape_cast %166 : vector<96x84xbf16> to vector<1x96x84xbf16>
    "tpu.trace_start"() <{level = 10 : i32, message = "bmk,bkn->bmn"}> : () -> ()
    %cst_159 = arith.constant dense<0.000000e+00> : vector<1x7x84xf32>
    %168 = tpu.matmul %121, %167, %cst_159 {dimension_numbers = #tpu.dot_dimension_numbers<[2], [1], [1], [2], [0, 0, 0, 1, 1, 2], [0], [0]>} : vector<1x7x96xbf16>, vector<1x96x84xbf16>, vector<1x7x84xf32> -> vector<1x7x84xf32>
    "tpu.trace_stop"() : () -> ()
    %169 = arith.addf %164, %168 : vector<1x7x84xf32>
    %170 = arith.maximumf %145, %169 : vector<1x7x84xf32>
    %c0_160 = arith.constant 0 : index
    %c0_161 = arith.constant 0 : index
    %c0_162 = arith.constant 0 : index
    %171 = vector.load %arg4[%c0_160, %c0_161, %c0_162] : memref<1x8x96xbf16, #tpu.memory_space<vmem>>, vector<1x7x96xbf16>
    %c0_163 = arith.constant 0 : index
    %c1_164 = arith.constant 1 : index
    %c0_165 = arith.constant 0 : index
    %172 = vector.load %arg1[%c0_163, %c1_164, %c0_165] : memref<1x8x96xbf16, #tpu.memory_space<vmem>>, vector<1x7x96xbf16>
    %c0_166 = arith.constant 0 : index
    %c1_167 = arith.constant 1 : index
    %c0_168 = arith.constant 0 : index
    %173 = vector.load %arg2[%c0_166, %c1_167, %c0_168] : memref<1x8x96xbf16, #tpu.memory_space<vmem>>, vector<1x7x96xbf16>
    %c0_169 = arith.constant 0 : index
    %c1_170 = arith.constant 1 : index
    %c0_171 = arith.constant 0 : index
    %174 = vector.load %arg3[%c0_169, %c1_170, %c0_171] : memref<1x8x96xbf16, #tpu.memory_space<vmem>>, vector<1x7x96xbf16>
    %c0_172 = arith.constant 0 : index
    %c1_173 = arith.constant 1 : index
    %c0_174 = arith.constant 0 : index
    %175 = vector.load %arg4[%c0_172, %c1_173, %c0_174] : memref<1x8x96xbf16, #tpu.memory_space<vmem>>, vector<1x7x96xbf16>
    %c0_175 = arith.constant 0 : index
    %c0_176 = arith.constant 0 : index
    %c0_177 = arith.constant 0 : index
    %176 = vector.load %arg5[%c0_175, %c0_176, %c0_177] : memref<10x96x84xbf16, #tpu.memory_space<vmem>>, vector<1x96x84xbf16>
    %177 = vector.shape_cast %176 : vector<1x96x84xbf16> to vector<96x84xbf16>
    %178 = vector.shape_cast %177 : vector<96x84xbf16> to vector<1x96x84xbf16>
    "tpu.trace_start"() <{level = 10 : i32, message = "bmk,bkn->bmn"}> : () -> ()
    %cst_178 = arith.constant dense<0.000000e+00> : vector<1x7x84xf32>
    %179 = tpu.matmul %171, %178, %cst_178 {dimension_numbers = #tpu.dot_dimension_numbers<[2], [1], [1], [2], [0, 0, 0, 1, 1, 2], [0], [0]>} : vector<1x7x96xbf16>, vector<1x96x84xbf16>, vector<1x7x84xf32> -> vector<1x7x84xf32>
    "tpu.trace_stop"() : () -> ()
    %c1_179 = arith.constant 1 : index
    %c0_180 = arith.constant 0 : index
    %c0_181 = arith.constant 0 : index
    %180 = vector.load %arg5[%c1_179, %c0_180, %c0_181] : memref<10x96x84xbf16, #tpu.memory_space<vmem>>, vector<1x96x84xbf16>
    %181 = vector.shape_cast %180 : vector<1x96x84xbf16> to vector<96x84xbf16>
    %182 = vector.shape_cast %181 : vector<96x84xbf16> to vector<1x96x84xbf16>
    "tpu.trace_start"() <{level = 10 : i32, message = "bmk,bkn->bmn"}> : () -> ()
    %cst_182 = arith.constant dense<0.000000e+00> : vector<1x7x84xf32>
    %183 = tpu.matmul %172, %182, %cst_182 {dimension_numbers = #tpu.dot_dimension_numbers<[2], [1], [1], [2], [0, 0, 0, 1, 1, 2], [0], [0]>} : vector<1x7x96xbf16>, vector<1x96x84xbf16>, vector<1x7x84xf32> -> vector<1x7x84xf32>
    "tpu.trace_stop"() : () -> ()
    %184 = arith.addf %179, %183 : vector<1x7x84xf32>
    %c2_183 = arith.constant 2 : index
    %c0_184 = arith.constant 0 : index
    %c0_185 = arith.constant 0 : index
    %185 = vector.load %arg5[%c2_183, %c0_184, %c0_185] : memref<10x96x84xbf16, #tpu.memory_space<vmem>>, vector<1x96x84xbf16>
    %186 = vector.shape_cast %185 : vector<1x96x84xbf16> to vector<96x84xbf16>
    %187 = vector.shape_cast %186 : vector<96x84xbf16> to vector<1x96x84xbf16>
    "tpu.trace_start"() <{level = 10 : i32, message = "bmk,bkn->bmn"}> : () -> ()
    %cst_186 = arith.constant dense<0.000000e+00> : vector<1x7x84xf32>
    %188 = tpu.matmul %173, %187, %cst_186 {dimension_numbers = #tpu.dot_dimension_numbers<[2], [1], [1], [2], [0, 0, 0, 1, 1, 2], [0], [0]>} : vector<1x7x96xbf16>, vector<1x96x84xbf16>, vector<1x7x84xf32> -> vector<1x7x84xf32>
    "tpu.trace_stop"() : () -> ()
    %189 = arith.addf %184, %188 : vector<1x7x84xf32>
    %c3_187 = arith.constant 3 : index
    %c0_188 = arith.constant 0 : index
    %c0_189 = arith.constant 0 : index
    %190 = vector.load %arg5[%c3_187, %c0_188, %c0_189] : memref<10x96x84xbf16, #tpu.memory_space<vmem>>, vector<1x96x84xbf16>
    %191 = vector.shape_cast %190 : vector<1x96x84xbf16> to vector<96x84xbf16>
    %192 = vector.shape_cast %191 : vector<96x84xbf16> to vector<1x96x84xbf16>
    "tpu.trace_start"() <{level = 10 : i32, message = "bmk,bkn->bmn"}> : () -> ()
    %cst_190 = arith.constant dense<0.000000e+00> : vector<1x7x84xf32>
    %193 = tpu.matmul %174, %192, %cst_190 {dimension_numbers = #tpu.dot_dimension_numbers<[2], [1], [1], [2], [0, 0, 0, 1, 1, 2], [0], [0]>} : vector<1x7x96xbf16>, vector<1x96x84xbf16>, vector<1x7x84xf32> -> vector<1x7x84xf32>
    "tpu.trace_stop"() : () -> ()
    %194 = arith.addf %189, %193 : vector<1x7x84xf32>
    %c4_191 = arith.constant 4 : index
    %c0_192 = arith.constant 0 : index
    %c0_193 = arith.constant 0 : index
    %195 = vector.load %arg5[%c4_191, %c0_192, %c0_193] : memref<10x96x84xbf16, #tpu.memory_space<vmem>>, vector<1x96x84xbf16>
    %196 = vector.shape_cast %195 : vector<1x96x84xbf16> to vector<96x84xbf16>
    %197 = vector.shape_cast %196 : vector<96x84xbf16> to vector<1x96x84xbf16>
    "tpu.trace_start"() <{level = 10 : i32, message = "bmk,bkn->bmn"}> : () -> ()
    %cst_194 = arith.constant dense<0.000000e+00> : vector<1x7x84xf32>
    %198 = tpu.matmul %175, %197, %cst_194 {dimension_numbers = #tpu.dot_dimension_numbers<[2], [1], [1], [2], [0, 0, 0, 1, 1, 2], [0], [0]>} : vector<1x7x96xbf16>, vector<1x96x84xbf16>, vector<1x7x84xf32> -> vector<1x7x84xf32>
    "tpu.trace_stop"() : () -> ()
    %199 = arith.addf %194, %198 : vector<1x7x84xf32>
    %200 = arith.maximumf %170, %199 : vector<1x7x84xf32>
    %c5_195 = arith.constant 5 : index
    %c0_196 = arith.constant 0 : index
    %c0_197 = arith.constant 0 : index
    %201 = vector.load %arg5[%c5_195, %c0_196, %c0_197] : memref<10x96x84xbf16, #tpu.memory_space<vmem>>, vector<1x96x84xbf16>
    %202 = vector.shape_cast %201 : vector<1x96x84xbf16> to vector<96x84xbf16>
    %203 = vector.shape_cast %202 : vector<96x84xbf16> to vector<1x96x84xbf16>
    "tpu.trace_start"() <{level = 10 : i32, message = "bmk,bkn->bmn"}> : () -> ()
    %cst_198 = arith.constant dense<0.000000e+00> : vector<1x7x84xf32>
    %204 = tpu.matmul %171, %203, %cst_198 {dimension_numbers = #tpu.dot_dimension_numbers<[2], [1], [1], [2], [0, 0, 0, 1, 1, 2], [0], [0]>} : vector<1x7x96xbf16>, vector<1x96x84xbf16>, vector<1x7x84xf32> -> vector<1x7x84xf32>
    "tpu.trace_stop"() : () -> ()
    %c6_199 = arith.constant 6 : index
    %c0_200 = arith.constant 0 : index
    %c0_201 = arith.constant 0 : index
    %205 = vector.load %arg5[%c6_199, %c0_200, %c0_201] : memref<10x96x84xbf16, #tpu.memory_space<vmem>>, vector<1x96x84xbf16>
    %206 = vector.shape_cast %205 : vector<1x96x84xbf16> to vector<96x84xbf16>
    %207 = vector.shape_cast %206 : vector<96x84xbf16> to vector<1x96x84xbf16>
    "tpu.trace_start"() <{level = 10 : i32, message = "bmk,bkn->bmn"}> : () -> ()
    %cst_202 = arith.constant dense<0.000000e+00> : vector<1x7x84xf32>
    %208 = tpu.matmul %172, %207, %cst_202 {dimension_numbers = #tpu.dot_dimension_numbers<[2], [1], [1], [2], [0, 0, 0, 1, 1, 2], [0], [0]>} : vector<1x7x96xbf16>, vector<1x96x84xbf16>, vector<1x7x84xf32> -> vector<1x7x84xf32>
    "tpu.trace_stop"() : () -> ()
    %209 = arith.addf %204, %208 : vector<1x7x84xf32>
    %c7_203 = arith.constant 7 : index
    %c0_204 = arith.constant 0 : index
    %c0_205 = arith.constant 0 : index
    %210 = vector.load %arg5[%c7_203, %c0_204, %c0_205] : memref<10x96x84xbf16, #tpu.memory_space<vmem>>, vector<1x96x84xbf16>
    %211 = vector.shape_cast %210 : vector<1x96x84xbf16> to vector<96x84xbf16>
    %212 = vector.shape_cast %211 : vector<96x84xbf16> to vector<1x96x84xbf16>
    "tpu.trace_start"() <{level = 10 : i32, message = "bmk,bkn->bmn"}> : () -> ()
    %cst_206 = arith.constant dense<0.000000e+00> : vector<1x7x84xf32>
    %213 = tpu.matmul %173, %212, %cst_206 {dimension_numbers = #tpu.dot_dimension_numbers<[2], [1], [1], [2], [0, 0, 0, 1, 1, 2], [0], [0]>} : vector<1x7x96xbf16>, vector<1x96x84xbf16>, vector<1x7x84xf32> -> vector<1x7x84xf32>
    "tpu.trace_stop"() : () -> ()
    %214 = arith.addf %209, %213 : vector<1x7x84xf32>
    %c8_207 = arith.constant 8 : index
    %c0_208 = arith.constant 0 : index
    %c0_209 = arith.constant 0 : index
    %215 = vector.load %arg5[%c8_207, %c0_208, %c0_209] : memref<10x96x84xbf16, #tpu.memory_space<vmem>>, vector<1x96x84xbf16>
    %216 = vector.shape_cast %215 : vector<1x96x84xbf16> to vector<96x84xbf16>
    %217 = vector.shape_cast %216 : vector<96x84xbf16> to vector<1x96x84xbf16>
    "tpu.trace_start"() <{level = 10 : i32, message = "bmk,bkn->bmn"}> : () -> ()
    %cst_210 = arith.constant dense<0.000000e+00> : vector<1x7x84xf32>
    %218 = tpu.matmul %174, %217, %cst_210 {dimension_numbers = #tpu.dot_dimension_numbers<[2], [1], [1], [2], [0, 0, 0, 1, 1, 2], [0], [0]>} : vector<1x7x96xbf16>, vector<1x96x84xbf16>, vector<1x7x84xf32> -> vector<1x7x84xf32>
    "tpu.trace_stop"() : () -> ()
    %219 = arith.addf %214, %218 : vector<1x7x84xf32>
    %c9_211 = arith.constant 9 : index
    %c0_212 = arith.constant 0 : index
    %c0_213 = arith.constant 0 : index
    %220 = vector.load %arg5[%c9_211, %c0_212, %c0_213] : memref<10x96x84xbf16, #tpu.memory_space<vmem>>, vector<1x96x84xbf16>
    %221 = vector.shape_cast %220 : vector<1x96x84xbf16> to vector<96x84xbf16>
    %222 = vector.shape_cast %221 : vector<96x84xbf16> to vector<1x96x84xbf16>
    "tpu.trace_start"() <{level = 10 : i32, message = "bmk,bkn->bmn"}> : () -> ()
    %cst_214 = arith.constant dense<0.000000e+00> : vector<1x7x84xf32>
    %223 = tpu.matmul %175, %222, %cst_214 {dimension_numbers = #tpu.dot_dimension_numbers<[2], [1], [1], [2], [0, 0, 0, 1, 1, 2], [0], [0]>} : vector<1x7x96xbf16>, vector<1x96x84xbf16>, vector<1x7x84xf32> -> vector<1x7x84xf32>
    "tpu.trace_stop"() : () -> ()
    %224 = arith.addf %219, %223 : vector<1x7x84xf32>
    %225 = arith.maximumf %200, %224 : vector<1x7x84xf32>
    %c0_215 = arith.constant 0 : index
    %c0_216 = arith.constant 0 : index
    %226 = vector.load %arg6[%c0_215, %c0_216] : memref<1x84xf32, #tpu.memory_space<vmem>>, vector<1x84xf32>
    %227 = vector.shape_cast %226 : vector<1x84xf32> to vector<1x1x84xf32>
    %228 = vector.broadcast %227 : vector<1x1x84xf32> to vector<1x7x84xf32>
    %229 = arith.addf %225, %228 : vector<1x7x84xf32>
    %cst_217 = arith.constant 0.000000e+00 : f32
    %230 = vector.broadcast %cst_217 : f32 to vector<1x7x84xf32>
    %231 = arith.maximumf %229, %230 : vector<1x7x84xf32>
    %232 = arith.truncf %231 : vector<1x7x84xf32> to vector<1x7x84xbf16>
    %c0_218 = arith.constant 0 : index
    %c0_219 = arith.constant 0 : index
    %c0_220 = arith.constant 0 : index
    %233 = vector.load %arg17[%c0_218, %c0_219, %c0_220] : memref<1x7x84xbf16, #tpu.memory_space<vmem>>, vector<1x7x84xbf16>
    tpu.vector_store %arg17[%c0_218, %c0_219, %c0_220], %232 {strides = array<i32>} : memref<1x7x84xbf16, #tpu.memory_space<vmem>>, vector<1x7x84xbf16>,
    %c0_221 = arith.constant 0 : index
    %c0_222 = arith.constant 0 : index
    %c0_223 = arith.constant 0 : index
    %234 = vector.load %arg16[%c0_221, %c0_222, %c0_223] : memref<1x7x84xbf16, #tpu.memory_space<vmem>>, vector<1x5x84xbf16>
    %c0_224 = arith.constant 0 : index
    %c0_225 = arith.constant 0 : index
    %c0_226 = arith.constant 0 : index
    %235 = vector.load %arg17[%c0_224, %c0_225, %c0_226] : memref<1x7x84xbf16, #tpu.memory_space<vmem>>, vector<1x5x84xbf16>
    %c0_227 = arith.constant 0 : index
    %c1_228 = arith.constant 1 : index
    %c0_229 = arith.constant 0 : index
    %236 = vector.load %arg16[%c0_227, %c1_228, %c0_229] : memref<1x7x84xbf16, #tpu.memory_space<vmem>>, vector<1x5x84xbf16>
    %c0_230 = arith.constant 0 : index
    %c1_231 = arith.constant 1 : index
    %c0_232 = arith.constant 0 : index
    %237 = vector.load %arg17[%c0_230, %c1_231, %c0_232] : memref<1x7x84xbf16, #tpu.memory_space<vmem>>, vector<1x5x84xbf16>
    %c0_233 = arith.constant 0 : index
    %c2_234 = arith.constant 2 : index
    %c0_235 = arith.constant 0 : index
    %238 = vector.load %arg16[%c0_233, %c2_234, %c0_235] : memref<1x7x84xbf16, #tpu.memory_space<vmem>>, vector<1x5x84xbf16>
    %c0_236 = arith.constant 0 : index
    %c0_237 = arith.constant 0 : index
    %c0_238 = arith.constant 0 : index
    %239 = vector.load %arg7[%c0_236, %c0_237, %c0_238] : memref<10x84x80xbf16, #tpu.memory_space<vmem>>, vector<1x84x80xbf16>
    %240 = vector.shape_cast %239 : vector<1x84x80xbf16> to vector<84x80xbf16>
    %241 = vector.shape_cast %240 : vector<84x80xbf16> to vector<1x84x80xbf16>
    "tpu.trace_start"() <{level = 10 : i32, message = "bmk,bkn->bmn"}> : () -> ()
    %cst_239 = arith.constant dense<0.000000e+00> : vector<1x5x80xf32>
    %242 = tpu.matmul %234, %241, %cst_239 {dimension_numbers = #tpu.dot_dimension_numbers<[2], [1], [1], [2], [0, 0, 0, 1, 1, 2], [0], [0]>} : vector<1x5x84xbf16>, vector<1x84x80xbf16>, vector<1x5x80xf32> -> vector<1x5x80xf32>
    "tpu.trace_stop"() : () -> ()
    %c1_240 = arith.constant 1 : index
    %c0_241 = arith.constant 0 : index
    %c0_242 = arith.constant 0 : index
    %243 = vector.load %arg7[%c1_240, %c0_241, %c0_242] : memref<10x84x80xbf16, #tpu.memory_space<vmem>>, vector<1x84x80xbf16>
    %244 = vector.shape_cast %243 : vector<1x84x80xbf16> to vector<84x80xbf16>
    %245 = vector.shape_cast %244 : vector<84x80xbf16> to vector<1x84x80xbf16>
    "tpu.trace_start"() <{level = 10 : i32, message = "bmk,bkn->bmn"}> : () -> ()
    %cst_243 = arith.constant dense<0.000000e+00> : vector<1x5x80xf32>
    %246 = tpu.matmul %235, %245, %cst_243 {dimension_numbers = #tpu.dot_dimension_numbers<[2], [1], [1], [2], [0, 0, 0, 1, 1, 2], [0], [0]>} : vector<1x5x84xbf16>, vector<1x84x80xbf16>, vector<1x5x80xf32> -> vector<1x5x80xf32>
    "tpu.trace_stop"() : () -> ()
    %247 = arith.addf %242, %246 : vector<1x5x80xf32>
    %c2_244 = arith.constant 2 : index
    %c0_245 = arith.constant 0 : index
    %c0_246 = arith.constant 0 : index
    %248 = vector.load %arg7[%c2_244, %c0_245, %c0_246] : memref<10x84x80xbf16, #tpu.memory_space<vmem>>, vector<1x84x80xbf16>
    %249 = vector.shape_cast %248 : vector<1x84x80xbf16> to vector<84x80xbf16>
    %250 = vector.shape_cast %249 : vector<84x80xbf16> to vector<1x84x80xbf16>
    "tpu.trace_start"() <{level = 10 : i32, message = "bmk,bkn->bmn"}> : () -> ()
    %cst_247 = arith.constant dense<0.000000e+00> : vector<1x5x80xf32>
    %251 = tpu.matmul %236, %250, %cst_247 {dimension_numbers = #tpu.dot_dimension_numbers<[2], [1], [1], [2], [0, 0, 0, 1, 1, 2], [0], [0]>} : vector<1x5x84xbf16>, vector<1x84x80xbf16>, vector<1x5x80xf32> -> vector<1x5x80xf32>
    "tpu.trace_stop"() : () -> ()
    %252 = arith.addf %247, %251 : vector<1x5x80xf32>
    %c3_248 = arith.constant 3 : index
    %c0_249 = arith.constant 0 : index
    %c0_250 = arith.constant 0 : index
    %253 = vector.load %arg7[%c3_248, %c0_249, %c0_250] : memref<10x84x80xbf16, #tpu.memory_space<vmem>>, vector<1x84x80xbf16>
    %254 = vector.shape_cast %253 : vector<1x84x80xbf16> to vector<84x80xbf16>
    %255 = vector.shape_cast %254 : vector<84x80xbf16> to vector<1x84x80xbf16>
    "tpu.trace_start"() <{level = 10 : i32, message = "bmk,bkn->bmn"}> : () -> ()
    %cst_251 = arith.constant dense<0.000000e+00> : vector<1x5x80xf32>
    %256 = tpu.matmul %237, %255, %cst_251 {dimension_numbers = #tpu.dot_dimension_numbers<[2], [1], [1], [2], [0, 0, 0, 1, 1, 2], [0], [0]>} : vector<1x5x84xbf16>, vector<1x84x80xbf16>, vector<1x5x80xf32> -> vector<1x5x80xf32>
    "tpu.trace_stop"() : () -> ()
    %257 = arith.addf %252, %256 : vector<1x5x80xf32>
    %c4_252 = arith.constant 4 : index
    %c0_253 = arith.constant 0 : index
    %c0_254 = arith.constant 0 : index
    %258 = vector.load %arg7[%c4_252, %c0_253, %c0_254] : memref<10x84x80xbf16, #tpu.memory_space<vmem>>, vector<1x84x80xbf16>
    %259 = vector.shape_cast %258 : vector<1x84x80xbf16> to vector<84x80xbf16>
    %260 = vector.shape_cast %259 : vector<84x80xbf16> to vector<1x84x80xbf16>
    "tpu.trace_start"() <{level = 10 : i32, message = "bmk,bkn->bmn"}> : () -> ()
    %cst_255 = arith.constant dense<0.000000e+00> : vector<1x5x80xf32>
    %261 = tpu.matmul %238, %260, %cst_255 {dimension_numbers = #tpu.dot_dimension_numbers<[2], [1], [1], [2], [0, 0, 0, 1, 1, 2], [0], [0]>} : vector<1x5x84xbf16>, vector<1x84x80xbf16>, vector<1x5x80xf32> -> vector<1x5x80xf32>
    "tpu.trace_stop"() : () -> ()
    %262 = arith.addf %257, %261 : vector<1x5x80xf32>
    %c5_256 = arith.constant 5 : index
    %c0_257 = arith.constant 0 : index
    %c0_258 = arith.constant 0 : index
    %263 = vector.load %arg7[%c5_256, %c0_257, %c0_258] : memref<10x84x80xbf16, #tpu.memory_space<vmem>>, vector<1x84x80xbf16>
    %264 = vector.shape_cast %263 : vector<1x84x80xbf16> to vector<84x80xbf16>
    %265 = vector.shape_cast %264 : vector<84x80xbf16> to vector<1x84x80xbf16>
    "tpu.trace_start"() <{level = 10 : i32, message = "bmk,bkn->bmn"}> : () -> ()
    %cst_259 = arith.constant dense<0.000000e+00> : vector<1x5x80xf32>
    %266 = tpu.matmul %234, %265, %cst_259 {dimension_numbers = #tpu.dot_dimension_numbers<[2], [1], [1], [2], [0, 0, 0, 1, 1, 2], [0], [0]>} : vector<1x5x84xbf16>, vector<1x84x80xbf16>, vector<1x5x80xf32> -> vector<1x5x80xf32>
    "tpu.trace_stop"() : () -> ()
    %c6_260 = arith.constant 6 : index
    %c0_261 = arith.constant 0 : index
    %c0_262 = arith.constant 0 : index
    %267 = vector.load %arg7[%c6_260, %c0_261, %c0_262] : memref<10x84x80xbf16, #tpu.memory_space<vmem>>, vector<1x84x80xbf16>
    %268 = vector.shape_cast %267 : vector<1x84x80xbf16> to vector<84x80xbf16>
    %269 = vector.shape_cast %268 : vector<84x80xbf16> to vector<1x84x80xbf16>
    "tpu.trace_start"() <{level = 10 : i32, message = "bmk,bkn->bmn"}> : () -> ()
    %cst_263 = arith.constant dense<0.000000e+00> : vector<1x5x80xf32>
    %270 = tpu.matmul %235, %269, %cst_263 {dimension_numbers = #tpu.dot_dimension_numbers<[2], [1], [1], [2], [0, 0, 0, 1, 1, 2], [0], [0]>} : vector<1x5x84xbf16>, vector<1x84x80xbf16>, vector<1x5x80xf32> -> vector<1x5x80xf32>
    "tpu.trace_stop"() : () -> ()
    %271 = arith.addf %266, %270 : vector<1x5x80xf32>
    %c7_264 = arith.constant 7 : index
    %c0_265 = arith.constant 0 : index
    %c0_266 = arith.constant 0 : index
    %272 = vector.load %arg7[%c7_264, %c0_265, %c0_266] : memref<10x84x80xbf16, #tpu.memory_space<vmem>>, vector<1x84x80xbf16>
    %273 = vector.shape_cast %272 : vector<1x84x80xbf16> to vector<84x80xbf16>
    %274 = vector.shape_cast %273 : vector<84x80xbf16> to vector<1x84x80xbf16>
    "tpu.trace_start"() <{level = 10 : i32, message = "bmk,bkn->bmn"}> : () -> ()
    %cst_267 = arith.constant dense<0.000000e+00> : vector<1x5x80xf32>
    %275 = tpu.matmul %236, %274, %cst_267 {dimension_numbers = #tpu.dot_dimension_numbers<[2], [1], [1], [2], [0, 0, 0, 1, 1, 2], [0], [0]>} : vector<1x5x84xbf16>, vector<1x84x80xbf16>, vector<1x5x80xf32> -> vector<1x5x80xf32>
    "tpu.trace_stop"() : () -> ()
    %276 = arith.addf %271, %275 : vector<1x5x80xf32>
    %c8_268 = arith.constant 8 : index
    %c0_269 = arith.constant 0 : index
    %c0_270 = arith.constant 0 : index
    %277 = vector.load %arg7[%c8_268, %c0_269, %c0_270] : memref<10x84x80xbf16, #tpu.memory_space<vmem>>, vector<1x84x80xbf16>
    %278 = vector.shape_cast %277 : vector<1x84x80xbf16> to vector<84x80xbf16>
    %279 = vector.shape_cast %278 : vector<84x80xbf16> to vector<1x84x80xbf16>
    "tpu.trace_start"() <{level = 10 : i32, message = "bmk,bkn->bmn"}> : () -> ()
    %cst_271 = arith.constant dense<0.000000e+00> : vector<1x5x80xf32>
    %280 = tpu.matmul %237, %279, %cst_271 {dimension_numbers = #tpu.dot_dimension_numbers<[2], [1], [1], [2], [0, 0, 0, 1, 1, 2], [0], [0]>} : vector<1x5x84xbf16>, vector<1x84x80xbf16>, vector<1x5x80xf32> -> vector<1x5x80xf32>
    "tpu.trace_stop"() : () -> ()
    %281 = arith.addf %276, %280 : vector<1x5x80xf32>
    %c9_272 = arith.constant 9 : index
    %c0_273 = arith.constant 0 : index
    %c0_274 = arith.constant 0 : index
    %282 = vector.load %arg7[%c9_272, %c0_273, %c0_274] : memref<10x84x80xbf16, #tpu.memory_space<vmem>>, vector<1x84x80xbf16>
    %283 = vector.shape_cast %282 : vector<1x84x80xbf16> to vector<84x80xbf16>
    %284 = vector.shape_cast %283 : vector<84x80xbf16> to vector<1x84x80xbf16>
    "tpu.trace_start"() <{level = 10 : i32, message = "bmk,bkn->bmn"}> : () -> ()
    %cst_275 = arith.constant dense<0.000000e+00> : vector<1x5x80xf32>
    %285 = tpu.matmul %238, %284, %cst_275 {dimension_numbers = #tpu.dot_dimension_numbers<[2], [1], [1], [2], [0, 0, 0, 1, 1, 2], [0], [0]>} : vector<1x5x84xbf16>, vector<1x84x80xbf16>, vector<1x5x80xf32> -> vector<1x5x80xf32>
    "tpu.trace_stop"() : () -> ()
    %286 = arith.addf %281, %285 : vector<1x5x80xf32>
    %287 = arith.maximumf %262, %286 : vector<1x5x80xf32>
    %c0_276 = arith.constant 0 : index
    %c0_277 = arith.constant 0 : index
    %c0_278 = arith.constant 0 : index
    %288 = vector.load %arg17[%c0_276, %c0_277, %c0_278] : memref<1x7x84xbf16, #tpu.memory_space<vmem>>, vector<1x5x84xbf16>
    %c0_279 = arith.constant 0 : index
    %c1_280 = arith.constant 1 : index
    %c0_281 = arith.constant 0 : index
    %289 = vector.load %arg16[%c0_279, %c1_280, %c0_281] : memref<1x7x84xbf16, #tpu.memory_space<vmem>>, vector<1x5x84xbf16>
    %c0_282 = arith.constant 0 : index
    %c1_283 = arith.constant 1 : index
    %c0_284 = arith.constant 0 : index
    %290 = vector.load %arg17[%c0_282, %c1_283, %c0_284] : memref<1x7x84xbf16, #tpu.memory_space<vmem>>, vector<1x5x84xbf16>
    %c0_285 = arith.constant 0 : index
    %c2_286 = arith.constant 2 : index
    %c0_287 = arith.constant 0 : index
    %291 = vector.load %arg16[%c0_285, %c2_286, %c0_287] : memref<1x7x84xbf16, #tpu.memory_space<vmem>>, vector<1x5x84xbf16>
    %c0_288 = arith.constant 0 : index
    %c2_289 = arith.constant 2 : index
    %c0_290 = arith.constant 0 : index
    %292 = vector.load %arg17[%c0_288, %c2_289, %c0_290] : memref<1x7x84xbf16, #tpu.memory_space<vmem>>, vector<1x5x84xbf16>
    %c0_291 = arith.constant 0 : index
    %c0_292 = arith.constant 0 : index
    %c0_293 = arith.constant 0 : index
    %293 = vector.load %arg7[%c0_291, %c0_292, %c0_293] : memref<10x84x80xbf16, #tpu.memory_space<vmem>>, vector<1x84x80xbf16>
    %294 = vector.shape_cast %293 : vector<1x84x80xbf16> to vector<84x80xbf16>
    %295 = vector.shape_cast %294 : vector<84x80xbf16> to vector<1x84x80xbf16>
    "tpu.trace_start"() <{level = 10 : i32, message = "bmk,bkn->bmn"}> : () -> ()
    %cst_294 = arith.constant dense<0.000000e+00> : vector<1x5x80xf32>
    %296 = tpu.matmul %288, %295, %cst_294 {dimension_numbers = #tpu.dot_dimension_numbers<[2], [1], [1], [2], [0, 0, 0, 1, 1, 2], [0], [0]>} : vector<1x5x84xbf16>, vector<1x84x80xbf16>, vector<1x5x80xf32> -> vector<1x5x80xf32>
    "tpu.trace_stop"() : () -> ()
    %c1_295 = arith.constant 1 : index
    %c0_296 = arith.constant 0 : index
    %c0_297 = arith.constant 0 : index
    %297 = vector.load %arg7[%c1_295, %c0_296, %c0_297] : memref<10x84x80xbf16, #tpu.memory_space<vmem>>, vector<1x84x80xbf16>
    %298 = vector.shape_cast %297 : vector<1x84x80xbf16> to vector<84x80xbf16>
    %299 = vector.shape_cast %298 : vector<84x80xbf16> to vector<1x84x80xbf16>
    "tpu.trace_start"() <{level = 10 : i32, message = "bmk,bkn->bmn"}> : () -> ()
    %cst_298 = arith.constant dense<0.000000e+00> : vector<1x5x80xf32>
    %300 = tpu.matmul %289, %299, %cst_298 {dimension_numbers = #tpu.dot_dimension_numbers<[2], [1], [1], [2], [0, 0, 0, 1, 1, 2], [0], [0]>} : vector<1x5x84xbf16>, vector<1x84x80xbf16>, vector<1x5x80xf32> -> vector<1x5x80xf32>
    "tpu.trace_stop"() : () -> ()
    %301 = arith.addf %296, %300 : vector<1x5x80xf32>
    %c2_299 = arith.constant 2 : index
    %c0_300 = arith.constant 0 : index
    %c0_301 = arith.constant 0 : index
    %302 = vector.load %arg7[%c2_299, %c0_300, %c0_301] : memref<10x84x80xbf16, #tpu.memory_space<vmem>>, vector<1x84x80xbf16>
    %303 = vector.shape_cast %302 : vector<1x84x80xbf16> to vector<84x80xbf16>
    %304 = vector.shape_cast %303 : vector<84x80xbf16> to vector<1x84x80xbf16>
    "tpu.trace_start"() <{level = 10 : i32, message = "bmk,bkn->bmn"}> : () -> ()
    %cst_302 = arith.constant dense<0.000000e+00> : vector<1x5x80xf32>
    %305 = tpu.matmul %290, %304, %cst_302 {dimension_numbers = #tpu.dot_dimension_numbers<[2], [1], [1], [2], [0, 0, 0, 1, 1, 2], [0], [0]>} : vector<1x5x84xbf16>, vector<1x84x80xbf16>, vector<1x5x80xf32> -> vector<1x5x80xf32>
    "tpu.trace_stop"() : () -> ()
    %306 = arith.addf %301, %305 : vector<1x5x80xf32>
    %c3_303 = arith.constant 3 : index
    %c0_304 = arith.constant 0 : index
    %c0_305 = arith.constant 0 : index
    %307 = vector.load %arg7[%c3_303, %c0_304, %c0_305] : memref<10x84x80xbf16, #tpu.memory_space<vmem>>, vector<1x84x80xbf16>
    %308 = vector.shape_cast %307 : vector<1x84x80xbf16> to vector<84x80xbf16>
    %309 = vector.shape_cast %308 : vector<84x80xbf16> to vector<1x84x80xbf16>
    "tpu.trace_start"() <{level = 10 : i32, message = "bmk,bkn->bmn"}> : () -> ()
    %cst_306 = arith.constant dense<0.000000e+00> : vector<1x5x80xf32>
    %310 = tpu.matmul %291, %309, %cst_306 {dimension_numbers = #tpu.dot_dimension_numbers<[2], [1], [1], [2], [0, 0, 0, 1, 1, 2], [0], [0]>} : vector<1x5x84xbf16>, vector<1x84x80xbf16>, vector<1x5x80xf32> -> vector<1x5x80xf32>
    "tpu.trace_stop"() : () -> ()
    %311 = arith.addf %306, %310 : vector<1x5x80xf32>
    %c4_307 = arith.constant 4 : index
    %c0_308 = arith.constant 0 : index
    %c0_309 = arith.constant 0 : index
    %312 = vector.load %arg7[%c4_307, %c0_308, %c0_309] : memref<10x84x80xbf16, #tpu.memory_space<vmem>>, vector<1x84x80xbf16>
    %313 = vector.shape_cast %312 : vector<1x84x80xbf16> to vector<84x80xbf16>
    %314 = vector.shape_cast %313 : vector<84x80xbf16> to vector<1x84x80xbf16>
    "tpu.trace_start"() <{level = 10 : i32, message = "bmk,bkn->bmn"}> : () -> ()
    %cst_310 = arith.constant dense<0.000000e+00> : vector<1x5x80xf32>
    %315 = tpu.matmul %292, %314, %cst_310 {dimension_numbers = #tpu.dot_dimension_numbers<[2], [1], [1], [2], [0, 0, 0, 1, 1, 2], [0], [0]>} : vector<1x5x84xbf16>, vector<1x84x80xbf16>, vector<1x5x80xf32> -> vector<1x5x80xf32>
    "tpu.trace_stop"() : () -> ()
    %316 = arith.addf %311, %315 : vector<1x5x80xf32>
    %317 = arith.maximumf %287, %316 : vector<1x5x80xf32>
    %c5_311 = arith.constant 5 : index
    %c0_312 = arith.constant 0 : index
    %c0_313 = arith.constant 0 : index
    %318 = vector.load %arg7[%c5_311, %c0_312, %c0_313] : memref<10x84x80xbf16, #tpu.memory_space<vmem>>, vector<1x84x80xbf16>
    %319 = vector.shape_cast %318 : vector<1x84x80xbf16> to vector<84x80xbf16>
    %320 = vector.shape_cast %319 : vector<84x80xbf16> to vector<1x84x80xbf16>
    "tpu.trace_start"() <{level = 10 : i32, message = "bmk,bkn->bmn"}> : () -> ()
    %cst_314 = arith.constant dense<0.000000e+00> : vector<1x5x80xf32>
    %321 = tpu.matmul %288, %320, %cst_314 {dimension_numbers = #tpu.dot_dimension_numbers<[2], [1], [1], [2], [0, 0, 0, 1, 1, 2], [0], [0]>} : vector<1x5x84xbf16>, vector<1x84x80xbf16>, vector<1x5x80xf32> -> vector<1x5x80xf32>
    "tpu.trace_stop"() : () -> ()
    %c6_315 = arith.constant 6 : index
    %c0_316 = arith.constant 0 : index
    %c0_317 = arith.constant 0 : index
    %322 = vector.load %arg7[%c6_315, %c0_316, %c0_317] : memref<10x84x80xbf16, #tpu.memory_space<vmem>>, vector<1x84x80xbf16>
    %323 = vector.shape_cast %322 : vector<1x84x80xbf16> to vector<84x80xbf16>
    %324 = vector.shape_cast %323 : vector<84x80xbf16> to vector<1x84x80xbf16>
    "tpu.trace_start"() <{level = 10 : i32, message = "bmk,bkn->bmn"}> : () -> ()
    %cst_318 = arith.constant dense<0.000000e+00> : vector<1x5x80xf32>
    %325 = tpu.matmul %289, %324, %cst_318 {dimension_numbers = #tpu.dot_dimension_numbers<[2], [1], [1], [2], [0, 0, 0, 1, 1, 2], [0], [0]>} : vector<1x5x84xbf16>, vector<1x84x80xbf16>, vector<1x5x80xf32> -> vector<1x5x80xf32>
    "tpu.trace_stop"() : () -> ()
    %326 = arith.addf %321, %325 : vector<1x5x80xf32>
    %c7_319 = arith.constant 7 : index
    %c0_320 = arith.constant 0 : index
    %c0_321 = arith.constant 0 : index
    %327 = vector.load %arg7[%c7_319, %c0_320, %c0_321] : memref<10x84x80xbf16, #tpu.memory_space<vmem>>, vector<1x84x80xbf16>
    %328 = vector.shape_cast %327 : vector<1x84x80xbf16> to vector<84x80xbf16>
    %329 = vector.shape_cast %328 : vector<84x80xbf16> to vector<1x84x80xbf16>
    "tpu.trace_start"() <{level = 10 : i32, message = "bmk,bkn->bmn"}> : () -> ()
    %cst_322 = arith.constant dense<0.000000e+00> : vector<1x5x80xf32>
    %330 = tpu.matmul %290, %329, %cst_322 {dimension_numbers = #tpu.dot_dimension_numbers<[2], [1], [1], [2], [0, 0, 0, 1, 1, 2], [0], [0]>} : vector<1x5x84xbf16>, vector<1x84x80xbf16>, vector<1x5x80xf32> -> vector<1x5x80xf32>
    "tpu.trace_stop"() : () -> ()
    %331 = arith.addf %326, %330 : vector<1x5x80xf32>
    %c8_323 = arith.constant 8 : index
    %c0_324 = arith.constant 0 : index
    %c0_325 = arith.constant 0 : index
    %332 = vector.load %arg7[%c8_323, %c0_324, %c0_325] : memref<10x84x80xbf16, #tpu.memory_space<vmem>>, vector<1x84x80xbf16>
    %333 = vector.shape_cast %332 : vector<1x84x80xbf16> to vector<84x80xbf16>
    %334 = vector.shape_cast %333 : vector<84x80xbf16> to vector<1x84x80xbf16>
    "tpu.trace_start"() <{level = 10 : i32, message = "bmk,bkn->bmn"}> : () -> ()
    %cst_326 = arith.constant dense<0.000000e+00> : vector<1x5x80xf32>
    %335 = tpu.matmul %291, %334, %cst_326 {dimension_numbers = #tpu.dot_dimension_numbers<[2], [1], [1], [2], [0, 0, 0, 1, 1, 2], [0], [0]>} : vector<1x5x84xbf16>, vector<1x84x80xbf16>, vector<1x5x80xf32> -> vector<1x5x80xf32>
    "tpu.trace_stop"() : () -> ()
    %336 = arith.addf %331, %335 : vector<1x5x80xf32>
    %c9_327 = arith.constant 9 : index
    %c0_328 = arith.constant 0 : index
    %c0_329 = arith.constant 0 : index
    %337 = vector.load %arg7[%c9_327, %c0_328, %c0_329] : memref<10x84x80xbf16, #tpu.memory_space<vmem>>, vector<1x84x80xbf16>
    %338 = vector.shape_cast %337 : vector<1x84x80xbf16> to vector<84x80xbf16>
    %339 = vector.shape_cast %338 : vector<84x80xbf16> to vector<1x84x80xbf16>
    "tpu.trace_start"() <{level = 10 : i32, message = "bmk,bkn->bmn"}> : () -> ()
    %cst_330 = arith.constant dense<0.000000e+00> : vector<1x5x80xf32>
    %340 = tpu.matmul %292, %339, %cst_330 {dimension_numbers = #tpu.dot_dimension_numbers<[2], [1], [1], [2], [0, 0, 0, 1, 1, 2], [0], [0]>} : vector<1x5x84xbf16>, vector<1x84x80xbf16>, vector<1x5x80xf32> -> vector<1x5x80xf32>
    "tpu.trace_stop"() : () -> ()
    %341 = arith.addf %336, %340 : vector<1x5x80xf32>
    %342 = arith.maximumf %317, %341 : vector<1x5x80xf32>
    %c0_331 = arith.constant 0 : index
    %c0_332 = arith.constant 0 : index
    %343 = vector.load %arg8[%c0_331, %c0_332] : memref<1x80xf32, #tpu.memory_space<vmem>>, vector<1x80xf32>
    %344 = vector.shape_cast %343 : vector<1x80xf32> to vector<1x1x80xf32>
    %345 = vector.broadcast %344 : vector<1x1x80xf32> to vector<1x5x80xf32>
    %346 = arith.addf %342, %345 : vector<1x5x80xf32>
    %cst_333 = arith.constant 0.000000e+00 : f32
    %347 = vector.broadcast %cst_333 : f32 to vector<1x5x80xf32>
    %348 = arith.maximumf %346, %347 : vector<1x5x80xf32>
    %349 = arith.truncf %348 : vector<1x5x80xf32> to vector<1x5x80xbf16>
    %c0_334 = arith.constant 0 : index
    %c0_335 = arith.constant 0 : index
    %c0_336 = arith.constant 0 : index
    %350 = vector.load %arg18[%c0_334, %c0_335, %c0_336] : memref<1x5x80xbf16, #tpu.memory_space<vmem>>, vector<1x5x80xbf16>
    tpu.vector_store %arg18[%c0_334, %c0_335, %c0_336], %349 {strides = array<i32>} : memref<1x5x80xbf16, #tpu.memory_space<vmem>>, vector<1x5x80xbf16>,
    %c0_337 = arith.constant 0 : index
    %c0_338 = arith.constant 0 : index
    %c0_339 = arith.constant 0 : index
    %351 = vector.load %arg18[%c0_337, %c0_338, %c0_339] : memref<1x5x80xbf16, #tpu.memory_space<vmem>>, vector<1x1x80xbf16>
    %c0_340 = arith.constant 0 : index
    %c0_341 = arith.constant 0 : index
    %c0_342 = arith.constant 0 : index
    %352 = vector.load %arg9[%c0_340, %c0_341, %c0_342] : memref<5x80x128xbf16, #tpu.memory_space<vmem>>, vector<1x80x128xbf16>
    %353 = vector.shape_cast %352 : vector<1x80x128xbf16> to vector<80x128xbf16>
    %354 = vector.shape_cast %353 : vector<80x128xbf16> to vector<1x80x128xbf16>
    "tpu.trace_start"() <{level = 10 : i32, message = "bmk,bkn->bmn"}> : () -> ()
    %cst_343 = arith.constant dense<0.000000e+00> : vector<1x1x128xf32>
    %355 = tpu.matmul %351, %354, %cst_343 {dimension_numbers = #tpu.dot_dimension_numbers<[2], [1], [1], [2], [0, 0, 0, 1, 1, 2], [0], [0]>} : vector<1x1x80xbf16>, vector<1x80x128xbf16>, vector<1x1x128xf32> -> vector<1x1x128xf32>
    "tpu.trace_stop"() : () -> ()
    %c0_344 = arith.constant 0 : index
    %c1_345 = arith.constant 1 : index
    %c0_346 = arith.constant 0 : index
    %356 = vector.load %arg18[%c0_344, %c1_345, %c0_346] : memref<1x5x80xbf16, #tpu.memory_space<vmem>>, vector<1x1x80xbf16>
    %c1_347 = arith.constant 1 : index
    %c0_348 = arith.constant 0 : index
    %c0_349 = arith.constant 0 : index
    %357 = vector.load %arg9[%c1_347, %c0_348, %c0_349] : memref<5x80x128xbf16, #tpu.memory_space<vmem>>, vector<1x80x128xbf16>
    %358 = vector.shape_cast %357 : vector<1x80x128xbf16> to vector<80x128xbf16>
    %359 = vector.shape_cast %358 : vector<80x128xbf16> to vector<1x80x128xbf16>
    "tpu.trace_start"() <{level = 10 : i32, message = "bmk,bkn->bmn"}> : () -> ()
    %cst_350 = arith.constant dense<0.000000e+00> : vector<1x1x128xf32>
    %360 = tpu.matmul %356, %359, %cst_350 {dimension_numbers = #tpu.dot_dimension_numbers<[2], [1], [1], [2], [0, 0, 0, 1, 1, 2], [0], [0]>} : vector<1x1x80xbf16>, vector<1x80x128xbf16>, vector<1x1x128xf32> -> vector<1x1x128xf32>
    "tpu.trace_stop"() : () -> ()
    %361 = arith.addf %355, %360 : vector<1x1x128xf32>
    %c0_351 = arith.constant 0 : index
    %c2_352 = arith.constant 2 : index
    %c0_353 = arith.constant 0 : index
    %362 = vector.load %arg18[%c0_351, %c2_352, %c0_353] : memref<1x5x80xbf16, #tpu.memory_space<vmem>>, vector<1x1x80xbf16>
    %c2_354 = arith.constant 2 : index
    %c0_355 = arith.constant 0 : index
    %c0_356 = arith.constant 0 : index
    %363 = vector.load %arg9[%c2_354, %c0_355, %c0_356] : memref<5x80x128xbf16, #tpu.memory_space<vmem>>, vector<1x80x128xbf16>
    %364 = vector.shape_cast %363 : vector<1x80x128xbf16> to vector<80x128xbf16>
    %365 = vector.shape_cast %364 : vector<80x128xbf16> to vector<1x80x128xbf16>
    "tpu.trace_start"() <{level = 10 : i32, message = "bmk,bkn->bmn"}> : () -> ()
    %cst_357 = arith.constant dense<0.000000e+00> : vector<1x1x128xf32>
    %366 = tpu.matmul %362, %365, %cst_357 {dimension_numbers = #tpu.dot_dimension_numbers<[2], [1], [1], [2], [0, 0, 0, 1, 1, 2], [0], [0]>} : vector<1x1x80xbf16>, vector<1x80x128xbf16>, vector<1x1x128xf32> -> vector<1x1x128xf32>
    "tpu.trace_stop"() : () -> ()
    %367 = arith.addf %361, %366 : vector<1x1x128xf32>
    %c0_358 = arith.constant 0 : index
    %c3_359 = arith.constant 3 : index
    %c0_360 = arith.constant 0 : index
    %368 = vector.load %arg18[%c0_358, %c3_359, %c0_360] : memref<1x5x80xbf16, #tpu.memory_space<vmem>>, vector<1x1x80xbf16>
    %c3_361 = arith.constant 3 : index
    %c0_362 = arith.constant 0 : index
    %c0_363 = arith.constant 0 : index
    %369 = vector.load %arg9[%c3_361, %c0_362, %c0_363] : memref<5x80x128xbf16, #tpu.memory_space<vmem>>, vector<1x80x128xbf16>
    %370 = vector.shape_cast %369 : vector<1x80x128xbf16> to vector<80x128xbf16>
    %371 = vector.shape_cast %370 : vector<80x128xbf16> to vector<1x80x128xbf16>
    "tpu.trace_start"() <{level = 10 : i32, message = "bmk,bkn->bmn"}> : () -> ()
    %cst_364 = arith.constant dense<0.000000e+00> : vector<1x1x128xf32>
    %372 = tpu.matmul %368, %371, %cst_364 {dimension_numbers = #tpu.dot_dimension_numbers<[2], [1], [1], [2], [0, 0, 0, 1, 1, 2], [0], [0]>} : vector<1x1x80xbf16>, vector<1x80x128xbf16>, vector<1x1x128xf32> -> vector<1x1x128xf32>
    "tpu.trace_stop"() : () -> ()
    %373 = arith.addf %367, %372 : vector<1x1x128xf32>
    %c0_365 = arith.constant 0 : index
    %c4_366 = arith.constant 4 : index
    %c0_367 = arith.constant 0 : index
    %374 = vector.load %arg18[%c0_365, %c4_366, %c0_367] : memref<1x5x80xbf16, #tpu.memory_space<vmem>>, vector<1x1x80xbf16>
    %c4_368 = arith.constant 4 : index
    %c0_369 = arith.constant 0 : index
    %c0_370 = arith.constant 0 : index
    %375 = vector.load %arg9[%c4_368, %c0_369, %c0_370] : memref<5x80x128xbf16, #tpu.memory_space<vmem>>, vector<1x80x128xbf16>
    %376 = vector.shape_cast %375 : vector<1x80x128xbf16> to vector<80x128xbf16>
    %377 = vector.shape_cast %376 : vector<80x128xbf16> to vector<1x80x128xbf16>
    "tpu.trace_start"() <{level = 10 : i32, message = "bmk,bkn->bmn"}> : () -> ()
    %cst_371 = arith.constant dense<0.000000e+00> : vector<1x1x128xf32>
    %378 = tpu.matmul %374, %377, %cst_371 {dimension_numbers = #tpu.dot_dimension_numbers<[2], [1], [1], [2], [0, 0, 0, 1, 1, 2], [0], [0]>} : vector<1x1x80xbf16>, vector<1x80x128xbf16>, vector<1x1x128xf32> -> vector<1x1x128xf32>
    "tpu.trace_stop"() : () -> ()
    %379 = arith.addf %373, %378 : vector<1x1x128xf32>
    %c0_372 = arith.constant 0 : index
    %c0_373 = arith.constant 0 : index
    %380 = vector.load %arg10[%c0_372, %c0_373] : memref<1x128xf32, #tpu.memory_space<vmem>>, vector<1x128xf32>
    %381 = vector.shape_cast %380 : vector<1x128xf32> to vector<1x1x128xf32>
    %382 = arith.addf %379, %381 : vector<1x1x128xf32>
    %cst_374 = arith.constant 0.000000e+00 : f32
    %383 = vector.broadcast %cst_374 : f32 to vector<1x1x128xf32>
    %384 = arith.maximumf %382, %383 : vector<1x1x128xf32>
    %385 = arith.truncf %384 : vector<1x1x128xf32> to vector<1x1x128xbf16>
    %c0_375 = arith.constant 0 : index
    %c0_376 = arith.constant 0 : index
    %386 = vector.load %arg11[%c0_375, %c0_376] : memref<128x128xbf16, #tpu.memory_space<vmem>>, vector<128x128xbf16>
    %387 = vector.shape_cast %386 : vector<128x128xbf16> to vector<1x128x128xbf16>
    "tpu.trace_start"() <{level = 10 : i32, message = "bmk,bkn->bmn"}> : () -> ()
    %cst_377 = arith.constant dense<0.000000e+00> : vector<1x1x128xf32>
    %388 = tpu.matmul %385, %387, %cst_377 {dimension_numbers = #tpu.dot_dimension_numbers<[2], [1], [1], [2], [0, 0, 0, 1, 1, 2], [0], [0]>} : vector<1x1x128xbf16>, vector<1x128x128xbf16>, vector<1x1x128xf32> -> vector<1x1x128xf32>
    "tpu.trace_stop"() : () -> ()
    %c0_378 = arith.constant 0 : index
    %c0_379 = arith.constant 0 : index
    %389 = vector.load %arg12[%c0_378, %c0_379] : memref<1x128xf32, #tpu.memory_space<vmem>>, vector<1x128xf32>
    %390 = vector.shape_cast %389 : vector<1x128xf32> to vector<1x1x128xf32>
    %391 = arith.addf %388, %390 : vector<1x1x128xf32>
    %cst_380 = arith.constant 0.000000e+00 : f32
    %392 = vector.broadcast %cst_380 : f32 to vector<1x1x128xf32>
    %393 = arith.maximumf %391, %392 : vector<1x1x128xf32>
    %394 = arith.truncf %393 : vector<1x1x128xf32> to vector<1x1x128xbf16>
    %c0_381 = arith.constant 0 : index
    %c0_382 = arith.constant 0 : index
    %395 = vector.load %arg13[%c0_381, %c0_382] : memref<128x128xbf16, #tpu.memory_space<vmem>>, vector<128x128xbf16>
    %396 = vector.shape_cast %395 : vector<128x128xbf16> to vector<1x128x128xbf16>
    "tpu.trace_start"() <{level = 10 : i32, message = "bmk,bkn->bmn"}> : () -> ()
    %cst_383 = arith.constant dense<0.000000e+00> : vector<1x1x128xf32>
    %397 = tpu.matmul %394, %396, %cst_383 {dimension_numbers = #tpu.dot_dimension_numbers<[2], [1], [1], [2], [0, 0, 0, 1, 1, 2], [0], [0]>} : vector<1x1x128xbf16>, vector<1x128x128xbf16>, vector<1x1x128xf32> -> vector<1x1x128xf32>
    "tpu.trace_stop"() : () -> ()
    %c0_384 = arith.constant 0 : index
    %c0_385 = arith.constant 0 : index
    %398 = vector.load %arg14[%c0_384, %c0_385] : memref<1x128xf32, #tpu.memory_space<vmem>>, vector<1x128xf32>
    %399 = vector.shape_cast %398 : vector<1x128xf32> to vector<1x1x128xf32>
    %400 = arith.addf %397, %399 : vector<1x1x128xf32>
    %c0_386 = arith.constant 0 : index
    %c0_387 = arith.constant 0 : index
    %c0_388 = arith.constant 0 : index
    %401 = vector.load %arg15[%c0_386, %c0_387, %c0_388] : memref<1x1x128xf32, #tpu.memory_space<vmem>>, vector<1x1x128xf32>
    tpu.vector_store %arg15[%c0_386, %c0_387, %c0_388], %400 {strides = array<i32>} : memref<1x1x128xf32, #tpu.memory_space<vmem>>, vector<1x1x128xf32>,
    return
  }
  func.func @transform_0(%arg0: i32) -> (i32, i32, i32) {
    %c0_i32 = arith.constant 0 : i32
    %c0_i32_0 = arith.constant 0 : i32
    %c0_i32_1 = arith.constant 0 : i32
    return %arg0, %c0_i32, %c0_i32_0 : i32, i32, i32
  }
  func.func @transform_1(%arg0: i32) -> (i32, i32, i32) {
    %c0_i32 = arith.constant 0 : i32
    %c0_i32_0 = arith.constant 0 : i32
    %c0_i32_1 = arith.constant 0 : i32
    return %arg0, %c0_i32, %c0_i32_0 : i32, i32, i32
  }
  func.func @transform_2(%arg0: i32) -> (i32, i32, i32) {
    %c0_i32 = arith.constant 0 : i32
    %c0_i32_0 = arith.constant 0 : i32
    %c0_i32_1 = arith.constant 0 : i32
    return %arg0, %c0_i32, %c0_i32_0 : i32, i32, i32
  }
  func.func @transform_3(%arg0: i32) -> (i32, i32, i32) {
    %c0_i32 = arith.constant 0 : i32
    %c0_i32_0 = arith.constant 0 : i32
    %c0_i32_1 = arith.constant 0 : i32
    return %arg0, %c0_i32, %c0_i32_0 : i32, i32, i32
  }
  func.func @transform_4(%arg0: i32) -> (i32, i32, i32) {
    %c0_i32 = arith.constant 0 : i32
    %c0_i32_0 = arith.constant 0 : i32
    %c0_i32_1 = arith.constant 0 : i32
    %c0_i32_2 = arith.constant 0 : i32
    return %c0_i32, %c0_i32_0, %c0_i32_1 : i32, i32, i32
  }
  func.func @transform_5(%arg0: i32) -> (i32, i32) {
    %c0_i32 = arith.constant 0 : i32
    %c0_i32_0 = arith.constant 0 : i32
    %c0_i32_1 = arith.constant 0 : i32
    return %c0_i32, %c0_i32_0 : i32, i32
  }
  func.func @transform_6(%arg0: i32) -> (i32, i32, i32) {
    %c0_i32 = arith.constant 0 : i32
    %c0_i32_0 = arith.constant 0 : i32
    %c0_i32_1 = arith.constant 0 : i32
    %c0_i32_2 = arith.constant 0 : i32
    return %c0_i32, %c0_i32_0, %c0_i32_1 : i32, i32, i32
  }
  func.func @transform_7(%arg0: i32) -> (i32, i32) {
    %c0_i32 = arith.constant 0 : i32
    %c0_i32_0 = arith.constant 0 : i32
    %c0_i32_1 = arith.constant 0 : i32
    return %c0_i32, %c0_i32_0 : i32, i32
  }
  func.func @transform_8(%arg0: i32) -> (i32, i32, i32) {
    %c0_i32 = arith.constant 0 : i32
    %c0_i32_0 = arith.constant 0 : i32
    %c0_i32_1 = arith.constant 0 : i32
    %c0_i32_2 = arith.constant 0 : i32
    return %c0_i32, %c0_i32_0, %c0_i32_1 : i32, i32, i32
  }
  func.func @transform_9(%arg0: i32) -> (i32, i32) {
    %c0_i32 = arith.constant 0 : i32
    %c0_i32_0 = arith.constant 0 : i32
    %c0_i32_1 = arith.constant 0 : i32
    return %c0_i32, %c0_i32_0 : i32, i32
  }
  func.func @transform_10(%arg0: i32) -> (i32, i32) {
    %c0_i32 = arith.constant 0 : i32
    %c0_i32_0 = arith.constant 0 : i32
    %c0_i32_1 = arith.constant 0 : i32
    return %c0_i32, %c0_i32_0 : i32, i32
  }
  func.func @transform_11(%arg0: i32) -> (i32, i32) {
    %c0_i32 = arith.constant 0 : i32
    %c0_i32_0 = arith.constant 0 : i32
    %c0_i32_1 = arith.constant 0 : i32
    return %c0_i32, %c0_i32_0 : i32, i32
  }
  func.func @transform_12(%arg0: i32) -> (i32, i32) {
    %c0_i32 = arith.constant 0 : i32
    %c0_i32_0 = arith.constant 0 : i32
    %c0_i32_1 = arith.constant 0 : i32
    return %c0_i32, %c0_i32_0 : i32, i32
  }
  func.func @transform_13(%arg0: i32) -> (i32, i32) {
    %c0_i32 = arith.constant 0 : i32
    %c0_i32_0 = arith.constant 0 : i32
    %c0_i32_1 = arith.constant 0 : i32
    return %c0_i32, %c0_i32_0 : i32, i32
  }
  func.func @transform_14(%arg0: i32) -> (i32, i32, i32) {
    %c0_i32 = arith.constant 0 : i32
    %c0_i32_0 = arith.constant 0 : i32
    %c0_i32_1 = arith.constant 0 : i32
    return %arg0, %c0_i32, %c0_i32_0 : i32, i32, i32
  }
}

</mosaic_0001>

<bundles_post_ra>
// kernel: net_forward.1
= control target key start
LH: loop header
LB: loop body
LE: loop exit
PB: predicated region body
PF: predicated region fallthrough
CT: control target
= control target key end

     0   :  { %s9515_s0 = inlined_call_operand.vmem [shape: bf16[2,8,96], index: 0, kind: input, shape index: {}]   ;;  %s9516_s1 = inlined_call_operand.vmem [shape: bf16[2,8,96], index: 1, kind: input, shape index: {}]   ;;  %s9517_s2 = inlined_call_operand.vmem [shape: bf16[2,8,96], index: 2, kind: input, shape index: {}]   ;;  %s9518_s3 = inlined_call_operand.vmem [shape: bf16[2,8,96], index: 3, kind: input, shape index: {}]   ;;  %s9519_s4 = inlined_call_operand.vmem [shape: bf16[10,96,84], index: 4, kind: input, shape index: {}]   ;;  %s9520_s5 = inlined_call_operand.vmem [shape: f32[1,84], index: 5, kind: input, shape index: {}]   ;;  %s9521_s6 = inlined_call_operand.vmem [shape: bf16[10,84,80], index: 6, kind: input, shape index: {}]   ;;  %s9522_s7 = inlined_call_operand.vmem [shape: f32[1,80], index: 7, kind: input, shape index: {}]   ;;  %s9523_s8 = inlined_call_operand.vmem [shape: bf16[5,80,128], index: 8, kind: input, shape index: {}]   ;;  %s9524_s9 = inlined_call_operand.vmem [shape: f32[1,128], index: 9, kind: input, shape index: {}]   ;;  %s9525_s10 = inlined_call_operand.vmem [shape: bf16[128,128], index: 10, kind: input, shape index: {}]   ;;  %s9526_s11 = inlined_call_operand.vmem [shape: f32[1,128], index: 11, kind: input, shape index: {}]   ;;  %s9527_s12 = inlined_call_operand.vmem [shape: bf16[128,128], index: 12, kind: input, shape index: {}]   ;;  %s9528_s13 = inlined_call_operand.vmem [shape: f32[1,128], index: 13, kind: input, shape index: {}]   ;;  %s9529_s14 = inlined_call_operand.hbm [shape: f32[2,1,128], index: 14, kind: output, shape index: {}]  }
   0x1   :  { %9536 = sst [smem:[#allocation14_spill]] %s9515_s0 }
   0x2   :  { %9537 = sst [smem:[#allocation15_spill]] %s9516_s1 }
   0x3   :  { %9538 = sst [smem:[#allocation16_spill]] %s9517_s2 }
   0x4   :  { %19 = vsyncpa [#allocation6], 0 }
   0x5   :  { %21 = vsyncpa [#allocation6 + $0x1], 0  ;;  %s7933_s29 = smov 0   ;;  %s7935_s30 = smov 0  }
   0x6   :  { %s7937_s15 = smov 0   ;;  %s7939_s16 = smov 0  }
   0x7 LB: > { %9539 = sst [smem:[#allocation8_spill]] %s7844_s29  ;;  %s7954_s17 = sadd.s32 4294967295, %s7856_s16   ;;  %s7856_s16 = sphi %s7939_s16, %s9555_s16   ;;  %s7852_s15 = sphi %s7937_s15, %s9557_s15   ;;  %s7848_s30 = sphi %s7935_s30, %s9559_s30   ;;  %s7844_s29 = sphi %s7933_s29, %s9558_s29  }
   0x8   : > { %9540 = sst [smem:[#allocation9_spill]] %s7852_s15  ;;  %s5102_s18 = sadd.s32 4294967294, %s7856_s16  }
   0x9   : > { %9541 = sst [smem:[#allocation10_spill]] %s7856_s16  ;;  %s7958_s19 = sadd.s32 1, %s7856_s16  }
   0xa   : > { %9542 = sst [smem:[#allocation11_spill]] %s7958_s19  ;;  %s348_s20 = sadd.s32 1, %s7852_s15 }
   0xb   : > { %s345_s21 = ssub.s32 %s7856_s16, %s7958_s19  ;;  %p358_p0 = scmp.ne.s32.totalorder %s7852_s15, %s7848_s30 }
   0xc   : > { %p346_p1 = scmp.eq.s32.totalorder %s345_s21, 0  ;;  %p359_p2 = scmp.eq.s32.totalorder %s7954_s17, 1 }
   0xd   : > { %p364_p3 = scmp.ne.s32.totalorder %s7848_s30, %s7844_s29  ;;  %p365_p4 = scmp.eq.s32.totalorder %s5102_s18, 1 }
   0xe   : > { %s7969_s22 = scalar_select %p346_p1, %s7852_s15, %s348_s20  }
   0xf   : > { %p7971_p5 = por %p359_p2, %p358_p0  ;;  %p7975_p6 = por %p365_p4, %p364_p3 }
  0x10   : > { %9543 = sst [smem:[#allocation12_spill]] %s7969_s22  ;;  %p5105_p7 = scmp.ge.s32.totalorder %s7856_s16, 1 }
  0x11   : > { %s9545_s24 = scalar_select %p7975_p6, 1, 0 }
  0x12   : > { %p441_p8 = scmp.lt.s32.totalorder %s7856_s16, 3 }
  0x13   : > { %9546 = sst [smem:[#allocation13_spill]] %s9545_s24 }
  0x14   : > { %p442_p9 = pnand %p5105_p7, %p441_p8 }
  0x15   : > { %p497_p10 = scmp.lt.s32.totalorder (!%p442_p9), %s7954_s17, 1  ;;  %s9547_s1 = sld [smem:[#allocation15_spill]] (!%p442_p9) }
  0x16   : > { %445 = sbr.rel (%p442_p9) target bundleno = 1084 (0x43c), region = 76  ;;  %s9548_s2 = sld [smem:[#allocation16_spill]] (!%p442_p9) }
  0x17   : > { %s9549_s0 = sld [smem:[#allocation14_spill]] (!%p442_p9)  ;;  %s495_s25 = sand.u32 (!%p442_p9), 1, %s7848_s30  }
  0x18   : > { %s5007_s22 = scalar_lea.hbm (!%p442_p9), %s9529_s14, %s7954_s17  ;;  %s4999_s20 = scalar_lea.sflag (!%p442_p9), [#allocation6], %s495_s25 }
  0x1b   : > { %v7382_v0 = vld [vmem:[%s9519_s4 + $0x58] sm:$0xff]  ;;  %v7376_v1 = vld [vmem:[%s9519_s4 + $0x28] sm:$0xff]  ;;  %v7381_v4 = vld [vmem:[%s9519_s4 + $0x50] sm:$0xff]  ;;  %s498_s27 = scalar_select %p497_p10, %s7954_s17, 1  ;;  %vm579_vm0 = vcmask 785408   ;;  %vm3256_vm1 = vcmask 1041408  }
  0x1c   : > { %v7388_v2 = vld [vmem:[%s9519_s4 + $0x88] sm:$0xff]  ;;  %v7394_v3 = vld [vmem:[%s9519_s4 + $0xb8] sm:$0xff]  ;;  %585 = vmatpush.bf16.msra.mxu0 %v7382_v0  ;;  %637 = vmatpush.bf16.msra.mxu1 %v7376_v1  ;;  %v7375_v5 = vld [vmem:[%s9519_s4 + $0x20] sm:$0xff]  ;;  %vm1834_vm2 = vcmask 683008   ;;  %vm1835_vm3 = vsmask.f32 3328 }
  0x1d   : > { %702 = vmatpush.bf16.msra.mxu2 %v7388_v2  ;;  %768 = vmatpush.bf16.msra.mxu3 %v7394_v3  ;;  %v7387_v6 = vld [vmem:[%s9519_s4 + $0x80] sm:$0xff]  ;;  %v7393_v7 = vld [vmem:[%s9519_s4 + $0xb0] sm:$0xff]  ;;  %v7380_v8 = vld [vmem:[%s9519_s4 + $0x48] sm:$0xff]  ;;  %s5106_s26 = sshll.u32 %s498_s27, 2  ;;  %vm3252_vm5 = vcmask 687104   ;;  %vm4515_vm6 = vcmask 649216  }
  0x1e   : > { %v7374_v9 = vld [vmem:[%s9519_s4 + $0x18] sm:$0xff]  ;;  %v7392_v11 = vld [vmem:[%s9519_s4 + $0xa8] sm:$0xff]  ;;  %v7379_v12 = vld [vmem:[%s9519_s4 + $0x40] sm:$0xff]  ;;  %s8064_s29 = scalar_lea.vmem %s9547_s1, %s5106_s26  ;;  %s8069_s21 = scalar_lea.vmem %s9548_s2, %s5106_s26  ;;  %vm4516_vm7 = vsmask.f32 2304  ;;  %vm4580_vm9 = vcmask 654336  }
  0x1f   : > { %v7386_v10 = vld [vmem:[%s9519_s4 + $0x78] sm:$0xff]  ;;  %v7373_v13 = vld [vmem:[%s9519_s4 + $0x10] sm:$0xff]  ;;  %v7391_v15 = vld [vmem:[%s9519_s4 + $0xa0] sm:$0xff]  ;;  %s8080_s18 = scalar_lea.vmem %s9549_s0, %s5106_s26  ;;  %s8085_s16 = scalar_lea.vmem %s9518_s3, %s5106_s26 }
  0x20   : > { %586 = vmatpush.bf16.msra.mxu0 %v7381_v4  ;;  %638 = vmatpush.bf16.msra.mxu1 %v7375_v5  ;;  %v7385_v14 = vld [vmem:[%s9519_s4 + $0x70] sm:$0xff]  ;;  %v7378_v16 = vld [vmem:[%s9519_s4 + $0x38] sm:$0xff]  ;;  %v7372_v17 = vld [vmem:[%s9519_s4 + $0x8] sm:$0xff]  ;;  %s5011_s2 = sshll.u32 %s5007_s22, 4  ;;  %s5012_s2 = int_to_ptr.hbm [resolvable:$true] %s5011_s2 }
  0x21   : > { %703 = vmatpush.bf16.msra.mxu2 %v7387_v6  ;;  %769 = vmatpush.bf16.msra.mxu3 %v7393_v7  ;;  %v7384_v18 = vld [vmem:[%s9519_s4 + $0x68] sm:$0xff]  ;;  %v7390_v19 = vld [vmem:[%s9519_s4 + $0x98] sm:$0xff]  ;;  %v7377_v20 = vld [vmem:[%s9519_s4 + $0x30] sm:$0xff]  ;;  %s7808_s15 = sshra.s32 %s5012_s2, 4  ;;  %s7809_s15 = int_to_ptr.hbm [resolvable:$true] %s7808_s15 }
  0x22   : > { %v7371_v21 = vld [vmem:[%s9519_s4] sm:$0xff]  ;;  %v7389_v23 = vld [vmem:[%s9519_s4 + $0x90] sm:$0xff]  ;;  %v7400_v24 = vld [vmem:[%s9519_s4 + $0xe8] sm:$0xff]  ;;  %s7810_s19 = scalar_lea.hbm %s7809_s15, 1  ;;  %p7815_p0 = scmp.lt.s32.totalorder %s7809_s15, %s9529_s14 }
  0x23   : > { %v7383_v22 = vld [vmem:[%s9519_s4 + $0x60] sm:$0xff]  ;;  %v7412_v25 = vld [vmem:[%s9519_s4 + $0x148] sm:$0xff]  ;;  %v7406_v26 = vld [vmem:[%s9519_s4 + $0x118] sm:$0xff]  ;;  %p7811_p11 = scmp.ne.s32.totalorder %s7809_s15, %s7810_s19 }
  0x24   : > { %587 = vmatpush.bf16.msra.mxu0 %v7380_v8  ;;  %639 = vmatpush.bf16.msra.mxu1 %v7374_v9  ;;  %v7418_v27 = vld [vmem:[%s9519_s4 + $0x178] sm:$0xff]  ;;  %v7399_v28 = vld [vmem:[%s9519_s4 + $0xe0] sm:$0xff]  ;;  %v7405_v34 = vld [vmem:[%s9519_s4 + $0x110] sm:$0xff] }
  0x25   : > { %704 = vmatpush.bf16.msra.mxu2 %v7386_v10  ;;  %770 = vmatpush.bf16.msra.mxu3 %v7392_v11  ;;  %v7411_v29 = vld [vmem:[%s9519_s4 + $0x140] sm:$0xff]  ;;  %v7417_v35 = vld [vmem:[%s9519_s4 + $0x170] sm:$0xff]  ;;  %v7398_v36 = vld [vmem:[%s9519_s4 + $0xd8] sm:$0xff]  ;;  %p7812_p12 = pnand %p7811_p11, %p7971_p5 }
  0x26   : > { %v8094_v30 = vld [vmem:[%s8064_s29] sm:$0xf]  ;;  %v7410_v37 = vld [vmem:[%s9519_s4 + $0x138] sm:$0xff]  ;;  %v7404_v39 = vld [vmem:[%s9519_s4 + $0x108] sm:$0xff] }
  0x27   : > { %v8097_v31 = vld [vmem:[%s8069_s21] sm:$0xf]  ;;  %v7416_v40 = vld [vmem:[%s9519_s4 + $0x168] sm:$0xff]  ;;  %v7397_v41 = vld [vmem:[%s9519_s4 + $0xd0] sm:$0xff]  ;;  %p7813_p13 = pneg %p7812_p12 }
  0x28   : > { %588 = vmatpush.bf16.msra.mxu0 %v7379_v12  ;;  %640 = vmatpush.bf16.msra.mxu1 %v7373_v13  ;;  %v8100_v32 = vld [vmem:[%s8080_s18] sm:$0xf]  ;;  %v7409_v42 = vld [vmem:[%s9519_s4 + $0x130] sm:$0xff]  ;;  %v7396_v47 = vld [vmem:[%s9519_s4 + $0xc8] sm:$0xff] }
  0x29   : > { %705 = vmatpush.bf16.msra.mxu2 %v7385_v14  ;;  %771 = vmatpush.bf16.msra.mxu3 %v7391_v15  ;;  %v8103_v33 = vld [vmem:[%s8085_s16] sm:$0xf]  ;;  %v794_v38 = vunpack.c.l.b16 %v8100_v32  ;;  %v7408_v48 = vld [vmem:[%s9519_s4 + $0x128] sm:$0xff]  ;;  %v7402_v49 = vld [vmem:[%s9519_s4 + $0xf8] sm:$0xff] }
  0x2a   : > { %v7403_v44 = vld [vmem:[%s9519_s4 + $0x100] sm:$0xff]  ;;  %v7414_v50 = vld [vmem:[%s9519_s4 + $0x158] sm:$0xff]  ;;  %v7401_v55 = vld [vmem:[%s9519_s4 + $0xf0] sm:$0xff] }
  0x2b   : > { %v795_v43 = vpack.c.b16 %v794_v38, %v794_v38  ;;  %v7415_v45 = vld [vmem:[%s9519_s4 + $0x160] sm:$0xff]  ;;  %v7413_v56 = vld [vmem:[%s9519_s4 + $0x150] sm:$0xff]  ;;  %v7424_v57 = vld [vmem:[%s9519_s4 + $0x1a8] sm:$0xff] }
  0x2c   : > { %589 = vmatpush.bf16.msra.mxu0 %v7378_v16  ;;  %641 = vmatpush.bf16.msra.mxu1 %v7372_v17  ;;  %v7395_v53 = vld [vmem:[%s9519_s4 + $0xc0] sm:$0xff]  ;;  %v7430_v58 = vld [vmem:[%s9519_s4 + $0x1d8] sm:$0xff]  ;;  %v7436_v60 = vld [vmem:[%s9519_s4 + $0x28] sm:$0xff] }
  0x2d   : > { %706 = vmatpush.bf16.msra.mxu2 %v7384_v18  ;;  %772 = vmatpush.bf16.msra.mxu3 %v7390_v19  ;;  %v799_v46 = vshll.u32 %v795_v43, 16  ;;  %v797_v51 = vshrl.u32 %v795_v43, 16  ;;  %v7407_v54 = vld [vmem:[%s9519_s4 + $0x120] sm:$0xff]  ;;  %v7442_v59 = vld [vmem:[%s9519_s4 + $0x58] sm:$0xff]  ;;  %v7429_v63 = vld [vmem:[%s9519_s4 + $0x1d0] sm:$0xff] }
  0x2e   : > { %v7423_v62 = vld [vmem:[%s9519_s4 + $0x1a0] sm:$0xff]  ;;  %v7441_v0 = vld [vmem:[%s9519_s4 + $0x50] sm:$0xff]  ;;  %v7422_v2 = vld [vmem:[%s9519_s4 + $0x198] sm:$0xff] }
  0x2f   : > { %v801_v52 = vrot.slane %v799_v46, 1  ;;  %v7435_v1 = vld [vmem:[%s9519_s4 + $0x20] sm:$0xff]  ;;  %v7428_v3 = vld [vmem:[%s9519_s4 + $0x1c8] sm:$0xff]  ;;  %v7434_v5 = vld [vmem:[%s9519_s4 + $0x18] sm:$0xff] }
  0x30   : > { %590 = vmatpush.bf16.msra.mxu0 %v7377_v20  ;;  %642 = vmatpush.bf16.msra.mxu1 %v7371_v21  ;;  %v7440_v4 = vld [vmem:[%s9519_s4 + $0x48] sm:$0xff]  ;;  %v7421_v6 = vld [vmem:[%s9519_s4 + $0x190] sm:$0xff]  ;;  %v7427_v7 = vld [vmem:[%s9519_s4 + $0x1c0] sm:$0xff] }
  0x31   : > { %707 = vmatpush.bf16.msra.mxu2 %v7383_v22  ;;  %773 = vmatpush.bf16.msra.mxu3 %v7389_v23  ;;  %v8180_v61 = vor.u32 %v801_v52, %v797_v51  ;;  %v7439_v8 = vld [vmem:[%s9519_s4 + $0x40] sm:$0xff]  ;;  %v7433_v9 = vld [vmem:[%s9519_s4 + $0x10] sm:$0xff]  ;;  %v7420_v10 = vld [vmem:[%s9519_s4 + $0x188] sm:$0xff] }
  0x32   : > { %v7426_v11 = vld [vmem:[%s9519_s4 + $0x1b8] sm:$0xff]  ;;  %v7432_v13 = vld [vmem:[%s9519_s4 + $0x8] sm:$0xff]  ;;  %v7419_v14 = vld [vmem:[%s9519_s4 + $0x180] sm:$0xff] }
  0x33   : > { %5146 = vmatmul.msk.bf16.vlgmr.msra.gmra.mxu0 %vm579_vm0, %v8094_v30  ;;  %5171 = vmatmul.msk.bf16.vlgmr.msra.gmra.mxu1 %vm579_vm0, %v8100_v32  ;;  %v7438_v12 = vld [vmem:[%s9519_s4 + $0x38] sm:$0xff]  ;;  %v7425_v15 = vld [vmem:[%s9519_s4 + $0x1b0] sm:$0xff]  ;;  %v7431_v17 = vld [vmem:[%s9519_s4] sm:$0xff] }
  0x34   : > { %844 = vmatpush.bf16.msrb.mxu0 %v7400_v24  ;;  %920 = vmatpush.bf16.msrb.mxu1 %v7412_v25  ;;  %v7437_v16 = vld [vmem:[%s9519_s4 + $0x30] sm:$0xff]  ;;  %v7448_v18 = vld [vmem:[%s9519_s4 + $0x88] sm:$0xff]  ;;  %v7454_v19 = vld [vmem:[%s9519_s4 + $0xb8] sm:$0xff] }
  0x35   : > { %969 = vmatpush.bf16.msrb.mxu2 %v7406_v26  ;;  %1031 = vmatpush.bf16.msrb.mxu3 %v7418_v27  ;;  %v7460_v20 = vld [vmem:[%s9519_s4 + $0xe8] sm:$0xff]  ;;  %v7447_v22 = vld [vmem:[%s9519_s4 + $0x80] sm:$0xff]  ;;  %v7453_v23 = vld [vmem:[%s9519_s4 + $0xb0] sm:$0xff] }
  0x36   : > { %5208 = vmatmul.msk.bf16.vlgmr.msra.gmra.mxu2 %vm579_vm0, %v8097_v31  ;;  %5245 = vmatmul.msk.bf16.vlgmr.msra.gmra.mxu3 %vm579_vm0, %v8103_v33  ;;  %v7472_v21 = vld [vmem:[%s9519_s4 + $0x148] sm:$0xff]  ;;  %v8269_v24 = vld [vmem:[%s8069_s21] sm:$0xf]  ;;  %v7450_v43 = vld [vmem:[%s9519_s4 + $0x98] sm:$0xff] }
  0x37   : > { %v8272_v25 = vld [vmem:[%s8064_s29] sm:$0xf]  ;;  %v7468_v46 = vld [vmem:[%s9519_s4 + $0x128] sm:$0xff]  ;;  %vm8932_vm4 = vmand %vm1834_vm2, %vm1835_vm3 }
  0x38   : > { %845 = vmatpush.bf16.msrb.mxu0 %v7399_v28  ;;  %921 = vmatpush.bf16.msrb.mxu1 %v7411_v29  ;;  %v7459_v26 = vld [vmem:[%s9519_s4 + $0xe0] sm:$0xff]  ;;  %v7446_v29 = vld [vmem:[%s9519_s4 + $0x78] sm:$0xff]  ;;  %vm4517_vm8 = vmand %vm4515_vm6, %vm4516_vm7 }
  0x39   : > { %970 = vmatpush.bf16.msrb.mxu2 %v7405_v34  ;;  %1032 = vmatpush.bf16.msrb.mxu3 %v7417_v35  ;;  %v7471_v27 = vld [vmem:[%s9519_s4 + $0x140] sm:$0xff]  ;;  %v7470_v34 = vld [vmem:[%s9519_s4 + $0x138] sm:$0xff]  ;;  %v7445_v35 = vld [vmem:[%s9519_s4 + $0x70] sm:$0xff] }
  0x3a   : > { %v1173_v28 = vld [vmem:[%s8080_s18] sm:$0xf] }
  0x3c   : > { %846 = vmatpush.bf16.msrb.mxu0 %v7398_v36  ;;  %922 = vmatpush.bf16.msrb.mxu1 %v7410_v37  ;;  %v7451_v36 = vld [vmem:[%s9519_s4 + $0xa0] sm:$0xff] }
  0x3d   : > { %971 = vmatpush.bf16.msrb.mxu2 %v7404_v39  ;;  %1033 = vmatpush.bf16.msrb.mxu3 %v7416_v40  ;;  %v7457_v39 = vld [vmem:[%s9519_s4 + $0xd0] sm:$0xff] }
  0x3e   : > { %v7469_v40 = vld [vmem:[%s9519_s4 + $0x130] sm:$0xff] }
  0x40   : > { %847 = vmatpush.bf16.msrb.mxu0 %v7397_v41  ;;  %923 = vmatpush.bf16.msrb.mxu1 %v7409_v42  ;;  %v7444_v42 = vld [vmem:[%s9519_s4 + $0x68] sm:$0xff] }
  0x41   : > { %972 = vmatpush.bf16.msrb.mxu2 %v7403_v44  ;;  %1034 = vmatpush.bf16.msrb.mxu3 %v7415_v45  ;;  %v7456_v45 = vld [vmem:[%s9519_s4 + $0xc8] sm:$0xff] }
  0x44   : > { %848 = vmatpush.bf16.msrb.mxu0 %v7396_v47  ;;  %924 = vmatpush.bf16.msrb.mxu1 %v7408_v48 }
  0x45   : > { %973 = vmatpush.bf16.msrb.mxu2 %v7402_v49  ;;  %1035 = vmatpush.bf16.msrb.mxu3 %v7414_v50  ;;  %v7443_v49 = vld [vmem:[%s9519_s4 + $0x60] sm:$0xff]  ;;  %v7449_v50 = vld [vmem:[%s9519_s4 + $0x90] sm:$0xff] }
  0x48   : > { %849 = vmatpush.bf16.msrb.mxu0 %v7395_v53  ;;  %925 = vmatpush.bf16.msrb.mxu1 %v7407_v54  ;;  %v7455_v53 = vld [vmem:[%s9519_s4 + $0xc0] sm:$0xff] }
  0x49   : > { %974 = vmatpush.bf16.msrb.mxu2 %v7401_v55  ;;  %1036 = vmatpush.bf16.msrb.mxu3 %v7413_v56  ;;  %v7467_v54 = vld [vmem:[%s9519_s4 + $0x120] sm:$0xff]  ;;  %v7466_v55 = vld [vmem:[%s9519_s4 + $0x118] sm:$0xff] }
  0x4a   : > { %v7478_v56 = vld [vmem:[%s9519_s4 + $0x178] sm:$0xff] }
  0x4b   : > { %5282 = vmatmul.msk.bf16.vlgmr.msrb.gmra.mxu0 %vm579_vm0, %v8180_v61  ;;  %5331 = vmatmul.msk.bf16.vlgmr.msrb.gmra.mxu1 %vm579_vm0, %v8094_v30  ;;  %v7452_v30 = vld [vmem:[%s9519_s4 + $0xa8] sm:$0xff] }
  0x4c   : > { %1094 = vmatpush.bf16.msra.mxu0 %v7424_v57  ;;  %1157 = vmatpush.bf16.msra.mxu1 %v7430_v58  ;;  %v7484_v57 = vld [vmem:[%s9519_s4 + $0x1a8] sm:$0xff]  ;;  %v7490_v58 = vld [vmem:[%s9519_s4 + $0x1d8] sm:$0xff] }
  0x4d   : > { %1239 = vmatpush.bf16.msra.mxu2 %v7442_v59  ;;  %1291 = vmatpush.bf16.msra.mxu3 %v7436_v60  ;;  %v8353_v60 = vld [vmem:[%s8085_s16] sm:$0xf] }
  0x4e   : > { %5356 = vmatmul.msk.bf16.vlgmr.msrb.gmra.mxu2 %vm579_vm0, %v8100_v32  ;;  %5393 = vmatmul.msk.bf16.vlgmr.msrb.gmra.mxu3 %vm579_vm0, %v8097_v31  ;;  %v1455_v31 = vunpack.c.l.b16 %v8272_v25  ;;  %v1380_v32 = vunpack.c.l.b16 %v1173_v28  ;;  %v1843_v28 = vld [vmem:[%s8064_s29] sm:$0xf] }
  0x50   : > { %1095 = vmatpush.bf16.msra.mxu0 %v7423_v62  ;;  %1158 = vmatpush.bf16.msra.mxu1 %v7429_v63  ;;  %v1456_v37 = vpack.c.b16 %v1455_v31, %v1455_v31  ;;  %v1381_v38 = vpack.c.b16 %v1380_v32, %v1380_v32  ;;  %v7465_v62 = vld [vmem:[%s9519_s4 + $0x110] sm:$0xff]  ;;  %v7494_v31 = vld [vmem:[%s9519_s4 + $0x18] sm:$0xff]  ;;  %v2060_v32 = vunpack.c.l.b16 %v1843_v28 }
  0x51   : > { %1240 = vmatpush.bf16.msra.mxu2 %v7441_v0  ;;  %1292 = vmatpush.bf16.msra.mxu3 %v7435_v1  ;;  %v7477_v63 = vld [vmem:[%s9519_s4 + $0x170] sm:$0xff]  ;;  %v7483_v0 = vld [vmem:[%s9519_s4 + $0x1a0] sm:$0xff]  ;;  %v7562_v28 = vld [vmem:[%s9519_s4 + $0x58] sm:$0xff] }
  0x52   : > { %v1460_v41 = vshll.u32 %v1456_v37, 16  ;;  %v1385_v44 = vshll.u32 %v1381_v38, 16  ;;  %v1458_v47 = vshrl.u32 %v1456_v37, 16  ;;  %v1383_v51 = vshrl.u32 %v1381_v38, 16  ;;  %v7489_v1 = vld [vmem:[%s9519_s4 + $0x1d0] sm:$0xff] }
  0x53   : > { %v2061_v37 = vpack.c.b16 %v2060_v32, %v2060_v32  ;;  %v7505_v38 = vld [vmem:[%s9519_s4 + $0x70] sm:$0xff]  ;;  %v7543_v32 = vld [vmem:[%s9519_s4 + $0x1a0] sm:$0xff] }
  0x54   : > { %1096 = vmatpush.bf16.msra.mxu0 %v7422_v2  ;;  %1159 = vmatpush.bf16.msra.mxu1 %v7428_v3  ;;  %v1462_v48 = vrot.slane %v1460_v41, 1  ;;  %v1387_v52 = vrot.slane %v1385_v44, 1  ;;  %v7464_v2 = vld [vmem:[%s9519_s4 + $0x108] sm:$0xff]  ;;  %v7498_v41 = vld [vmem:[%s9519_s4 + $0x38] sm:$0xff] }
  0x55   : > { %1241 = vmatpush.bf16.msra.mxu2 %v7440_v4  ;;  %1293 = vmatpush.bf16.msra.mxu3 %v7434_v5  ;;  %v7476_v3 = vld [vmem:[%s9519_s4 + $0x168] sm:$0xff]  ;;  %v7482_v4 = vld [vmem:[%s9519_s4 + $0x198] sm:$0xff] }
  0x56   : > { %v8350_v59 = vor.u32 %v1462_v48, %v1458_v47  ;;  %v7488_v5 = vld [vmem:[%s9519_s4 + $0x1c8] sm:$0xff]  ;;  %v7497_v48 = vld [vmem:[%s9519_s4 + $0x30] sm:$0xff] }
  0x57   : > { %v7504_v44 = vld [vmem:[%s9519_s4 + $0x68] sm:$0xff] }
  0x58   : > { %1097 = vmatpush.bf16.msra.mxu0 %v7421_v6  ;;  %1160 = vmatpush.bf16.msra.mxu1 %v7427_v7  ;;  %v7463_v6 = vld [vmem:[%s9519_s4 + $0x100] sm:$0xff] }
  0x59   : > { %1242 = vmatpush.bf16.msra.mxu2 %v7439_v8  ;;  %1294 = vmatpush.bf16.msra.mxu3 %v7433_v9  ;;  %v7475_v7 = vld [vmem:[%s9519_s4 + $0x160] sm:$0xff]  ;;  %v7481_v8 = vld [vmem:[%s9519_s4 + $0x190] sm:$0xff] }
  0x5a   : > { %v7487_v9 = vld [vmem:[%s9519_s4 + $0x1c0] sm:$0xff] }
  0x5c   : > { %1098 = vmatpush.bf16.msra.mxu0 %v7420_v10  ;;  %1161 = vmatpush.bf16.msra.mxu1 %v7426_v11  ;;  %v7462_v10 = vld [vmem:[%s9519_s4 + $0xf8] sm:$0xff] }
  0x5d   : > { %1243 = vmatpush.bf16.msra.mxu2 %v7438_v12  ;;  %1295 = vmatpush.bf16.msra.mxu3 %v7432_v13  ;;  %v7474_v11 = vld [vmem:[%s9519_s4 + $0x158] sm:$0xff]  ;;  %v7480_v12 = vld [vmem:[%s9519_s4 + $0x188] sm:$0xff] }
  0x5e   : > { %v7486_v13 = vld [vmem:[%s9519_s4 + $0x1b8] sm:$0xff] }
  0x60   : > { %1099 = vmatpush.bf16.msra.mxu0 %v7419_v14  ;;  %1162 = vmatpush.bf16.msra.mxu1 %v7425_v15  ;;  %v7461_v14 = vld [vmem:[%s9519_s4 + $0xf0] sm:$0xff] }
  0x61   : > { %1244 = vmatpush.bf16.msra.mxu2 %v7437_v16  ;;  %1296 = vmatpush.bf16.msra.mxu3 %v7431_v17  ;;  %v7473_v15 = vld [vmem:[%s9519_s4 + $0x150] sm:$0xff]  ;;  %v7479_v16 = vld [vmem:[%s9519_s4 + $0x180] sm:$0xff] }
  0x62   : > { %v7485_v17 = vld [vmem:[%s9519_s4 + $0x1b0] sm:$0xff] }
  0x63   : > { %5430 = vmatmul.msk.bf16.vlgmr.msra.gmra.mxu0 %vm579_vm0, %v8103_v33  ;;  %5467 = vmatmul.msk.bf16.vlgmr.msra.gmra.mxu1 %vm579_vm0, %v8180_v61  ;;  %v7458_v33 = vld [vmem:[%s9519_s4 + $0xd8] sm:$0xff]  ;;  %v8355_v61 = vor.u32 %v1387_v52, %v1383_v51  ;;  %v7503_v52 = vld [vmem:[%s9519_s4 + $0x60] sm:$0xff] }
  0x64   : > { %1355 = vmatpush.bf16.msrb.mxu0 %v7448_v18  ;;  %1430 = vmatpush.bf16.msrb.mxu1 %v7454_v19  ;;  %v7502_v18 = vld [vmem:[%s9519_s4 + $0x58] sm:$0xff]  ;;  %v7496_v19 = vld [vmem:[%s9519_s4 + $0x28] sm:$0xff] }
  0x65   : > { %1505 = vmatpush.bf16.msrb.mxu2 %v7460_v20  ;;  %1580 = vmatpush.bf16.msrb.mxu3 %v7472_v21  ;;  %v7508_v20 = vld [vmem:[%s9519_s4 + $0x88] sm:$0xff]  ;;  %v7514_v21 = vld [vmem:[%s9519_s4 + $0xb8] sm:$0xff] }
  0x66   : > { %5504 = vmatmul.msk.bf16.vlgmr.msra.gmra.mxu2 %vm579_vm0, %v8269_v24  ;;  %5529 = vmatmul.msk.bf16.vlgmr.msra.gmra.mxu3 %vm579_vm0, %v8272_v25 }
  0x68   : > { %1356 = vmatpush.bf16.msrb.mxu0 %v7447_v22  ;;  %1431 = vmatpush.bf16.msrb.mxu1 %v7453_v23  ;;  %v7501_v22 = vld [vmem:[%s9519_s4 + $0x50] sm:$0xff]  ;;  %v7495_v23 = vld [vmem:[%s9519_s4 + $0x20] sm:$0xff] }
  0x69   : > { %1506 = vmatpush.bf16.msrb.mxu2 %v7459_v26  ;;  %1581 = vmatpush.bf16.msrb.mxu3 %v7471_v27  ;;  %v7507_v26 = vld [vmem:[%s9519_s4 + $0x80] sm:$0xff]  ;;  %v7513_v27 = vld [vmem:[%s9519_s4 + $0xb0] sm:$0xff] }
  0x6c   : > { %1357 = vmatpush.bf16.msrb.mxu0 %v7446_v29  ;;  %1432 = vmatpush.bf16.msrb.mxu1 %v7452_v30  ;;  %v7500_v30 = vld [vmem:[%s9519_s4 + $0x48] sm:$0xff] }
  0x6d   : > { %1507 = vmatpush.bf16.msrb.mxu2 %v7458_v33  ;;  %1582 = vmatpush.bf16.msrb.mxu3 %v7470_v34  ;;  %v7512_v33 = vld [vmem:[%s9519_s4 + $0xa8] sm:$0xff] }
  0x70   : > { %1358 = vmatpush.bf16.msrb.mxu0 %v7445_v35  ;;  %1433 = vmatpush.bf16.msrb.mxu1 %v7451_v36  ;;  %v7499_v35 = vld [vmem:[%s9519_s4 + $0x40] sm:$0xff]  ;;  %v7493_v36 = vld [vmem:[%s9519_s4 + $0x10] sm:$0xff] }
  0x71   : > { %1508 = vmatpush.bf16.msrb.mxu2 %v7457_v39  ;;  %1583 = vmatpush.bf16.msrb.mxu3 %v7469_v40  ;;  %v7511_v39 = vld [vmem:[%s9519_s4 + $0xa0] sm:$0xff] }
  0x74   : > { %1359 = vmatpush.bf16.msrb.mxu0 %v7444_v42  ;;  %1434 = vmatpush.bf16.msrb.mxu1 %v7450_v43  ;;  %v7492_v42 = vld [vmem:[%s9519_s4 + $0x8] sm:$0xff]  ;;  %v2065_v43 = vshll.u32 %v2061_v37, 16 }
  0x75   : > { %1509 = vmatpush.bf16.msrb.mxu2 %v7456_v45  ;;  %1584 = vmatpush.bf16.msrb.mxu3 %v7468_v46  ;;  %v7510_v45 = vld [vmem:[%s9519_s4 + $0x98] sm:$0xff] }
  0x76   : > { %v2067_v51 = vrot.slane %v2065_v43, 1 }
  0x78   : > { %1360 = vmatpush.bf16.msrb.mxu0 %v7443_v49  ;;  %1435 = vmatpush.bf16.msrb.mxu1 %v7449_v50  ;;  %v7491_v49 = vld [vmem:[%s9519_s4] sm:$0xff]  ;;  %v2063_v50 = vshrl.u32 %v2061_v37, 16 }
  0x79   : > { %1510 = vmatpush.bf16.msrb.mxu2 %v7455_v53  ;;  %1585 = vmatpush.bf16.msrb.mxu3 %v7467_v54  ;;  %v7509_v53 = vld [vmem:[%s9519_s4 + $0x90] sm:$0xff]  ;;  %v7520_v54 = vld [vmem:[%s9519_s4 + $0xe8] sm:$0xff] }
  0x7b   : > { %5566 = vmatmul.msk.bf16.vlgmr.msrb.gmra.mxu0 %vm579_vm0, %v8353_v60  ;;  %5603 = vmatmul.msk.bf16.vlgmr.msrb.gmra.mxu1 %vm579_vm0, %v8355_v61 }
  0x7c   : > { %1629 = vmatpush.bf16.msra.mxu0 %v7466_v55  ;;  %1690 = vmatpush.bf16.msra.mxu1 %v7478_v56  ;;  %v7532_v55 = vld [vmem:[%s9519_s4 + $0x148] sm:$0xff]  ;;  %v7526_v56 = vld [vmem:[%s9519_s4 + $0x118] sm:$0xff] }
  0x7d   : > { %1752 = vmatpush.bf16.msra.mxu2 %v7484_v57  ;;  %1814 = vmatpush.bf16.msra.mxu3 %v7490_v58  ;;  %v7538_v57 = vld [vmem:[%s9519_s4 + $0x178] sm:$0xff] }
  0x7e   : > { %5640 = vmatmul.msk.bf16.vlgmr.msrb.gmra.mxu2 %vm579_vm0, %v8350_v59  ;;  %5689 = vmatmul.msk.bf16.vlgmr.msrb.gmra.mxu3 %vm579_vm0, %v8269_v24  ;;  %v1842_v24 = vld [vmem:[%s8080_s18] sm:$0xf] }
  0x7f   : > { %v1985_v29 = vunpack.c.l.b16 %v1842_v24  ;;  %v7544_v24 = vld [vmem:[%s9519_s4 + $0x1a8] sm:$0xff] }
  0x80   : > { %1630 = vmatpush.bf16.msra.mxu0 %v7465_v62  ;;  %1691 = vmatpush.bf16.msra.mxu1 %v7477_v63  ;;  %v7531_v62 = vld [vmem:[%s9519_s4 + $0x140] sm:$0xff] }
  0x81   : > { %1753 = vmatpush.bf16.msra.mxu2 %v7483_v0  ;;  %1815 = vmatpush.bf16.msra.mxu3 %v7489_v1  ;;  %v1986_v34 = vpack.c.b16 %v1985_v29, %v1985_v29  ;;  %v8533_v63 = vld [vmem:[%s8069_s21] sm:$0xf]  ;;  %v7525_v0 = vld [vmem:[%s9519_s4 + $0x110] sm:$0xff]  ;;  %v7556_v29 = vld [vmem:[%s9519_s4 + $0x28] sm:$0xff] }
  0x82   : > { %v7537_v1 = vld [vmem:[%s9519_s4 + $0x170] sm:$0xff] }
  0x83   : > { %v1990_v40 = vshll.u32 %v1986_v34, 16  ;;  %v1988_v46 = vshrl.u32 %v1986_v34, 16  ;;  %v7555_v34 = vld [vmem:[%s9519_s4 + $0x20] sm:$0xff] }
  0x84   : > { %1631 = vmatpush.bf16.msra.mxu0 %v7464_v2  ;;  %1692 = vmatpush.bf16.msra.mxu1 %v7476_v3  ;;  %v7518_v2 = vld [vmem:[%s9519_s4 + $0xd8] sm:$0xff] }
  0x85   : > { %1754 = vmatpush.bf16.msra.mxu2 %v7482_v4  ;;  %1816 = vmatpush.bf16.msra.mxu3 %v7488_v5  ;;  %v1992_v47 = vrot.slane %v1990_v40, 1  ;;  %v7530_v3 = vld [vmem:[%s9519_s4 + $0x138] sm:$0xff]  ;;  %v2135_v4 = vunpack.c.l.b16 %v8533_v63  ;;  %v7524_v5 = vld [vmem:[%s9519_s4 + $0x108] sm:$0xff] }
  0x86   : > { %v7542_v40 = vld [vmem:[%s9519_s4 + $0x198] sm:$0xff] }
  0x87   : > { %v8519_v58 = vor.u32 %v1992_v47, %v1988_v46  ;;  %v7554_v46 = vld [vmem:[%s9519_s4 + $0x18] sm:$0xff]  ;;  %v7541_v47 = vld [vmem:[%s9519_s4 + $0x190] sm:$0xff] }
  0x88   : > { %1632 = vmatpush.bf16.msra.mxu0 %v7463_v6  ;;  %1693 = vmatpush.bf16.msra.mxu1 %v7475_v7  ;;  %v7536_v6 = vld [vmem:[%s9519_s4 + $0x168] sm:$0xff]  ;;  %v7517_v7 = vld [vmem:[%s9519_s4 + $0xd0] sm:$0xff] }
  0x89   : > { %1755 = vmatpush.bf16.msra.mxu2 %v7481_v8  ;;  %1817 = vmatpush.bf16.msra.mxu3 %v7487_v9  ;;  %v7529_v8 = vld [vmem:[%s9519_s4 + $0x130] sm:$0xff]  ;;  %v2136_v9 = vpack.c.b16 %v2135_v4, %v2135_v4  ;;  %v7568_v4 = vld [vmem:[%s9519_s4 + $0x88] sm:$0xff] }
  0x8c   : > { %1633 = vmatpush.bf16.msra.mxu0 %v7462_v10  ;;  %1694 = vmatpush.bf16.msra.mxu1 %v7474_v11  ;;  %v7523_v10 = vld [vmem:[%s9519_s4 + $0x100] sm:$0xff] }
  0x8d   : > { %1756 = vmatpush.bf16.msra.mxu2 %v7480_v12  ;;  %1818 = vmatpush.bf16.msra.mxu3 %v7486_v13  ;;  %v7535_v11 = vld [vmem:[%s9519_s4 + $0x160] sm:$0xff]  ;;  %v2140_v12 = vshll.u32 %v2136_v9, 16  ;;  %v7516_v13 = vld [vmem:[%s9519_s4 + $0xc8] sm:$0xff] }
  0x90   : > { %1634 = vmatpush.bf16.msra.mxu0 %v7461_v14  ;;  %1695 = vmatpush.bf16.msra.mxu1 %v7473_v15  ;;  %v7528_v14 = vld [vmem:[%s9519_s4 + $0x128] sm:$0xff]  ;;  %v7522_v15 = vld [vmem:[%s9519_s4 + $0xf8] sm:$0xff] }
  0x91   : > { %1757 = vmatpush.bf16.msra.mxu2 %v7479_v16  ;;  %1819 = vmatpush.bf16.msra.mxu3 %v7485_v17  ;;  %v7534_v16 = vld [vmem:[%s9519_s4 + $0x158] sm:$0xff]  ;;  %v2138_v17 = vshrl.u32 %v2136_v9, 16 }
  0x93   : > { %5714 = vmatmul.msk.bf16.vlgmr.msra.gmra.mxu0 %vm579_vm0, %v8272_v25  ;;  %5751 = vmatmul.msk.bf16.vlgmr.msra.gmra.mxu1 %vm579_vm0, %v8353_v60  ;;  %v7506_v25 = vld [vmem:[%s9519_s4 + $0x78] sm:$0xff]  ;;  %v8524_v60 = vor.u32 %v2067_v51, %v2063_v50  ;;  %v7559_v50 = vld [vmem:[%s9519_s4 + $0x40] sm:$0xff]  ;;  %v7553_v51 = vld [vmem:[%s9519_s4 + $0x10] sm:$0xff] }
  0x94   : > { %1909 = vmatpush.bf16.msrb.mxu0 %v7502_v18  ;;  %1961 = vmatpush.bf16.msrb.mxu1 %v7496_v19  ;;  %v2142_v18 = vrot.slane %v2140_v12, 1  ;;  %v7515_v19 = vld [vmem:[%s9519_s4 + $0xc0] sm:$0xff] }
  0x95   : > { %2035 = vmatpush.bf16.msrb.mxu2 %v7508_v20  ;;  %2110 = vmatpush.bf16.msrb.mxu3 %v7514_v21  ;;  %v7527_v20 = vld [vmem:[%s9519_s4 + $0x120] sm:$0xff]  ;;  %v7521_v21 = vld [vmem:[%s9519_s4 + $0xf0] sm:$0xff] }
  0x96   : > { %5788 = vmatmul.msk.bf16.vlgmr.msra.gmra.mxu2 %vm579_vm0, %v8355_v61  ;;  %5825 = vmatmul.msk.bf16.vlgmr.msra.gmra.mxu3 %vm579_vm0, %v8350_v59  ;;  %v8522_v59 = vld [vmem:[%s8085_s16] sm:$0xf] }
  0x97   : > { %v7519_v61 = vld [vmem:[%s9519_s4 + $0xe0] sm:$0xff] }
  0x98   : > { %1910 = vmatpush.bf16.msrb.mxu0 %v7501_v22  ;;  %1962 = vmatpush.bf16.msrb.mxu1 %v7495_v23  ;;  %v7533_v22 = vld [vmem:[%s9519_s4 + $0x150] sm:$0xff]  ;;  %v8704_v12 = vld [vmem:[%s8085_s16] sm:$0xf]  ;;  %s496_s16 = scalar_lea.vmem [#allocation5], %s495_s25 }
  0x99   : > { %2036 = vmatpush.bf16.msrb.mxu2 %v7507_v26  ;;  %2111 = vmatpush.bf16.msrb.mxu3 %v7513_v27  ;;  %v7550_v26 = vld [vmem:[%s9519_s4 + $0x1d8] sm:$0xff]  ;;  %s5009_s0 = sshll.u32 %s496_s16, 4  ;;  %s5010_s0 = int_to_ptr.vmem [resolvable:$true] %s5009_s0 }
  0x9c   : > { %1911 = vmatpush.bf16.msrb.mxu0 %v7500_v30  ;;  %1963 = vmatpush.bf16.msrb.mxu1 %v7494_v31  ;;  %v8610_v31 = vor.u32 %v2142_v18, %v2138_v17 }
  0x9d   : > { %2037 = vmatpush.bf16.msrb.mxu2 %v7506_v25  ;;  %2112 = vmatpush.bf16.msrb.mxu3 %v7512_v33  ;;  %v7549_v25 = vld [vmem:[%s9519_s4 + $0x1d0] sm:$0xff] }
  0x9e   : > { %v7561_v33 = vld [vmem:[%s9519_s4 + $0x50] sm:$0xff] }
  0xa0   : > { %1912 = vmatpush.bf16.msrb.mxu0 %v7499_v35  ;;  %1964 = vmatpush.bf16.msrb.mxu1 %v7493_v36  ;;  %v2507_v36 = vld [vmem:[%s8080_s18] sm:$0xf]  ;;  %s7814_s18 = scalar_lea.hbm %s9529_s14, 2 }
  0xa1   : > { %2038 = vmatpush.bf16.msrb.mxu2 %v7505_v38  ;;  %2113 = vmatpush.bf16.msrb.mxu3 %v7511_v39  ;;  %p7816_p1 = scmp.lt.s32.totalorder %s7814_s18, %s7810_s19 }
  0xa3   : > { %p7817_p2 = por %p7816_p1, %p7815_p0 }
  0xa4   : > { %1913 = vmatpush.bf16.msrb.mxu0 %v7498_v41  ;;  %1965 = vmatpush.bf16.msrb.mxu1 %v7492_v42  ;;  %v7548_v41 = vld [vmem:[%s9519_s4 + $0x1c8] sm:$0xff] }
  0xa5   : > { %2039 = vmatpush.bf16.msrb.mxu2 %v7504_v44  ;;  %2114 = vmatpush.bf16.msrb.mxu3 %v7510_v45  ;;  %v2535_v44 = vunpack.c.l.b16 %v2507_v36  ;;  %v7560_v45 = vld [vmem:[%s9519_s4 + $0x48] sm:$0xff]  ;;  %p7818_p3 = pnand %p7817_p2, %p7813_p13 }
  0xa8   : > { %1914 = vmatpush.bf16.msrb.mxu0 %v7497_v48  ;;  %1966 = vmatpush.bf16.msrb.mxu1 %v7491_v49  ;;  %v7547_v48 = vld [vmem:[%s9519_s4 + $0x1c0] sm:$0xff]  ;;  %v2536_v49 = vpack.c.b16 %v2535_v44, %v2535_v44 }
  0xa9   : > { %2040 = vmatpush.bf16.msrb.mxu2 %v7503_v52  ;;  %2115 = vmatpush.bf16.msrb.mxu3 %v7509_v53 }
  0xab   : > { %5862 = vmatmul.msk.bf16.vlgmr.msrb.gmra.mxu0 %vm579_vm0, %v8522_v59  ;;  %5887 = vmatmul.msk.bf16.vlgmr.msrb.gmra.mxu1 %vm579_vm0, %v8533_v63 }
  0xac   : > { %2185 = vmatpush.bf16.msra.mxu0 %v7520_v54  ;;  %2259 = vmatpush.bf16.msra.mxu1 %v7532_v55  ;;  %v7540_v54 = vld [vmem:[%s9519_s4 + $0x188] sm:$0xff]  ;;  %v7546_v55 = vld [vmem:[%s9519_s4 + $0x1b8] sm:$0xff] }
  0xad   : > { %2308 = vmatpush.bf16.msra.mxu2 %v7526_v56  ;;  %2369 = vmatpush.bf16.msra.mxu3 %v7538_v57  ;;  %v2540_v56 = vshll.u32 %v2536_v49, 16  ;;  %v7558_v57 = vld [vmem:[%s9519_s4 + $0x38] sm:$0xff] }
  0xae   : > { %5924 = vmatmul.msk.bf16.vlgmr.msrb.gmra.mxu2 %vm579_vm0, %v8519_v58  ;;  %5961 = vmatmul.msk.bf16.vlgmr.msrb.gmra.mxu3 %vm579_vm0, %v8524_v60 }
  0xb0   : > { %2186 = vmatpush.bf16.msra.mxu0 %v7519_v61  ;;  %2260 = vmatpush.bf16.msra.mxu1 %v7531_v62  ;;  %v592_v23 = vpop.f32.mrf.mxu0  ;;  %v644_v27 = vpop.f32.mrf.mxu1  ;;  %v7545_v61 = vld [vmem:[%s9519_s4 + $0x1b0] sm:$0xff]  ;;  %v2538_v62 = vshrl.u32 %v2536_v49, 16  ;;  %v7563_v49 = vld [vmem:[%s9519_s4 + $0x60] sm:$0xff] }
  0xb1   : > { %2309 = vmatpush.bf16.msra.mxu2 %v7525_v0  ;;  %2370 = vmatpush.bf16.msra.mxu3 %v7537_v1  ;;  %v645_v30 = vadd.f32 %v644_v27, %v592_v23  ;;  %v7557_v0 = vld [vmem:[%s9519_s4 + $0x30] sm:$0xff]  ;;  %v7551_v1 = vld [vmem:[%s9519_s4] sm:$0xff]  ;;  %v7572_v23 = vld [vmem:[%s9519_s4 + $0xa8] sm:$0xff] }
  0xb2   : > { %v7590_v27 = vld [vmem:[%s9519_s4 + $0x138] sm:$0xff] }
  0xb4   : > { %2187 = vmatpush.bf16.msra.mxu0 %v7518_v2  ;;  %2261 = vmatpush.bf16.msra.mxu1 %v7530_v3 }
  0xb5   : > { %2310 = vmatpush.bf16.msra.mxu2 %v7524_v5  ;;  %2371 = vmatpush.bf16.msra.mxu3 %v7536_v6  ;;  %v7574_v5 = vld [vmem:[%s9519_s4 + $0xb8] sm:$0xff] }
  0xb8   : > { %2188 = vmatpush.bf16.msra.mxu0 %v7517_v7  ;;  %2262 = vmatpush.bf16.msra.mxu1 %v7529_v8  ;;  %v594_v39 = vpop.f32.mrf.mxu0  ;;  %v646_v43 = vpop.f32.mrf.mxu1  ;;  %v7580_v7 = vld [vmem:[%s9519_s4 + $0xe8] sm:$0xff] }
  0xb9   : > { %2311 = vmatpush.bf16.msra.mxu2 %v7523_v10  ;;  %2372 = vmatpush.bf16.msra.mxu3 %v7535_v11  ;;  %v709_v35 = vpop.f32.mrf.mxu2  ;;  %v775_v38 = vpop.f32.mrf.mxu3  ;;  %v7592_v8 = vld [vmem:[%s9519_s4 + $0x148] sm:$0xff]  ;;  %v7567_v10 = vld [vmem:[%s9519_s4 + $0x80] sm:$0xff]  ;;  %v7573_v11 = vld [vmem:[%s9519_s4 + $0xb0] sm:$0xff] }
  0xba   : > { %v713_v37 = vadd.f32 %v709_v35, %v645_v30  ;;  %v7565_v30 = vld [vmem:[%s9519_s4 + $0x70] sm:$0xff]  ;;  %v7564_v39 = vld [vmem:[%s9519_s4 + $0x68] sm:$0xff] }
  0xbb   : > { %v7588_v43 = vld [vmem:[%s9519_s4 + $0x128] sm:$0xff] }
  0xbc   : > { %2189 = vmatpush.bf16.msra.mxu0 %v7516_v13  ;;  %2263 = vmatpush.bf16.msra.mxu1 %v7528_v14  ;;  %v779_v42 = vadd.f32 %v775_v38, %v713_v37  ;;  %v2508_v13 = vld [vmem:[%s8064_s29] sm:$0xf] }
  0xbd   : > { %2312 = vmatpush.bf16.msra.mxu2 %v7522_v15  ;;  %2373 = vmatpush.bf16.msra.mxu3 %v7534_v16  ;;  %v7579_v14 = vld [vmem:[%s9519_s4 + $0xe0] sm:$0xff] }
  0xbe   : > { %v7591_v15 = vld [vmem:[%s9519_s4 + $0x140] sm:$0xff] }
  0xbf   : > { %v2509_v16 = vld [vmem:[%s8069_s21] sm:$0xf] }
  0xc0   : > { %2190 = vmatpush.bf16.msra.mxu0 %v7515_v19  ;;  %2264 = vmatpush.bf16.msra.mxu1 %v7527_v20 }
  0xc1   : > { %2313 = vmatpush.bf16.msra.mxu2 %v7521_v21  ;;  %2374 = vmatpush.bf16.msra.mxu3 %v7533_v22  ;;  %v711_v52 = vpop.f32.mrf.mxu2  ;;  %v777_v53 = vpop.f32.mrf.mxu3  ;;  %v2661_v21 = vunpack.c.l.b16 %v2508_v13  ;;  %v2811_v22 = vunpack.c.l.b16 %v8704_v12 }
  0xc2   : > { %v7575_v53 = vld [vmem:[%s9519_s4 + $0xc0] sm:$0xff] }
  0xc3   : > { %5998 = vmatmul.msk.bf16.vlgmr.msra.gmra.mxu0 %vm579_vm0, %v8610_v31  ;;  %6047 = vmatmul.msk.bf16.vlgmr.msra.gmra.mxu1 %vm579_vm0, %v8522_v59  ;;  %v7539_v59 = vld [vmem:[%s9519_s4 + $0x180] sm:$0xff] }
  0xc4   : > { %2431 = vmatpush.bf16.msrb.mxu0 %v7544_v24  ;;  %2493 = vmatpush.bf16.msrb.mxu1 %v7550_v26  ;;  %v2736_v24 = vunpack.c.l.b16 %v2509_v16  ;;  %v7578_v26 = vld [vmem:[%s9519_s4 + $0xd8] sm:$0xff]  ;;  %v7596_v16 = vld [vmem:[%s9519_s4 + $0x168] sm:$0xff] }
  0xc5   : > { %2585 = vmatpush.bf16.msrb.mxu2 %v7562_v28  ;;  %2637 = vmatpush.bf16.msrb.mxu3 %v7556_v29  ;;  %v2662_v28 = vpack.c.b16 %v2661_v21, %v2661_v21  ;;  %v2812_v29 = vpack.c.b16 %v2811_v22, %v2811_v22  ;;  %v7607_v21 = vld [vmem:[%s9519_s4 + $0x1c0] sm:$0xff] }
  0xc6   : > { %6072 = vmatmul.msk.bf16.vlgmr.msra.gmra.mxu2 %vm579_vm0, %v8533_v63  ;;  %6109 = vmatmul.msk.bf16.vlgmr.msra.gmra.mxu3 %vm579_vm0, %v8519_v58  ;;  %v7552_v58 = vld [vmem:[%s9519_s4 + $0x8] sm:$0xff]  ;;  %v2542_v63 = vrot.slane %v2540_v56, 1 }
  0xc7   : > { %v2666_v37 = vshll.u32 %v2662_v28, 16  ;;  %v2816_v38 = vshll.u32 %v2812_v29, 16 }
  0xc8   : > { %2432 = vmatpush.bf16.msrb.mxu0 %v7543_v32  ;;  %2494 = vmatpush.bf16.msrb.mxu1 %v7549_v25  ;;  %v851_v2 = vpop.f32.mrf.mxu0  ;;  %v927_v3 = vpop.f32.mrf.mxu1  ;;  %v8695_v9 = vor.u32 %v2542_v63, %v2538_v62  ;;  %v2737_v32 = vpack.c.b16 %v2736_v24, %v2736_v24  ;;  %v7577_v25 = vld [vmem:[%s9519_s4 + $0xd0] sm:$0xff]  ;;  %v7610_v62 = vld [vmem:[%s9519_s4 + $0x1d8] sm:$0xff]  ;;  %v6605_v24 = vld [vmem:[%s9521_s6 + $0x80] sm:$0x3] }
  0xc9   : > { %2586 = vmatpush.bf16.msrb.mxu2 %v7561_v33  ;;  %2638 = vmatpush.bf16.msrb.mxu3 %v7555_v34  ;;  %v8687_v6 = vadd.f32 %v851_v2, %v779_v42  ;;  %v7589_v33 = vld [vmem:[%s9519_s4 + $0x130] sm:$0xff]  ;;  %v7576_v42 = vld [vmem:[%s9519_s4 + $0xc8] sm:$0xff] }
  0xcc   : > { %2433 = vmatpush.bf16.msrb.mxu0 %v7542_v40  ;;  %2495 = vmatpush.bf16.msrb.mxu1 %v7548_v41  ;;  %v7570_v40 = vld [vmem:[%s9519_s4 + $0x98] sm:$0xff]  ;;  %v2741_v41 = vshll.u32 %v2737_v32, 16 }
  0xcd   : > { %2587 = vmatpush.bf16.msrb.mxu2 %v7560_v45  ;;  %2639 = vmatpush.bf16.msrb.mxu3 %v7554_v46  ;;  %v2664_v45 = vshrl.u32 %v2662_v28, 16  ;;  %v2668_v46 = vrot.slane %v2666_v37, 1  ;;  %v7582_v28 = vld [vmem:[%s9519_s4 + $0xf8] sm:$0xff] }
  0xce   : > { %v2743_v52 = vrot.slane %v2741_v41, 1  ;;  %v7615_v41 = vld [vmem:[%s9521_s6 + $0x20] sm:$0xff] }
  0xcf   : > { %v8783_v63 = vor.u32 %v2668_v46, %v2664_v45 }
  0xd0   : > { %2434 = vmatpush.bf16.msrb.mxu0 %v7541_v47  ;;  %2496 = vmatpush.bf16.msrb.mxu1 %v7547_v48  ;;  %v853_v19 = vpop.f32.mrf.mxu0  ;;  %v929_v20 = vpop.f32.mrf.mxu1  ;;  %v2814_v47 = vshrl.u32 %v2812_v29, 16  ;;  %v2818_v48 = vrot.slane %v2816_v38, 1  ;;  %v7594_v29 = vld [vmem:[%s9519_s4 + $0x158] sm:$0xff] }
  0xd1   : > { %2588 = vmatpush.bf16.msrb.mxu2 %v7559_v50  ;;  %2640 = vmatpush.bf16.msrb.mxu3 %v7553_v51  ;;  %v976_v17 = vpop.f32.mrf.mxu2  ;;  %v1038_v18 = vpop.f32.mrf.mxu3  ;;  %v7569_v50 = vld [vmem:[%s9519_s4 + $0x90] sm:$0xff]  ;;  %v2739_v51 = vshrl.u32 %v2737_v32, 16  ;;  %v7595_v19 = vld [vmem:[%s9519_s4 + $0x160] sm:$0xff] }
  0xd2   : > { %v977_v34 = vadd.f32 %v976_v17, %v927_v3  ;;  %v7608_v17 = vld [vmem:[%s9519_s4 + $0x1c8] sm:$0xff]  ;;  %v7601_v20 = vld [vmem:[%s9519_s4 + $0x190] sm:$0xff] }
  0xd3   : > { %v8789_v2 = vor.u32 %v2743_v52, %v2739_v51 }
  0xd4   : > { %2435 = vmatpush.bf16.msrb.mxu0 %v7540_v54  ;;  %2497 = vmatpush.bf16.msrb.mxu1 %v7546_v55  ;;  %v1042_v44 = vadd.f32 %v1038_v18, %v977_v34  ;;  %v7587_v54 = vld [vmem:[%s9519_s4 + $0x120] sm:$0xff]  ;;  %v7593_v34 = vld [vmem:[%s9519_s4 + $0x150] sm:$0xff] }
  0xd5   : > { %2589 = vmatpush.bf16.msrb.mxu2 %v7558_v57  ;;  %2641 = vmatpush.bf16.msrb.mxu3 %v7552_v58  ;;  %v7586_v57 = vld [vmem:[%s9519_s4 + $0x118] sm:$0xff]  ;;  %v7583_v18 = vld [vmem:[%s9519_s4 + $0x100] sm:$0xff] }
  0xd6   : > { %v7598_v58 = vld [vmem:[%s9519_s4 + $0x178] sm:$0xff] }
  0xd8   : > { %2436 = vmatpush.bf16.msrb.mxu0 %v7539_v59  ;;  %2498 = vmatpush.bf16.msrb.mxu1 %v7545_v61  ;;  %v7604_v61 = vld [vmem:[%s9519_s4 + $0x1a8] sm:$0xff] }
  0xd9   : > { %2590 = vmatpush.bf16.msrb.mxu2 %v7557_v0  ;;  %2642 = vmatpush.bf16.msrb.mxu3 %v7551_v1  ;;  %v978_v35 = vpop.f32.mrf.mxu2  ;;  %v1040_v36 = vpop.f32.mrf.mxu3  ;;  %v8785_v0 = vor.u32 %v2818_v48, %v2814_v47  ;;  %v7614_v47 = vld [vmem:[%s9521_s6 + $0x18] sm:$0xff]  ;;  %v6701_v48 = vld [vmem:[%s9521_s6 + $0x104] sm:$0x3] }
  0xda   : > { %v7599_v35 = vld [vmem:[%s9519_s4 + $0x180] sm:$0xff]  ;;  %v7605_v36 = vld [vmem:[%s9519_s4 + $0x1b0] sm:$0xff] }
  0xdb   : > { %6146 = vmatmul.msk.bf16.vlgmr.msrb.gmra.mxu0 %vm579_vm0, %v8524_v60  ;;  %6183 = vmatmul.msk.bf16.vlgmr.msrb.gmra.mxu1 %vm579_vm0, %v8610_v31  ;;  %v7566_v60 = vld [vmem:[%s9519_s4 + $0x78] sm:$0xff]  ;;  %v7571_v31 = vld [vmem:[%s9519_s4 + $0xa0] sm:$0xff] }
  0xdc   : > { %2711 = vmatpush.bf16.msra.mxu0 %v7568_v4  ;;  %2786 = vmatpush.bf16.msra.mxu1 %v7574_v5  ;;  %v7585_v4 = vld [vmem:[%s9519_s4 + $0x110] sm:$0xff] }
  0xdd   : > { %2861 = vmatpush.bf16.msra.mxu2 %v7580_v7  ;;  %2936 = vmatpush.bf16.msra.mxu3 %v7592_v8  ;;  %v7597_v5 = vld [vmem:[%s9519_s4 + $0x170] sm:$0xff]  ;;  %v7603_v7 = vld [vmem:[%s9519_s4 + $0x1a0] sm:$0xff] }
  0xde   : > { %6220 = vmatmul.msk.bf16.vlgmr.msrb.gmra.mxu2 %vm579_vm0, %v8695_v9  ;;  %6245 = vmatmul.msk.bf16.vlgmr.msrb.gmra.mxu3 %vm579_vm0, %v8704_v12  ;;  %v7609_v8 = vld [vmem:[%s9519_s4 + $0x1d0] sm:$0xff] }
  0xe0   : > { %2712 = vmatpush.bf16.msra.mxu0 %v7567_v10  ;;  %2787 = vmatpush.bf16.msra.mxu1 %v7573_v11  ;;  %v1101_v55 = vpop.f32.mrf.mxu0  ;;  %v1164_v56 = vpop.f32.mrf.mxu1 }
  0xe1   : > { %2862 = vmatpush.bf16.msra.mxu2 %v7579_v14  ;;  %2937 = vmatpush.bf16.msra.mxu3 %v7591_v15  ;;  %v1105_v59 = vadd.f32 %v1101_v55, %v1042_v44  ;;  %v7584_v15 = vld [vmem:[%s9519_s4 + $0x108] sm:$0xff] }
  0xe2   : > { %v7612_v55 = vld [vmem:[%s9521_s6 + $0x8] sm:$0xff] }
  0xe3   : > { %v8787_v1 = vadd.f32 %v1164_v56, %v1105_v59  ;;  %v7622_v56 = vld [vmem:[%s9521_s6 + $0x60] sm:$0xff] }
  0xe4   : > { %2713 = vmatpush.bf16.msra.mxu0 %v7566_v60  ;;  %2788 = vmatpush.bf16.msra.mxu1 %v7572_v23  ;;  %v3206_v23 = vld [vmem:[%s9521_s6 + $0x28] sm:$0x3]  ;;  %v7611_v59 = vld [vmem:[%s9521_s6] sm:$0xff] }
  0xe5   : > { %2863 = vmatpush.bf16.msra.mxu2 %v7578_v26  ;;  %2938 = vmatpush.bf16.msra.mxu3 %v7590_v27  ;;  %v1169_v3 = vmax.f32 %v8687_v6, %v8787_v1  ;;  %v3294_v26 = vunpack.c.l.b16 %v3206_v23  ;;  %v3368_v27 = vunpack.c.l.b16 %v6605_v24  ;;  %v1837_v1 = vld [vmem:[#allocation2] sm:$0xf] }
  0xe7   : > { %v3300_v32 = vpack.c.b16 %v3294_v26, %v3294_v26 }
  0xe8   : > { %2714 = vmatpush.bf16.msra.mxu0 %v7565_v30  ;;  %2789 = vmatpush.bf16.msra.mxu1 %v7571_v31  ;;  %v1103_v13 = vpop.f32.mrf.mxu0  ;;  %v1166_v14 = vpop.f32.mrf.mxu1  ;;  %v7600_v30 = vld [vmem:[%s9519_s4 + $0x188] sm:$0xff]  ;;  %v7606_v31 = vld [vmem:[%s9519_s4 + $0x1b8] sm:$0xff] }
  0xe9   : > { %2864 = vmatpush.bf16.msra.mxu2 %v7577_v25  ;;  %2939 = vmatpush.bf16.msra.mxu3 %v7589_v33  ;;  %v8809_v10 = vpop.f32.mrf.mxu2  ;;  %v8811_v11 = vpop.f32.mrf.mxu3  ;;  %v3374_v25 = vpack.c.b16 %v3368_v27, %v3368_v27  ;;  %v7581_v33 = vld [vmem:[%s9519_s4 + $0xf0] sm:$0xff]  ;;  %v7636_v27 = vld [vmem:[%s9521_s6 + $0xdc] sm:$0xff] }
  0xea   : > { %v1299_v52 = vadd.f32 %v8811_v11, %v8809_v10 }
  0xec   : > { %2715 = vmatpush.bf16.msra.mxu0 %v7564_v39  ;;  %2790 = vmatpush.bf16.msra.mxu1 %v7570_v40  ;;  %v3310_v39 = vsel %vm3256_vm1, %v3300_v32, 0  ;;  %v3384_v40 = vsel %vm3256_vm1, %v3374_v25, 0 }
  0xed   : > { %2865 = vmatpush.bf16.msra.mxu2 %v7576_v42  ;;  %2940 = vmatpush.bf16.msra.mxu3 %v7588_v43  ;;  %v7625_v42 = vld [vmem:[%s9521_s6 + $0x78] sm:$0xff] }
  0xf0   : > { %2716 = vmatpush.bf16.msra.mxu0 %v7563_v49  ;;  %2791 = vmatpush.bf16.msra.mxu1 %v7569_v50  ;;  %v7613_v49 = vld [vmem:[%s9521_s6 + $0x10] sm:$0xff]  ;;  %v7623_v50 = vld [vmem:[%s9521_s6 + $0x68] sm:$0xff] }
  0xf1   : > { %2866 = vmatpush.bf16.msra.mxu2 %v7575_v53  ;;  %2941 = vmatpush.bf16.msra.mxu3 %v7587_v54  ;;  %v1248_v22 = vpop.f32.mrf.mxu2  ;;  %v1300_v60 = vpop.f32.mrf.mxu3  ;;  %v3638_v54 = vunpack.c.l.b16 %v6701_v48  ;;  %v7670_v48 = vld [vmem:[%s9521_s6 + $0x4c] sm:$0xff] }
  0xf3   : > { %6282 = vmatmul.msk.bf16.vlgmr.msra.gmra.mxu0 %vm579_vm0, %v8783_v63  ;;  %6319 = vmatmul.msk.bf16.vlgmr.msra.gmra.mxu1 %vm579_vm0, %v8789_v2 }
  0xf4   : > { %2985 = vmatpush.bf16.msrb.mxu0 %v7586_v57  ;;  %3046 = vmatpush.bf16.msrb.mxu1 %v7598_v58  ;;  %v3644_v58 = vpack.c.b16 %v3638_v54, %v3638_v54 }
  0xf5   : > { %3108 = vmatpush.bf16.msrb.mxu2 %v7604_v61  ;;  %3170 = vmatpush.bf16.msrb.mxu3 %v7610_v62  ;;  %v7621_v61 = vld [vmem:[%s9521_s6 + $0x58] sm:$0xff] }
  0xf6   : > { %6356 = vmatmul.msk.bf16.vlgmr.msra.gmra.mxu2 %vm579_vm0, %v8785_v0  ;;  %6405 = vmatmul.msk.bf16.vlgmr.msra.gmra.mxu3 %vm579_vm0, %v8695_v9  ;;  %v7602_v9 = vld [vmem:[%s9519_s4 + $0x198] sm:$0xff] }
  0xf8   : > { %2986 = vmatpush.bf16.msrb.mxu0 %v7585_v4  ;;  %3047 = vmatpush.bf16.msrb.mxu1 %v7597_v5  ;;  %v1362_v37 = vpop.f32.mrf.mxu0  ;;  %v1437_v38 = vpop.f32.mrf.mxu1  ;;  %v3651_v4 = vsel %vm3256_vm1, %v3644_v58, 0 }
  0xf9   : > { %3109 = vmatpush.bf16.msrb.mxu2 %v7603_v7  ;;  %3171 = vmatpush.bf16.msrb.mxu3 %v7609_v8  ;;  %v1366_v57 = vadd.f32 %v1362_v37, %v1299_v52  ;;  %v7640_v7 = vld [vmem:[%s9521_s6 + $0xfc] sm:$0xff] }
  0xfc   : > { %2987 = vmatpush.bf16.msrb.mxu0 %v7584_v15  ;;  %3048 = vmatpush.bf16.msrb.mxu1 %v7596_v16  ;;  %v7639_v15 = vld [vmem:[%s9521_s6 + $0xf4] sm:$0xff] }
  0xfd   : > { %3110 = vmatpush.bf16.msrb.mxu2 %v7602_v9  ;;  %3172 = vmatpush.bf16.msrb.mxu3 %v7608_v17  ;;  %v7791_v17 = vld [vmem:[%s9520_s5] ss:$0 sm:$0xff] }
 0x100   : > { %2988 = vmatpush.bf16.msrb.mxu0 %v7583_v18  ;;  %3049 = vmatpush.bf16.msrb.mxu1 %v7595_v19  ;;  %v1364_v45 = vpop.f32.mrf.mxu0  ;;  %v1439_v46 = vpop.f32.mrf.mxu1 }
 0x101   : > { %3111 = vmatpush.bf16.msrb.mxu2 %v7601_v20  ;;  %3173 = vmatpush.bf16.msrb.mxu3 %v7607_v21  ;;  %v1512_v43 = vpop.f32.mrf.mxu2  ;;  %v1587_v44 = vpop.f32.mrf.mxu3  ;;  %v7638_v20 = vld [vmem:[%s9521_s6 + $0xec] sm:$0xff] }
 0x104   : > { %2989 = vmatpush.bf16.msrb.mxu0 %v7582_v28  ;;  %3050 = vmatpush.bf16.msrb.mxu1 %v7594_v29 }
 0x105   : > { %3112 = vmatpush.bf16.msrb.mxu2 %v7600_v30  ;;  %3174 = vmatpush.bf16.msrb.mxu3 %v7606_v31  ;;  %v6861_v31 = vld [vmem:[%s9521_s6 + $0x54] sm:$0x3] }
 0x108   : > { %2990 = vmatpush.bf16.msrb.mxu0 %v7581_v33  ;;  %3051 = vmatpush.bf16.msrb.mxu1 %v7593_v34  ;;  %v3910_v34 = vunpack.c.l.b16 %v6861_v31 }
 0x109   : > { %3113 = vmatpush.bf16.msrb.mxu2 %v7599_v35  ;;  %3175 = vmatpush.bf16.msrb.mxu3 %v7605_v36  ;;  %v1514_v51 = vpop.f32.mrf.mxu2  ;;  %v1589_v53 = vpop.f32.mrf.mxu3 }
 0x10a   : > { %v7668_v53 = vld [vmem:[%s9521_s6 + $0x3c] sm:$0xff] }
 0x10b   : > { %6430 = vmatmul.msk.bf16.vlgmr.msrb.gmra.mxu0 %vm579_vm0, %v8704_v12  ;;  %6467 = vmatmul.msk.bf16.vlgmr.msrb.gmra.mxu1 %vm579_vm0, %v8783_v63  ;;  %v7624_v12 = vld [vmem:[%s9521_s6 + $0x70] sm:$0xff]  ;;  %v1441_v63 = vadd.f32 %v1437_v38, %v1366_v57 }
 0x10c   : > { %3314 = vmatpush.bf16.msra.mxu1 %v3310_v39  ;;  %6504 = vmatmul.msk.bf16.vlgmr.msrb.gmra.mxu2 %vm579_vm0, %v8789_v2  ;;  %v7667_v57 = vld [vmem:[%s9521_s6 + $0x34] sm:$0xff] }
 0x10d   : > { %3388 = vmatpush.bf16.msra.mxu2 %v3384_v40  ;;  %6541 = vmatmul.msk.bf16.vlgmr.msrb.gmra.mxu3 %vm579_vm0, %v8785_v0  ;;  %v1516_v8 = vadd.f32 %v1512_v43, %v1441_v63 }
 0x10f   : > { %v1517_v16 = vmax.f32 %v1169_v3, %v1516_v8  ;;  %v7637_v3 = vld [vmem:[%s9521_s6 + $0xe4] sm:$0xff] }
 0x110   : > { %3315 = vmatpush.bf16.msra.mxu1 %v7615_v41  ;;  %v1636_v62 = vpop.f32.mrf.mxu0  ;;  %v1697_v2 = vpop.f32.mrf.mxu1 }
 0x111   : > { %3389 = vmatpush.bf16.msra.mxu2 %v7625_v42  ;;  %v1637_v0 = vadd.f32 %v1636_v62, %v1587_v44  ;;  %v3916_v42 = vpack.c.b16 %v3910_v34, %v3910_v34  ;;  %v7666_v62 = vld [vmem:[%s9521_s6 + $0x2c] sm:$0xff] }
 0x113   : > { %v1701_v5 = vadd.f32 %v1697_v2, %v1637_v0  ;;  %v6552_v0 = vld [vmem:[%s9521_s6 + $0x54] sm:$0x3] }
 0x114   : > { %3316 = vmatpush.bf16.msra.mxu1 %v7614_v47  ;;  %v3926_v47 = vsel %vm3256_vm1, %v3916_v42, 0 }
 0x115   : > { %3390 = vmatpush.bf16.msra.mxu2 %v7624_v12 }
 0x118   : > { %3317 = vmatpush.bf16.msra.mxu1 %v7613_v49  ;;  %v1638_v14 = vpop.f32.mrf.mxu0  ;;  %v1699_v18 = vpop.f32.mrf.mxu1  ;;  %v7669_v49 = vld [vmem:[%s9521_s6 + $0x44] sm:$0xff] }
 0x119   : > { %3391 = vmatpush.bf16.msra.mxu2 %v7623_v50  ;;  %v1759_v10 = vpop.f32.mrf.mxu2  ;;  %v1821_v13 = vpop.f32.mrf.mxu3 }
 0x11a   : > { %v1763_v11 = vadd.f32 %v1759_v10, %v1701_v5 }
 0x11c   : > { %3318 = vmatpush.bf16.msra.mxu1 %v7612_v55  ;;  %v1825_v9 = vadd.f32 %v1821_v13, %v1763_v11  ;;  %v6712_v11 = vld [vmem:[%s9521_s6 + $0x130] sm:$0x3] }
 0x11d   : > { %3392 = vmatpush.bf16.msra.mxu2 %v7622_v56 }
 0x11e   : > { %v1826_v19 = vmax.f32 %v1517_v16, %v1825_v9  ;;  %v7620_v9 = vld [vmem:[%s9521_s6 + $0x4c] sm:$0xff] }
 0x120   : > { %3319 = vmatpush.bf16.msra.mxu1 %v7611_v59  ;;  %v1831_v21 = vadd.f32 %v7791_v17, %v1826_v19 }
 0x121   : > { %3393 = vmatpush.bf16.msra.mxu2 %v7621_v61  ;;  %v1761_v22 = vpop.f32.mrf.mxu2  ;;  %v1823_v23 = vpop.f32.mrf.mxu3 }
 0x122   : > { %v1832_v60 = vmax.f32 %v1831_v21, 0.0  ;;  %v6637_v23 = vld [vmem:[%s9521_s6 + $0xac] sm:$0x3] }
 0x124   : > { %v1833_v24 = vpack.c.bf16 %v1832_v60, %v1832_v60 }
 0x125   : > { %3655 = vmatpush.bf16.msrb.mxu2 %v3651_v4 }
 0x126   : > { %v1838_v26 = vsel %vm8932_vm4, %v1833_v24, %v1837_v1  ;;  %v7619_v24 = vld [vmem:[%s9521_s6 + $0x44] sm:$0xff] }
 0x127   : > { %1839 = vst [vmem:[#allocation2] sm:$0xf] %v1838_v26  ;;  %v7645_v26 = vld [vmem:[%s9521_s6 + $0x128] sm:$0xff] }
 0x128   : > { %v1916_v28 = vpop.f32.mrf.mxu0  ;;  %v1968_v29 = vpop.f32.mrf.mxu1 }
 0x129   : > { %3656 = vmatpush.bf16.msrb.mxu2 %v7640_v7  ;;  %v1969_v30 = vadd.f32 %v1968_v29, %v1916_v28  ;;  %v3240_v7 = vunpack.c.l.b16 %v6552_v0  ;;  %v7618_v29 = vld [vmem:[%s9521_s6 + $0x3c] sm:$0xff] }
 0x12a   : > { %v6765_v0 = vld [vmem:[%s9521_s6 + $0x15c] sm:$0x3] }
 0x12b   : > { %v3246_v10 = vpack.c.b16 %v3240_v7, %v3240_v7  ;;  %v7660_v7 = vld [vmem:[%s9521_s6 + $0x1ac] sm:$0xff] }
 0x12d   : > { %3657 = vmatpush.bf16.msrb.mxu2 %v7639_v15  ;;  %v3258_v14 = vsel %vm3256_vm1, %v3246_v10, 0  ;;  %v3589_v15 = vunpack.c.l.b16 %v6712_v11 }
 0x12e   : > { %v3193_v32 = vld [vmem:[#allocation2] sm:$0x7]  ;;  %3262 = vmatpush.bf16.msra.mxu0 %v3258_v14 }
 0x12f   : > { %6594 = vmatmul.msk.bf16.vlgmr.msra.gmra.mxu1 %vm3252_vm5, %v3193_v32  ;;  %v3338_v25 = vunpack.c.l.b16 %v3193_v32  ;;  %v3854_v54 = vld [vmem:[#allocation2] sm:$0x7]  ;;  %v3595_v17 = vpack.c.b16 %v3589_v15, %v3589_v15 }
 0x130   : > { %v1918_v38 = vpop.f32.mrf.mxu0  ;;  %v1970_v40 = vpop.f32.mrf.mxu1  ;;  %v3880_v61 = vunpack.c.l.b16 %v3854_v54  ;;  %v7683_v14 = vld [vmem:[%s9521_s6 + $0xc0] sm:$0xff] }
 0x131   : > { %3658 = vmatpush.bf16.msrb.mxu2 %v7638_v20  ;;  %v2042_v33 = vpop.f32.mrf.mxu2  ;;  %v2117_v36 = vpop.f32.mrf.mxu3  ;;  %v3339_v37 = vpack.c.b16 %v3338_v25, %v3338_v25  ;;  %v3602_v22 = vsel %vm3256_vm1, %v3595_v17, 0  ;;  %v6978_v38 = vld [vmem:[%s9521_s6 + $0xd8] sm:$0x3] }
 0x132   : > { %v2046_v35 = vadd.f32 %v2042_v33, %v1969_v30  ;;  %v3881_v63 = vpack.c.b16 %v3880_v61, %v3880_v61  ;;  %3263 = vmatpush.bf16.msra.mxu0 %v7620_v9  ;;  %3606 = vmatpush.bf16.msrb.mxu1 %v3602_v22  ;;  %v7644_v30 = vld [vmem:[%s9521_s6 + $0x120] sm:$0xff]  ;;  %v6669_v40 = vld [vmem:[%s9521_s6 + $0xd8] sm:$0x3] }
 0x133   : > { %v3343_v41 = vshll.u32 %v3339_v37, 16  ;;  %v3341_v43 = vshrl.u32 %v3339_v37, 16  ;;  %v7643_v37 = vld [vmem:[%s9521_s6 + $0x118] sm:$0xff]  ;;  %v3512_v42 = vunpack.c.l.b16 %v6669_v40  ;;  %v7659_v9 = vld [vmem:[%s9521_s6 + $0x1a4] sm:$0xff] }
 0x134   : > { %v2121_v39 = vadd.f32 %v2117_v36, %v2046_v35  ;;  %v3885_v8 = vshll.u32 %v3881_v63, 16  ;;  %v3883_v20 = vshrl.u32 %v3881_v63, 16  ;;  %v7630_v35 = vld [vmem:[%s9521_s6 + $0xa4] sm:$0xff]  ;;  %v7617_v36 = vld [vmem:[%s9521_s6 + $0x34] sm:$0xff]  ;;  %v7658_v22 = vld [vmem:[%s9521_s6 + $0x19c] sm:$0xff] }
 0x135   : > { %3659 = vmatpush.bf16.msrb.mxu2 %v7637_v3  ;;  %v3345_v44 = vrot.slane %v3343_v41, 1  ;;  %v3443_v3 = vunpack.c.l.b16 %v6637_v23  ;;  %v7629_v41 = vld [vmem:[%s9521_s6 + $0x9c] sm:$0xff]  ;;  %v7649_v23 = vld [vmem:[%s9521_s6 + $0x14c] sm:$0xff] }
 0x136   : > { %v3887_v16 = vrot.slane %v3885_v8, 1  ;;  %3264 = vmatpush.bf16.msra.mxu0 %v7619_v24  ;;  %3607 = vmatpush.bf16.msrb.mxu1 %v7645_v26  ;;  %v7626_v8 = vld [vmem:[%s9521_s6 + $0x84] sm:$0xff]  ;;  %v7681_v24 = vld [vmem:[%s9521_s6 + $0xb0] sm:$0xff] }
 0x137   : > { %v8948_v45 = vor.u32 %v3345_v44, %v3341_v43  ;;  %v3449_v28 = vpack.c.b16 %v3443_v3, %v3443_v3  ;;  %v7106_v3 = vld [vmem:[%s9521_s6 + $0x188] sm:$0x3]  ;;  %v7631_v26 = vld [vmem:[%s9521_s6 + $0xb0] sm:$0xff] }
 0x138   : > { %v8982_v60 = vor.u32 %v3887_v16, %v3883_v20  ;;  %v7633_v16 = vld [vmem:[%s9521_s6 + $0xc0] sm:$0xff]  ;;  %v7682_v20 = vld [vmem:[%s9521_s6 + $0xb8] sm:$0xff] }
 0x139   : > { %3660 = vmatpush.bf16.msrb.mxu2 %v7636_v27  ;;  %v2044_v46 = vpop.f32.mrf.mxu2  ;;  %v2119_v12 = vpop.f32.mrf.mxu3  ;;  %v3459_v25 = vsel %vm3256_vm1, %v3449_v28, 0  ;;  %v4417_v28 = vunpack.c.l.b16 %v7106_v3 }
 0x13a   : > { %6626 = vmatmul.msk.bf16.vlgmr.msra.gmra.mxu2 %vm3252_vm5, %v8948_v45  ;;  %3463 = vmatpush.bf16.msra.mxu3 %v3459_v25  ;;  %v7642_v12 = vld [vmem:[%s9521_s6 + $0x110] sm:$0xff] }
 0x13b   : > { %3265 = vmatpush.bf16.msra.mxu0 %v7618_v29  ;;  %3608 = vmatpush.bf16.msrb.mxu1 %v7644_v30  ;;  %v7657_v30 = vld [vmem:[%s9521_s6 + $0x194] sm:$0xff] }
 0x13d   : > { %3930 = vmatpush.bf16.msra.mxu2 %v3926_v47  ;;  %v7616_v47 = vld [vmem:[%s9521_s6 + $0x2c] sm:$0xff] }
 0x13e   : > { %3464 = vmatpush.bf16.msra.mxu3 %v7630_v35  ;;  %v7648_v35 = vld [vmem:[%s9521_s6 + $0x144] sm:$0xff] }
 0x13f   : > { %3266 = vmatpush.bf16.msra.mxu0 %v7617_v36  ;;  %3609 = vmatpush.bf16.msrb.mxu1 %v7643_v37  ;;  %v7656_v37 = vld [vmem:[%s9521_s6 + $0x18c] sm:$0xff] }
 0x140   : > { %v2192_v50 = vpop.f32.mrf.mxu0  ;;  %v2266_v51 = vpop.f32.mrf.mxu1 }
 0x141   : > { %3931 = vmatpush.bf16.msra.mxu2 %v7670_v48  ;;  %v8959_v52 = vadd.f32 %v2192_v50, %v2121_v39  ;;  %v4171_v39 = vunpack.c.l.b16 %v6978_v38  ;;  %v3518_v48 = vpack.c.b16 %v3512_v42, %v3512_v42  ;;  %v6829_v50 = vld [vmem:[%s9521_s6 + $0x1b4] sm:$0x3]  ;;  %v7705_v38 = vld [vmem:[%s9521_s6 + $0x180] sm:$0xff] }
 0x142   : > { %3465 = vmatpush.bf16.msra.mxu3 %v7629_v41  ;;  %v3823_v54 = vunpack.c.l.b16 %v6829_v50  ;;  %v7647_v42 = vld [vmem:[%s9521_s6 + $0x13c] sm:$0xff] }
 0x143   : > { %v4177_v46 = vpack.c.b16 %v4171_v39, %v4171_v39  ;;  %3267 = vmatpush.bf16.msra.mxu0 %v7616_v47  ;;  %3610 = vmatpush.bf16.msrb.mxu1 %v7642_v12 }
 0x145   : > { %3932 = vmatpush.bf16.msra.mxu2 %v7669_v49  ;;  %v4187_v49 = vsel %vm3256_vm1, %v4177_v46, 0 }
 0x148   : > { %v2194_v58 = vpop.f32.mrf.mxu0  ;;  %v2268_v59 = vpop.f32.mrf.mxu1 }
 0x149   : > { %v2315_v55 = vpop.f32.mrf.mxu2  ;;  %v2376_v56 = vpop.f32.mrf.mxu3  ;;  %3933 = vmatpush.bf16.msra.mxu2 %v7668_v53  ;;  %v7628_v53 = vld [vmem:[%s9521_s6 + $0x94] sm:$0xff] }
 0x14a   : > { %6754 = vmatmul.msk.bf16.vlgmr.msrb.gmra.mxu2 %vm3252_vm5, %v3193_v32  ;;  %v2316_v2 = vadd.f32 %v2315_v55, %v2266_v51  ;;  %v3528_v51 = vsel %vm3256_vm1, %v3518_v48, 0  ;;  %3466 = vmatpush.bf16.msra.mxu3 %v7628_v53  ;;  %v7641_v55 = vld [vmem:[%s9521_s6 + $0x108] sm:$0xff]  ;;  %v7635_v58 = vld [vmem:[%s9521_s6 + $0xd0] sm:$0xff] }
 0x14b   : > { %3532 = vmatpush.bf16.msrb.mxu0 %v3528_v51  ;;  %3611 = vmatpush.bf16.msrb.mxu1 %v7641_v55 }
 0x14c   : > { %v2380_v13 = vadd.f32 %v2376_v56, %v2316_v2  ;;  %v7685_v56 = vld [vmem:[%s9521_s6 + $0xd0] sm:$0xff]  ;;  %v7684_v2 = vld [vmem:[%s9521_s6 + $0xc8] sm:$0xff] }
 0x14d   : > { %3934 = vmatpush.bf16.msra.mxu2 %v7667_v57  ;;  %v3829_v57 = vpack.c.b16 %v3823_v54, %v3823_v54 }
 0x14f   : > { %v3836_v61 = vsel %vm3256_vm1, %v3829_v57, 0  ;;  %3533 = vmatpush.bf16.msrb.mxu0 %v7635_v58  ;;  %v7702_v57 = vld [vmem:[%s9521_s6 + $0x168] sm:$0xff] }
 0x150   : > { %3840 = vmatpush.bf16.msra.mxu1 %v3836_v61 }
 0x151   : > { %v2317_v4 = vpop.f32.mrf.mxu2  ;;  %v2378_v5 = vpop.f32.mrf.mxu3  ;;  %3935 = vmatpush.bf16.msra.mxu2 %v7666_v62  ;;  %v7627_v62 = vld [vmem:[%s9521_s6 + $0x8c] sm:$0xff] }
 0x152   : > { %3467 = vmatpush.bf16.msra.mxu3 %v7627_v62  ;;  %v3699_v4 = vunpack.c.l.b16 %v6765_v0  ;;  %v7634_v5 = vld [vmem:[%s9521_s6 + $0xc8] sm:$0xff]  ;;  %v3190_v0 = vld [vmem:[#allocation3] sm:$0xf] }
 0x153   : > { %3534 = vmatpush.bf16.msrb.mxu0 %v7634_v5 }
 0x154   : > { %v3705_v10 = vpack.c.b16 %v3699_v4, %v3699_v4  ;;  %3841 = vmatpush.bf16.msra.mxu1 %v7660_v7 }
 0x155   : > { %4191 = vmatpush.bf16.msrb.mxu2 %v4187_v49  ;;  %v7703_v49 = vld [vmem:[%s9521_s6 + $0x170] sm:$0xff] }
 0x156   : > { %3468 = vmatpush.bf16.msra.mxu3 %v7626_v8 }
 0x157   : > { %3535 = vmatpush.bf16.msrb.mxu0 %v7633_v16 }
 0x158   : > { %v2438_v18 = vpop.f32.mrf.mxu0  ;;  %v2500_v19 = vpop.f32.mrf.mxu1  ;;  %3842 = vmatpush.bf16.msra.mxu1 %v7659_v9 }
 0x159   : > { %v2442_v21 = vadd.f32 %v2438_v18, %v2380_v13  ;;  %4192 = vmatpush.bf16.msrb.mxu2 %v7685_v56  ;;  %v3712_v13 = vsel %vm3256_vm1, %v3705_v10, 0  ;;  %v7792_v56 = vld [vmem:[%s9520_s5] ss:$0 sm:$0xff] }
 0x15a   : > { %6882 = vmatmul.msk.bf16.vlgmr.msra.gmra.mxu2 %vm3252_vm5, %v8982_v60  ;;  %3716 = vmatpush.bf16.msrb.mxu3 %v3712_v13 }
 0x15b   : > { %v8987_v1 = vadd.f32 %v2500_v19, %v2442_v21  ;;  %v7650_v19 = vld [vmem:[%s9521_s6 + $0x154] sm:$0xff] }
 0x15c   : > { %v7632_v21 = vld [vmem:[%s9521_s6 + $0xb8] sm:$0xff]  ;;  %3843 = vmatpush.bf16.msra.mxu1 %v7658_v22  ;;  %v3195_v22 = vld [vmem:[#allocation2] sm:$0xe] }
 0x15d   : > { %v2505_v27 = vmax.f32 %v8959_v52, %v8987_v1  ;;  %4193 = vmatpush.bf16.msrb.mxu2 %v7684_v2  ;;  %3536 = vmatpush.bf16.msrb.mxu0 %v7632_v21  ;;  %v6797_v1 = vld [vmem:[%s9521_s6 + $0x188] sm:$0x3] }
 0x15e   : > { %3717 = vmatpush.bf16.msrb.mxu3 %v7650_v19  ;;  %v3761_v4 = vunpack.c.l.b16 %v6797_v1  ;;  %v7680_v19 = vld [vmem:[%s9521_s6 + $0xa4] sm:$0xff] }
 0x160   : > { %v2440_v33 = vpop.f32.mrf.mxu0  ;;  %v2502_v34 = vpop.f32.mrf.mxu1  ;;  %3844 = vmatpush.bf16.msra.mxu1 %v7657_v30  ;;  %v3767_v8 = vpack.c.b16 %v3761_v4, %v3761_v4 }
 0x161   : > { %v9005_v31 = vpop.f32.mrf.mxu2  ;;  %v9007_v32 = vpop.f32.mrf.mxu3  ;;  %4194 = vmatpush.bf16.msrb.mxu2 %v7683_v14  ;;  %v4423_v33 = vpack.c.b16 %v4417_v28, %v4417_v28  ;;  %3537 = vmatpush.bf16.msrb.mxu0 %v7631_v26  ;;  %v7654_v26 = vld [vmem:[%s9521_s6 + $0x178] sm:$0xff] }
 0x162   : > { %3718 = vmatpush.bf16.msrb.mxu3 %v7649_v23  ;;  %v2645_v36 = vadd.f32 %v9007_v32, %v9005_v31  ;;  %v7704_v31 = vld [vmem:[%s9521_s6 + $0x178] sm:$0xff]  ;;  %v3774_v13 = vsel %vm3256_vm1, %v3767_v8, 0 }
 0x163   : > { %v4430_v34 = vsel %vm3256_vm1, %v4423_v33, 0  ;;  %v7679_v28 = vld [vmem:[%s9521_s6 + $0x9c] sm:$0xff] }
 0x164   : > { %3845 = vmatpush.bf16.msra.mxu1 %v7656_v37  ;;  %v7653_v37 = vld [vmem:[%s9521_s6 + $0x170] sm:$0xff] }
 0x165   : > { %4195 = vmatpush.bf16.msrb.mxu2 %v7682_v20 }
 0x166   : > { %3719 = vmatpush.bf16.msrb.mxu3 %v7648_v35  ;;  %v6914_v35 = vld [vmem:[%s9521_s6 + $0x80] sm:$0x3] }
 0x169   : > { %v2594_v43 = vpop.f32.mrf.mxu2  ;;  %v2646_v44 = vpop.f32.mrf.mxu3  ;;  %4196 = vmatpush.bf16.msrb.mxu2 %v7681_v24 }
 0x16a   : > { %3720 = vmatpush.bf16.msrb.mxu3 %v7647_v42  ;;  %v7646_v44 = vld [vmem:[%s9521_s6 + $0x134] sm:$0xff]  ;;  %v4035_v42 = vunpack.c.l.b16 %v6914_v35 }
 0x16d   : > { %4434 = vmatpush.bf16.msra.mxu2 %v4430_v34 }
 0x16e   : > { %3721 = vmatpush.bf16.msrb.mxu3 %v7646_v44  ;;  %v7677_v44 = vld [vmem:[%s9521_s6 + $0x8c] sm:$0xff] }
 0x170   : > { %v2718_v59 = vpop.f32.mrf.mxu0  ;;  %v9055_v63 = vpop.f32.mrf.mxu1 }
 0x171   : > { %v2722_v39 = vadd.f32 %v2718_v59, %v2645_v36  ;;  %4435 = vmatpush.bf16.msra.mxu2 %v7705_v38  ;;  %v3855_v36 = vld [vmem:[#allocation2] sm:$0xe]  ;;  %v7678_v38 = vld [vmem:[%s9521_s6 + $0x94] sm:$0xff] }
 0x173   : > { %v2797_v32 = vadd.f32 %v9055_v63, %v2722_v39  ;;  %v7701_v63 = vld [vmem:[%s9521_s6 + $0x160] sm:$0xff]  ;;  %v7074_v39 = vld [vmem:[%s9521_s6 + $0x15c] sm:$0x3] }
 0x175   : > { %4436 = vmatpush.bf16.msra.mxu2 %v7704_v31  ;;  %v4356_v31 = vunpack.c.l.b16 %v7074_v39 }
 0x178   : > { %v2720_v17 = vpop.f32.mrf.mxu0  ;;  %v2795_v18 = vpop.f32.mrf.mxu1 }
 0x179   : > { %v2868_v11 = vpop.f32.mrf.mxu2  ;;  %v2943_v15 = vpop.f32.mrf.mxu3  ;;  %4437 = vmatpush.bf16.msra.mxu2 %v7703_v49  ;;  %v7655_v18 = vld [vmem:[%s9521_s6 + $0x180] sm:$0xff] }
 0x17a   : > { %v2872_v46 = vadd.f32 %v2868_v11, %v2797_v32  ;;  %v3867_v11 = vld [vmem:[%s9521_s6 + $0x28] sm:$0x3] }
 0x17b   : > { %v3962_v17 = vunpack.c.l.b16 %v3867_v11  ;;  %v7652_v32 = vld [vmem:[%s9521_s6 + $0x168] sm:$0xff] }
 0x17c   : > { %v2873_v54 = vmax.f32 %v2505_v27, %v2872_v46  ;;  %v6946_v27 = vld [vmem:[%s9521_s6 + $0xac] sm:$0x3]  ;;  %v7698_v11 = vld [vmem:[%s9521_s6 + $0x144] sm:$0xff] }
 0x17d   : > { %4438 = vmatpush.bf16.msra.mxu2 %v7702_v57  ;;  %v4103_v5 = vunpack.c.l.b16 %v6946_v27  ;;  %v3968_v24 = vpack.c.b16 %v3962_v17, %v3962_v17  ;;  %v7674_v27 = vld [vmem:[%s9521_s6 + $0x70] sm:$0xff] }
 0x17f   : > { %v4109_v10 = vpack.c.b16 %v4103_v5, %v4103_v5  ;;  %v3978_v34 = vsel %vm3256_vm1, %v3968_v24, 0 }
 0x181   : > { %v2870_v29 = vpop.f32.mrf.mxu2  ;;  %v2945_v25 = vpop.f32.mrf.mxu3  ;;  %4439 = vmatpush.bf16.msra.mxu2 %v7701_v63  ;;  %v4119_v14 = vsel %vm3256_vm1, %v4109_v10, 0 }
 0x182   : > { %v3488_v25 = vunpack.c.l.b16 %v3195_v22  ;;  %v7696_v22 = vld [vmem:[%s9521_s6 + $0x134] sm:$0xff] }
 0x188   : > { %v2992_v40 = vpop.f32.mrf.mxu0  ;;  %v3053_v41 = vpop.f32.mrf.mxu1 }
 0x189   : > { %v2993_v43 = vadd.f32 %v2992_v40, %v2943_v15  ;;  %v3489_v40 = vpack.c.b16 %v3488_v25, %v3488_v25 }
 0x18b   : > { %v3057_v47 = vadd.f32 %v3053_v41, %v2993_v43  ;;  %v7665_v41 = vld [vmem:[%s9521_s6 + $0x20] sm:$0xff]  ;;  %v4079_v43 = vunpack.c.l.b16 %v3855_v36  ;;  %v3490_v46 = vrot.slane %v3489_v40, 1  ;;  %v7689_v36 = vld [vmem:[%s9521_s6 + $0xf4] sm:$0xff]  ;;  %v7688_v40 = vld [vmem:[%s9521_s6 + $0xec] sm:$0xff] }
 0x18d   : > { %v4080_v49 = vpack.c.b16 %v4079_v43, %v4079_v43 }
 0x18f   : > { %v3115_v12 = vpop.f32.mrf.mxu2  ;;  %v4081_v57 = vrot.slane %v4080_v49, 1 }
 0x190   : > { %v3177_v48 = vpop.f32.mrf.mxu3  ;;  %v3119_v50 = vadd.f32 %v3115_v12, %v3057_v47  ;;  %v2994_v51 = vpop.f32.mrf.mxu0  ;;  %v7664_v47 = vld [vmem:[%s9521_s6 + $0x18] sm:$0xff] }
 0x191   : > { %v3055_v53 = vpop.f32.mrf.mxu1  ;;  %v7651_v51 = vld [vmem:[%s9521_s6 + $0x160] sm:$0xff] }
 0x192   : > { %v3181_v55 = vadd.f32 %v3177_v48, %v3119_v50  ;;  %v4041_v48 = vpack.c.b16 %v4035_v42, %v4035_v42  ;;  %v4362_v50 = vpack.c.b16 %v4356_v31, %v4356_v31  ;;  %v7676_v53 = vld [vmem:[%s9521_s6 + $0x84] sm:$0xff] }
 0x193   : > { %v7687_v42 = vld [vmem:[%s9521_s6 + $0xe4] sm:$0xff] }
 0x194   : > { %v3182_v58 = vmax.f32 %v2873_v54, %v3181_v55  ;;  %v7021_v54 = vld [vmem:[%s9521_s6 + $0x130] sm:$0x3]  ;;  %v4051_v55 = vsel %vm3256_vm1, %v4041_v48, 0  ;;  %v7709_v31 = vld [vmem:[%s9521_s6 + $0x1a4] sm:$0xff] }
 0x196   : > { %v3187_v59 = vadd.f32 %v7792_v56, %v3182_v58  ;;  %v7663_v56 = vld [vmem:[%s9521_s6 + $0x10] sm:$0xff]  ;;  %v4369_v58 = vsel %vm3256_vm1, %v4362_v50, 0 }
 0x197   : > { %v3117_v61 = vpop.f32.mrf.mxu2 }
 0x198   : > { %v3179_v62 = vpop.f32.mrf.mxu3  ;;  %v3188_v52 = vmax.f32 %v3187_v59, 0.0  ;;  %v4247_v59 = vunpack.c.l.b16 %v7021_v54  ;;  %v7675_v61 = vld [vmem:[%s9521_s6 + $0x78] sm:$0xff] }
 0x199   : > { %v7662_v62 = vld [vmem:[%s9521_s6 + $0x8] sm:$0xff] }
 0x19a   : > { %v3189_v2 = vpack.c.bf16 %v3188_v52, %v3188_v52  ;;  %v7700_v52 = vld [vmem:[%s9521_s6 + $0x154] sm:$0xff]  ;;  %v4253_v1 = vpack.c.b16 %v4247_v59, %v4247_v59 }
 0x19c   : > { %v3191_v7 = vsel %vm8932_vm4, %v3189_v2, %v3190_v0  ;;  %v7661_v0 = vld [vmem:[%s9521_s6] sm:$0xff]  ;;  %v7699_v2 = vld [vmem:[%s9521_s6 + $0x14c] sm:$0xff]  ;;  %v4260_v5 = vsel %vm3256_vm1, %v4253_v1, 0 }
 0x19d   : > { %3192 = vst [vmem:[#allocation3] sm:$0xf] %v3191_v7  ;;  %v7673_v7 = vld [vmem:[%s9521_s6 + $0x68] sm:$0xff] }
 0x1a4   : > { %v3194_v15 = vld [vmem:[#allocation3] sm:$0x7] }
 0x1a5   : > { %v3856_v16 = vld [vmem:[#allocation3] sm:$0xe]  ;;  %6573 = vmatmul.msk.bf16.vlgmr.msra.gmra.mxu0 %vm3252_vm5, %v3194_v15  ;;  %v3413_v9 = vunpack.c.l.b16 %v3194_v15  ;;  %6733 = vmatmul.msk.bf16.vlgmr.msrb.gmra.mxu1 %vm3252_vm5, %v3194_v15 }
 0x1a6   : > { %v4147_v6 = vunpack.c.l.b16 %v3856_v16  ;;  %3778 = vmatpush.bf16.msra.mxu0 %v3774_v13  ;;  %4123 = vmatpush.bf16.msrb.mxu1 %v4119_v14  ;;  %v9247_v4 = vld [vmem:[#allocation3] sm:$0x7]  ;;  %v7695_v13 = vld [vmem:[%s9521_s6 + $0x128] sm:$0xff] }
 0x1a7   : > { %v3414_v20 = vpack.c.b16 %v3413_v9, %v3413_v9  ;;  %v4005_v8 = vunpack.c.l.b16 %v9247_v4  ;;  %v7672_v15 = vld [vmem:[%s9521_s6 + $0x60] sm:$0xff] }
 0x1a8   : > { %v9167_v21 = vpack.c.b16 %v4147_v6, %v4147_v6  ;;  %v7697_v9 = vld [vmem:[%s9521_s6 + $0x13c] sm:$0xff] }
 0x1a9   : > { %v3418_v23 = vshll.u32 %v3414_v20, 16  ;;  %v3416_v29 = vshrl.u32 %v3414_v20, 16  ;;  %v4006_v16 = vpack.c.b16 %v4005_v8, %v4005_v8  ;;  %v7694_v6 = vld [vmem:[%s9521_s6 + $0x120] sm:$0xff] }
 0x1aa   : > { %v4149_v3 = vrot.slane %v9167_v21, 1  ;;  %3779 = vmatpush.bf16.msra.mxu0 %v7655_v18  ;;  %4124 = vmatpush.bf16.msrb.mxu1 %v7680_v19  ;;  %v7671_v18 = vld [vmem:[%s9521_s6 + $0x58] sm:$0xff] }
 0x1ab   : > { %v3420_v30 = vrot.slane %v3418_v23, 1  ;;  %v4010_v19 = vshll.u32 %v4006_v16, 16  ;;  %v7138_v23 = vld [vmem:[%s9521_s6 + $0x1b4] sm:$0x3]  ;;  %v4008_v25 = vshrl.u32 %v4006_v16, 16 }
 0x1ac   : > { %6999 = vmatmul.msk.bf16.vlgmr.msrb.gmra.mxu2 %vm3252_vm5, %v4149_v3  ;;  %v9208_v12 = vpop.f32.mrf.mxu1 }
 0x1ad   : > { %v9179_v33 = vor.u32 %v3420_v30, %v3416_v29  ;;  %v4478_v29 = vunpack.c.l.b16 %v7138_v23  ;;  %v7690_v30 = vld [vmem:[%s9521_s6 + $0xfc] sm:$0xff]  ;;  %v7725_v23 = vld [vmem:[%s9523_s8 + $0x70] sm:$0xff] }
 0x1ae   : > { %3780 = vmatpush.bf16.msra.mxu0 %v7654_v26  ;;  %4125 = vmatpush.bf16.msrb.mxu1 %v7679_v28  ;;  %v7693_v26 = vld [vmem:[%s9521_s6 + $0x118] sm:$0xff]  ;;  %v4012_v28 = vrot.slane %v4010_v19, 1 }
 0x1af   : > { %6658 = vmatmul.msk.bf16.vlgmr.msra.gmra.mxu3 %vm3252_vm5, %v9179_v33  ;;  %v4484_v35 = vpack.c.b16 %v4478_v29, %v4478_v29  ;;  %4695 = vmatpush.bf16.msrb.mxu2 %v7725_v23  ;;  %v7740_v23 = vld [vmem:[%s9525_s10 + $0x20] sm:$0xff] }
 0x1b0   : > { %3982 = vmatpush.bf16.msra.mxu3 %v3978_v34  ;;  %v4013_v34 = vor.u32 %v4012_v28, %v4008_v25  ;;  %v7713_v28 = vld [vmem:[%s9523_s8 + $0x10] sm:$0xff]  ;;  %v7719_v25 = vld [vmem:[%s9523_s8 + $0x40] sm:$0xff] }
 0x1b1   : > { %v4491_v39 = vsel %vm3256_vm1, %v4484_v35, 0  ;;  %v7718_v35 = vld [vmem:[%s9523_s8 + $0x38] sm:$0xff] }
 0x1b2   : > { %3781 = vmatpush.bf16.msra.mxu0 %v7653_v37  ;;  %4126 = vmatpush.bf16.msrb.mxu1 %v7678_v38  ;;  %v7691_v38 = vld [vmem:[%s9521_s6 + $0x108] sm:$0xff] }
 0x1b4   : > { %3983 = vmatpush.bf16.msra.mxu3 %v7665_v41  ;;  %v3323_v63 = vpop.f32.mrf.mxu1  ;;  %v7710_v41 = vld [vmem:[%s9521_s6 + $0x1ac] sm:$0xff] }
 0x1b5   : > { %6690 = vmatmul.msk.bf16.vlgmr.msrb.gmra.mxu0 %vm3252_vm5, %v3490_v46  ;;  %6850 = vmatmul.msk.bf16.vlgmr.msra.gmra.mxu1 %vm3252_vm5, %v3490_v46 }
 0x1b6   : > { %3782 = vmatpush.bf16.msra.mxu0 %v7652_v32  ;;  %4127 = vmatpush.bf16.msrb.mxu1 %v7677_v44  ;;  %v7686_v32 = vld [vmem:[%s9521_s6 + $0xdc] sm:$0xff] }
 0x1b7   : > { %v7708_v44 = vld [vmem:[%s9521_s6 + $0x19c] sm:$0xff] }
 0x1b8   : > { %3984 = vmatpush.bf16.msra.mxu3 %v7664_v47  ;;  %v7707_v47 = vld [vmem:[%s9521_s6 + $0x194] sm:$0xff] }
 0x1ba   : > { %3783 = vmatpush.bf16.msra.mxu0 %v7651_v51  ;;  %4128 = vmatpush.bf16.msrb.mxu1 %v7676_v53 }
 0x1bc   : > { %7127 = vmatmul.msk.bf16.vlgmr.msra.gmra.mxu2 %vm3252_vm5, %v4081_v57  ;;  %3985 = vmatpush.bf16.msra.mxu3 %v7663_v56 }
 0x1bd   : > { %v9257_v10 = vpop.f32.mrf.mxu2 }
 0x1be   : > { %4055 = vmatpush.bf16.msrb.mxu0 %v4051_v55  ;;  %4373 = vmatpush.bf16.msra.mxu1 %v4369_v58 }
 0x1bf   : > { %6786 = vmatmul.msk.bf16.vlgmr.msrb.gmra.mxu3 %vm3252_vm5, %v8948_v45  ;;  %v7010_v45 = vld [vmem:[%s9521_s6 + $0x104] sm:$0x3] }
 0x1c0   : > { %3986 = vmatpush.bf16.msra.mxu3 %v7662_v62  ;;  %v4296_v14 = vunpack.c.l.b16 %v7010_v45 }
 0x1c2   : > { %4056 = vmatpush.bf16.msrb.mxu0 %v7675_v61  ;;  %4374 = vmatpush.bf16.msra.mxu1 %v7700_v52  ;;  %v4302_v17 = vpack.c.b16 %v4296_v14, %v4296_v14 }
 0x1c4   : > { %3987 = vmatpush.bf16.msra.mxu3 %v7661_v0  ;;  %v4309_v24 = vsel %vm3256_vm1, %v4302_v17, 0 }
 0x1c5   : > { %6818 = vmatmul.msk.bf16.vlgmr.msra.gmra.mxu0 %vm3252_vm5, %v9179_v33  ;;  %6967 = vmatmul.msk.bf16.vlgmr.msrb.gmra.mxu1 %vm3252_vm5, %v4081_v57  ;;  %v3397_v20 = vpop.f32.mrf.mxu2  ;;  %v7692_v33 = vld [vmem:[%s9521_s6 + $0x110] sm:$0xff] }
 0x1c6   : > { %4057 = vmatpush.bf16.msrb.mxu0 %v7674_v27  ;;  %4375 = vmatpush.bf16.msra.mxu1 %v7699_v2  ;;  %v7720_v20 = vld [vmem:[%s9523_s8 + $0x48] sm:$0xff] }
 0x1c8   : > { %4264 = vmatpush.bf16.msrb.mxu3 %v4260_v5 }
 0x1ca   : > { %4058 = vmatpush.bf16.msrb.mxu0 %v7673_v7  ;;  %4376 = vmatpush.bf16.msra.mxu1 %v7698_v11 }
 0x1cc   : > { %4265 = vmatpush.bf16.msrb.mxu3 %v7695_v13 }
 0x1cd   : > { %v3662_v37 = vpop.f32.mrf.mxu2 }
 0x1ce   : > { %4059 = vmatpush.bf16.msrb.mxu0 %v7672_v15  ;;  %4377 = vmatpush.bf16.msra.mxu1 %v7697_v9  ;;  %v7715_v9 = vld [vmem:[%s9523_s8 + $0x20] sm:$0xff] }
 0x1cf   : > { %6903 = vmatmul.msk.bf16.vlgmr.msra.gmra.mxu3 %vm3252_vm5, %v9247_v4 }
 0x1d0   : > { %4266 = vmatpush.bf16.msrb.mxu3 %v7694_v6 }
 0x1d2   : > { %4060 = vmatpush.bf16.msrb.mxu0 %v7671_v18  ;;  %4378 = vmatpush.bf16.msra.mxu1 %v7696_v22  ;;  %v7714_v18 = vld [vmem:[%s9523_s8 + $0x18] sm:$0xff] }
 0x1d4   : > { %4267 = vmatpush.bf16.msrb.mxu3 %v7693_v26 }
 0x1d5   : > { %6935 = vmatmul.msk.bf16.vlgmr.msrb.gmra.mxu0 %vm3252_vm5, %v4013_v34  ;;  %7095 = vmatmul.msk.bf16.vlgmr.msra.gmra.mxu1 %vm3252_vm5, %v4013_v34  ;;  %v3664_v43 = vpop.f32.mrf.mxu2  ;;  %v7712_v34 = vld [vmem:[%s9523_s8 + $0x8] sm:$0xff] }
 0x1d6   : > { %4313 = vmatpush.bf16.msra.mxu0 %v4309_v24  ;;  %v7729_v43 = vld [vmem:[%s9523_s8 + $0x90] sm:$0xff] }
 0x1d8   : > { %4268 = vmatpush.bf16.msrb.mxu3 %v7692_v33  ;;  %v7724_v33 = vld [vmem:[%s9523_s8 + $0x68] sm:$0xff] }
 0x1d9   : > { %4696 = vmatpush.bf16.msrb.mxu2 %v7724_v33 }
 0x1da   : > { %4314 = vmatpush.bf16.msra.mxu0 %v7690_v30 }
 0x1dc   : > { %4269 = vmatpush.bf16.msrb.mxu3 %v7691_v38  ;;  %v7730_v38 = vld [vmem:[%s9523_s8 + $0x98] sm:$0xff] }
 0x1dd   : > { %v3937_v46 = vpop.f32.mrf.mxu2 }
 0x1de   : > { %4315 = vmatpush.bf16.msra.mxu0 %v7689_v36  ;;  %v7723_v36 = vld [vmem:[%s9523_s8 + $0x60] sm:$0xff] }
 0x1df   : > { %7042 = vmatmul.msk.bf16.vlgmr.msrb.gmra.mxu3 %vm3252_vm5, %v8982_v60  ;;  %v7706_v60 = vld [vmem:[%s9521_s6 + $0x18c] sm:$0xff]  ;;  %4697 = vmatpush.bf16.msrb.mxu2 %v7723_v36  ;;  %v7748_v36 = vld [vmem:[%s9527_s12 + $0x20] sm:$0xff] }
 0x1e0   : > { %4495 = vmatpush.bf16.msra.mxu3 %v4491_v39 }
 0x1e2   : > { %4316 = vmatpush.bf16.msra.mxu0 %v7688_v40  ;;  %v7717_v40 = vld [vmem:[%s9523_s8 + $0x30] sm:$0xff] }
 0x1e4   : > { %4496 = vmatpush.bf16.msra.mxu3 %v7710_v41  ;;  %v7722_v41 = vld [vmem:[%s9523_s8 + $0x58] sm:$0xff] }
 0x1e5   : > { %v3939_v48 = vpop.f32.mrf.mxu2  ;;  %4698 = vmatpush.bf16.msrb.mxu2 %v7722_v41 }
 0x1e6   : > { %4317 = vmatpush.bf16.msra.mxu0 %v7687_v42 }
 0x1e8   : > { %4497 = vmatpush.bf16.msra.mxu3 %v7709_v31  ;;  %v7716_v31 = vld [vmem:[%s9523_s8 + $0x28] sm:$0xff] }
 0x1ea   : > { %4318 = vmatpush.bf16.msra.mxu0 %v7686_v32  ;;  %v7721_v32 = vld [vmem:[%s9523_s8 + $0x50] sm:$0xff] }
 0x1eb   : > { %4699 = vmatpush.bf16.msrb.mxu2 %v7721_v32 }
 0x1ec   : > { %4498 = vmatpush.bf16.msra.mxu3 %v7708_v44  ;;  %v7735_v44 = vld [vmem:[%s9523_s8 + $0xc0] sm:$0xff] }
 0x1ed   : > { %7063 = vmatmul.msk.bf16.vlgmr.msra.gmra.mxu0 %vm3252_vm5, %v9247_v4 }
 0x1ee   : > { %4587 = vmatpush.bf16.msrb.mxu0 %v7720_v20  ;;  %v7742_v20 = vld [vmem:[%s9525_s10 + $0x30] sm:$0xff] }
 0x1f0   : > { %4499 = vmatpush.bf16.msra.mxu3 %v7707_v47 }
 0x1f2   : > { %4588 = vmatpush.bf16.msrb.mxu0 %v7719_v25  ;;  %v7750_v25 = vld [vmem:[%s9527_s12 + $0x30] sm:$0xff] }
 0x1f4   : > { %4500 = vmatpush.bf16.msra.mxu3 %v7706_v60 }
 0x1f6   : > { %4589 = vmatpush.bf16.msrb.mxu0 %v7718_v35  ;;  %v7749_v35 = vld [vmem:[%s9527_s12 + $0x28] sm:$0xff] }
 0x1f7   : > { %7159 = vmatmul.msk.bf16.vlgmr.msra.gmra.mxu3 %vm3252_vm5, %v4149_v3 }
 0x1f8   : > { %4633 = vmatpush.bf16.msrb.mxu3 %v7715_v9 }
 0x1fa   : > { %4590 = vmatpush.bf16.msrb.mxu0 %v7717_v40  ;;  %v7747_v40 = vld [vmem:[%s9527_s12 + $0x18] sm:$0xff] }
 0x1fc   : > { %4634 = vmatpush.bf16.msrb.mxu3 %v7714_v18 }
 0x1fe   : > { %4591 = vmatpush.bf16.msrb.mxu0 %v7716_v31 }
 0x200   : > { %4635 = vmatpush.bf16.msrb.mxu3 %v7713_v28  ;;  %v7737_v28 = vld [vmem:[%s9525_s10 + $0x8] sm:$0xff] }
 0x202   : > { %4824 = vmatpush.bf16.msra.mxu0 %v7735_v44 }
 0x204   : > { %4636 = vmatpush.bf16.msrb.mxu3 %v7712_v34 }
 0x222   : > { %v3269_v49 = vpop.f32.mrf.mxu0  ;;  %v3613_v50 = vpop.f32.mrf.mxu1 }
 0x223   : > { %v3322_v63 = vadd.f32 %v9208_v12, %v3269_v49  ;;  %v3663_v1 = vadd.f32 %v3662_v37, %v3613_v50  ;;  %v7711_v37 = vld [vmem:[%s9523_s8] sm:$0xff]  ;;  %v7734_v49 = vld [vmem:[%s9523_s8 + $0xb8] sm:$0xff] }
 0x224   : > { %4637 = vmatpush.bf16.msrb.mxu3 %v7711_v37  ;;  %v7727_v50 = vld [vmem:[%s9523_s8 + $0x80] sm:$0xff]  ;;  %4825 = vmatpush.bf16.msra.mxu0 %v7734_v49 }
 0x225   : > { %v3399_v21 = vadd.f32 %v9257_v10, %v3322_v63 }
 0x228   : > { %4761 = vmatpush.bf16.msra.mxu3 %v7730_v38 }
 0x22a   : > { %v3271_v51 = vpop.f32.mrf.mxu0  ;;  %v3615_v53 = vpop.f32.mrf.mxu1 }
 0x22b   : > { %v7733_v53 = vld [vmem:[%s9523_s8 + $0xb0] sm:$0xff] }
 0x22c   : > { %4762 = vmatpush.bf16.msra.mxu3 %v7729_v43  ;;  %4826 = vmatpush.bf16.msra.mxu0 %v7733_v53 }
 0x22f   : > { %v4198_v54 = vpop.f32.mrf.mxu2 }
 0x232   : > { %v3470_v55 = vpop.f32.mrf.mxu3  ;;  %v3539_v56 = vpop.f32.mrf.mxu0 }
 0x233   : > { %v3847_v57 = vpop.f32.mrf.mxu1  ;;  %v3474_v0 = vadd.f32 %v3470_v55, %v3399_v21 }
 0x235   : > { %v3543_v7 = vadd.f32 %v3539_v56, %v3474_v0  ;;  %v7732_v56 = vld [vmem:[%s9523_s8 + $0xa8] sm:$0xff] }
 0x236   : > { %4827 = vmatpush.bf16.msra.mxu0 %v7732_v56  ;;  %v4855_v56 = vld [vmem:[%s9526_s11] sm:$0x1] }
 0x237   : > { %v4200_v58 = vpop.f32.mrf.mxu2 }
 0x23a   : > { %v3472_v59 = vpop.f32.mrf.mxu3  ;;  %v3541_v61 = vpop.f32.mrf.mxu0 }
 0x23b   : > { %v3849_v62 = vpop.f32.mrf.mxu1  ;;  %v7793_v59 = vld [vmem:[%s9522_s7] ss:$0 sm:$0xff] }
 0x23c   : > { %v7731_v62 = vld [vmem:[%s9523_s8 + $0xa0] sm:$0xff] }
 0x23d   : > { %4828 = vmatpush.bf16.msra.mxu0 %v7731_v62 }
 0x23f   : > { %v9339_v52 = vpop.f32.mrf.mxu2 }
 0x242   : > { %v3723_v3 = vpop.f32.mrf.mxu3  ;;  %v3785_v27 = vpop.f32.mrf.mxu0 }
 0x243   : > { %v3727_v2 = vadd.f32 %v3723_v3, %v3663_v1  ;;  %v4130_v4 = vpop.f32.mrf.mxu1  ;;  %v4518_v1 = vld [vmem:[#allocation4] sm:$0x7] }
 0x245   : > { %v3789_v5 = vadd.f32 %v3785_v27, %v3727_v2  ;;  %v7743_v27 = vld [vmem:[%s9525_s10 + $0x38] sm:$0xff] }
 0x246   : > { %4904 = vmatpush.bf16.msrb.mxu1 %v7743_v27 }
 0x247   : > { %v4443_v45 = vpop.f32.mrf.mxu2  ;;  %v3851_v8 = vadd.f32 %v3847_v57, %v3789_v5 }
 0x249   : > { %v3852_v11 = vmax.f32 %v3543_v7, %v3851_v8 }
 0x24a   : > { %v3725_v13 = vpop.f32.mrf.mxu3  ;;  %v3787_v14 = vpop.f32.mrf.mxu0  ;;  %4905 = vmatpush.bf16.msrb.mxu1 %v7742_v20 }
 0x24b   : > { %v4132_v15 = vpop.f32.mrf.mxu1 }
 0x252   : > { %v3989_v16 = vpop.f32.mrf.mxu3  ;;  %v4062_v12 = vpop.f32.mrf.mxu0 }
 0x253   : > { %v3990_v10 = vadd.f32 %v3989_v16, %v3937_v46  ;;  %v4380_v6 = vpop.f32.mrf.mxu1  ;;  %v7728_v46 = vld [vmem:[%s9523_s8 + $0x88] sm:$0xff] }
 0x254   : > { %4763 = vmatpush.bf16.msra.mxu3 %v7728_v46 }
 0x255   : > { %v4066_v17 = vadd.f32 %v4062_v12, %v3990_v10 }
 0x257   : > { %v4134_v19 = vadd.f32 %v4130_v4, %v4066_v17 }
 0x258   : > { %4764 = vmatpush.bf16.msra.mxu3 %v7727_v50 }
 0x259   : > { %v4202_v22 = vadd.f32 %v4198_v54, %v4134_v19  ;;  %v7726_v54 = vld [vmem:[%s9523_s8 + $0x78] sm:$0xff] }
 0x25a   : > { %v3991_v24 = vpop.f32.mrf.mxu3  ;;  %v4064_v26 = vpop.f32.mrf.mxu0 }
 0x25b   : > { %v4382_v29 = vpop.f32.mrf.mxu1  ;;  %v4203_v30 = vmax.f32 %v3852_v11, %v4202_v22  ;;  %v7741_v22 = vld [vmem:[%s9525_s10 + $0x28] sm:$0xff]  ;;  %v7739_v24 = vld [vmem:[%s9525_s10 + $0x18] sm:$0xff]  ;;  %v7738_v26 = vld [vmem:[%s9525_s10 + $0x10] sm:$0xff] }
 0x25c   : > { %4765 = vmatpush.bf16.msra.mxu3 %v7726_v54  ;;  %4906 = vmatpush.bf16.msrb.mxu1 %v7741_v22  ;;  %v7736_v29 = vld [vmem:[%s9525_s10] sm:$0xff]  ;;  %v7745_v54 = vld [vmem:[%s9527_s12 + $0x8] sm:$0xff] }
 0x260   : > { %4907 = vmatpush.bf16.msrb.mxu1 %v7740_v23 }
 0x262   : > { %v4271_v39 = vpop.f32.mrf.mxu3 }
 0x264   : > { %4908 = vmatpush.bf16.msrb.mxu1 %v7739_v24 }
 0x268   : > { %4909 = vmatpush.bf16.msrb.mxu1 %v7738_v26 }
 0x26a   : > { %v4320_v42 = vpop.f32.mrf.mxu0  ;;  %v4273_v47 = vpop.f32.mrf.mxu3 }
 0x26b   : > { %v4321_v60 = vadd.f32 %v4320_v42, %v4271_v39  ;;  %v7746_v42 = vld [vmem:[%s9527_s12 + $0x10] sm:$0xff]  ;;  %v4835_v47 = vld [vmem:[%s9524_s9] sm:$0x1] }
 0x26c   : > { %4910 = vmatpush.bf16.msrb.mxu1 %v7737_v28 }
 0x26d   : > { %v4384_v51 = vadd.f32 %v4380_v6, %v4321_v60 }
 0x26f   : > { %v4445_v55 = vadd.f32 %v9339_v52, %v4384_v51 }
 0x270   : > { %4911 = vmatpush.bf16.msrb.mxu1 %v7736_v29 }
 0x272   : > { %v4322_v48 = vpop.f32.mrf.mxu0 }
 0x27a   : > { %v4502_v57 = vpop.f32.mrf.mxu3 }
 0x27b   : > { %v4506_v58 = vadd.f32 %v4502_v57, %v4445_v55  ;;  %v7744_v55 = vld [vmem:[%s9527_s12] sm:$0xff] }
 0x27d   : > { %v4507_v61 = vmax.f32 %v4203_v30, %v4506_v58  ;;  %v7751_v30 = vld [vmem:[%s9527_s12 + $0x38] sm:$0xff] }
 0x27e   : > { %4984 = vmatpush.bf16.msra.mxu2 %v7751_v30 }
 0x27f   : > { %v4512_v63 = vadd.f32 %v7793_v59, %v4507_v61 }
 0x281   : > { %v4513_v52 = vmax.f32 %v4512_v63, 0.0  ;;  %v4935_v63 = vld [vmem:[%s9528_s13] sm:$0x1] }
 0x282   : > { %v4504_v21 = vpop.f32.mrf.mxu3  ;;  %4985 = vmatpush.bf16.msra.mxu2 %v7750_v25 }
 0x283   : > { %v4514_v3 = vpack.c.bf16 %v4513_v52, %v4513_v52 }
 0x285   : > { %v4519_v0 = vsel %vm4517_vm8, %v4514_v3, %v4518_v1 }
 0x286   : > { %4520 = vst [vmem:[#allocation4] sm:$0x7] %v4519_v0  ;;  %4986 = vmatpush.bf16.msra.mxu2 %v7749_v35 }
 0x28a   : > { %4987 = vmatpush.bf16.msra.mxu2 %v7748_v36 }
 0x28d   : > { %v4521_v2 = vld [vmem:[#allocation4] sm:$0x1]  ;;  %v4643_v5 = vld [vmem:[#allocation4] sm:$0x2]  ;;  %v4772_v9 = vld [vmem:[#allocation4] sm:$0x4] }
 0x28e   : > { %v4532_v4 = vld [vmem:[#allocation4] sm:$0x1]  ;;  %7211 = vmatmul.msk.bf16.vlgmr.msrb.gmra.mxu3 %vm4580_vm9, %v4521_v2  ;;  %v4656_v7 = vunpack.c.l.b16 %v4643_v5  ;;  %v4706_v8 = vld [vmem:[#allocation4] sm:$0x2]  ;;  %v4785_v6 = vunpack.c.l.b16 %v4772_v9  ;;  %4988 = vmatpush.bf16.msra.mxu2 %v7747_v40 }
 0x28f   : > { %v4545_v45 = vunpack.c.l.b16 %v4532_v4  ;;  %v4719_v14 = vunpack.c.l.b16 %v4706_v8 }
 0x290   : > { %v4657_v13 = vpack.c.b16 %v4656_v7, %v4656_v7  ;;  %v4786_v18 = vpack.c.b16 %v4785_v6, %v4785_v6 }
 0x291   : > { %v4546_v11 = vpack.c.b16 %v4545_v45, %v4545_v45  ;;  %v4720_v12 = vpack.c.b16 %v4719_v14, %v4719_v14 }
 0x292   : > { %v4658_v16 = vrot.slane %v4657_v13, 1  ;;  %v4787_v19 = vrot.slane %v4786_v18, 2  ;;  %4989 = vmatpush.bf16.msra.mxu2 %v7746_v42 }
 0x293   : > { %v4548_v15 = vshrl.u32 %v4546_v11, 16  ;;  %v4722_v10 = vshrl.u32 %v4720_v12, 16 }
 0x294   : > { %7242 = vmatmul.msk.bf16.vlgmr.msrb.gmra.mxu2 %vm4580_vm9, %v4658_v16 }
 0x295   : > { %7190 = vmatmul.msk.bf16.vlgmr.msrb.gmra.mxu0 %vm4580_vm9, %v4548_v15  ;;  %v4724_v17 = vrot.slane %v4722_v10, 1 }
 0x296   : > { %4990 = vmatpush.bf16.msra.mxu2 %v7745_v54 }
 0x29a   : > { %4991 = vmatpush.bf16.msra.mxu2 %v7744_v55 }
 0x29e   : > { %7273 = vmatmul.msk.bf16.vlgmr.msra.gmra.mxu3 %vm4580_vm9, %v4724_v17 }
 0x2a5   : > { %7304 = vmatmul.msk.bf16.vlgmr.msra.gmra.mxu0 %vm4580_vm9, %v4787_v19 }
 0x311   : > { %v4639_v34 = vpop.f32.mrf.mxu3 }
 0x312   : > { %v4593_v33 = vpop.f32.mrf.mxu0 }
 0x313   : > { %v4640_v41 = vadd.f32 %v4639_v34, %v4593_v33 }
 0x317   : > { %v4701_v37 = vpop.f32.mrf.mxu2 }
 0x318   : > { %v4705_v31 = vadd.f32 %v4701_v37, %v4640_v41 }
 0x319   : > { %v4641_v39 = vpop.f32.mrf.mxu3 }
 0x31a   : > { %v4595_v38 = vpop.f32.mrf.mxu0 }
 0x31f   : > { %v4703_v43 = vpop.f32.mrf.mxu2 }
 0x321   : > { %v4767_v32 = vpop.f32.mrf.mxu3 }
 0x322   : > { %v4830_v44 = vpop.f32.mrf.mxu0  ;;  %v4771_v46 = vadd.f32 %v4767_v32, %v4705_v31 }
 0x324   : > { %v4834_v60 = vadd.f32 %v4830_v44, %v4771_v46 }
 0x326   : > { %v4836_v48 = vadd.f32 %v4835_v47, %v4834_v60 }
 0x328   : > { %v4837_v49 = vmax.f32 %v4836_v48, 0.0 }
 0x329   : > { %v4769_v50 = vpop.f32.mrf.mxu3 }
 0x32a   : > { %v4832_v51 = vpop.f32.mrf.mxu0  ;;  %v4838_v53 = vpack.c.bf16 %v4837_v49, %v4837_v49 }
 0x32c   : > { %4912 = vmatmul.bf16.vlgmr.msrb.gmra.mxu1 %v4838_v53 }
 0x3a9   : > { %v4913_v57 = vpop.f32.mrf.mxu1 }
 0x3aa   : > { %v4914_v58 = vadd.f32 %v4913_v57, %v4855_v56 }
 0x3ac   : > { %v4917_v59 = vmax.f32 %v4914_v58, 0.0 }
 0x3ae   : > { %v4918_v61 = vpack.c.bf16 %v4917_v59, %v4917_v59 }
 0x3b0   : > { %4992 = vmatmul.bf16.vlgmr.msra.gmra.mxu2 %v4918_v61 }
 0x3b1   : > { %v4915_v62 = vpop.f32.mrf.mxu1 }
 0x433   : > { %v4993_v52 = vpop.f32.mrf.mxu2 }
 0x434   : > { %v4994_v1 = vadd.f32 %v4993_v52, %v4935_v63 }
 0x436   : > { %4997 = vst [vmem:[%s496_s16] sm:$0x1] %v4994_v1 }
 0x437   : > { %7821 = shalt.err (!%p7818_p3)
}
 0x438   : > { %7752 = dma.vmem_to_hbm [thread:$0]  (%p7971_p5), %s5010_s0, 16, %s5012_s2, %s4999_s20  }
 0x43b   : > { %v4995_v21 = vpop.f32.mrf.mxu2 }
 0x43c PF: > { %s9552_s25 = sld [smem:[#allocation10_spill]] }
 0x43d   : > { %s9553_s24 = sld [smem:[#allocation8_spill]] }
 0x442   : > { %p7758_p4 = scmp.ge.s32.totalorder %s9552_s25, 2 }
 0x443   : > { %s5023_s22 = sand.u32 1, %s9553_s24  }
 0x444   : > { %p7755_p7 = pnand %p7758_p4, %p7975_p6  ;;  %s5024_s29 = scalar_lea.sflag [#allocation6], %s5023_s22 }
 0x446   : > { %p7756_p8 = pneg %p7755_p7 }
 0x448   : > { %7839 = dma.done.wait (%p7756_p8), %s5024_s29, 16  }
 0x449   : > { %7841 = vsyncadd (%p7756_p8), %s5024_s29, 4294967280  ;;  %s9555_s16 = sld [smem:[#allocation11_spill]]  ;;  %s9558_s29 = smov %s7848_s30 }
 0x44a   : > { %s9556_s21 = sld [smem:[#allocation9_spill]] }
 0x44b   : > { %s9557_s15 = sld [smem:[#allocation12_spill]] }
 0x44f   : > { %p24_p9 = scmp.ge.s32.totalorder %s9555_s16, 4  }
 0x450   : > { %s9559_s30 = smov %s9556_s21 }
 0x451   :  { %26 = sbr.rel (!%p24_p9) target bundleno = 7 (0x7), region = 142 }
 0x456   :  { %5029 = vsyncpa [#allocation6], 1 }
 0x457   :  { %5031 = vsyncpa [#allocation6 + $0x1], 1 }

</bundles_post_ra>
